<compile_context>
chip_gen: v7x
topology: tpu7x:2x2x1
jax: 0.10.0
libtpu: 0.0.40
codegen_flags: <defaults>
</compile_context>

<pallas_src>
import functools

import jax
import jax.numpy as jnp
from jax.experimental import pallas as pl
from jax.experimental.pallas import tpu as pltpu

LANES = 128


def _nafr_kernel(scal_ref,                      # SMEM (P,) f32: all parameters
                 tab_ref, txt_ref, img_ref,     # (F,TBr,128), (Td,TBr,128), (Id,TBr,128)
                 contrib_ref, pack_ref,         # (F,TBr,128), (4,TBr,128) = [w0,w1,w2,out]
                 *, F, H, Td, Id):
    # SMEM packing offsets (must match the wrapper).
    o_w1 = 0
    o_b1 = H * F
    o_w2 = 2 * H * F
    o_b2 = 3 * H * F
    o_wt = o_b2 + F
    o_bt = o_wt + Td
    o_wi = o_bt + 1
    o_bi = o_wi + Id
    o_wf = o_bi + 1
    o_bf = o_wf + 9
    o_wo = o_bf + 3
    o_bo = o_wo + 1

    tile = tab_ref.shape[1:]                    # (TBr, 128) — fully lane/sublane dense
    zero = jnp.zeros(tile, jnp.float32)

    # ---- NAM: per-feature tiny MLP, scalar-broadcast FMAs on dense tiles ----
    tab_score = zero
    for f in range(F):
        x = tab_ref[f].astype(jnp.float32)      # load once per feature
        acc = zero
        for h in range(H):
            w1 = scal_ref[o_w1 + h * F + f]
            b1 = scal_ref[o_b1 + h * F + f]
            w2 = scal_ref[o_w2 + h * F + f]
            acc = acc + jnp.maximum(x * w1 + b1, 0.0) * w2
        acc = acc + scal_ref[o_b2 + f]
        contrib_ref[f] = acc                    # full-width unmasked store
        tab_score = tab_score + acc             # feature reduce = dense VPU adds

    # ---- text / image projections: per-channel scalar FMAs on dense tiles ----
    txt_score = zero
    for d in range(Td):
        txt_score = txt_score + txt_ref[d].astype(jnp.float32) * scal_ref[o_wt + d]
    txt_score = txt_score + scal_ref[o_bt]

    img_score = zero
    for d in range(Id):
        img_score = img_score + img_ref[d].astype(jnp.float32) * scal_ref[o_wi + d]
    img_score = img_score + scal_ref[o_bi]

    # ---- fusion Linear(3,3) + softmax over the 3 scores (scalar-broadcast FMAs) ----
    def logit(k):
        return (tab_score * scal_ref[o_wf + 0 * 3 + k]
                + txt_score * scal_ref[o_wf + 1 * 3 + k]
                + img_score * scal_ref[o_wf + 2 * 3 + k]
                + scal_ref[o_bf + k])

    l0, l1, l2 = logit(0), logit(1), logit(2)
    m = jnp.maximum(jnp.maximum(l0, l1), l2)
    e0 = jnp.exp(l0 - m)
    e1 = jnp.exp(l1 - m)
    e2 = jnp.exp(l2 - m)
    inv = 1.0 / (e0 + e1 + e2)                  # exact: weights sum to exactly 1
    sm0 = e0 * inv
    sm1 = e1 * inv
    sm2 = e2 * inv

    fused = tab_score * sm0 + txt_score * sm1 + img_score * sm2
    out = fused * scal_ref[o_wo] + scal_ref[o_bo]

    # Single packed output (weights rows 0..2, out row 3), all dense stores.
    pack_ref[0] = sm0
    pack_ref[1] = sm1
    pack_ref[2] = sm2
    pack_ref[3] = out


def _pick_block_rows(brows, bytes_per_batch_row):
    """Rows of 128 batch elements per grid step.

    Budget ~12 MiB for the double-buffered working set (safe even under v5e's
    16 MiB default scoped VMEM); cap at 128 rows (16384 batch rows) to keep DMAs
    large while amortizing the ~0.35 us/step overhead; guarantee >= 2 grid steps
    whenever possible so v7x megacore splits the batch across its 2 TensorCores.
    """
    if brows <= 8:
        return brows                              # single block == full (small) batch
    budget_rows = (12 << 20) // max(1, 2 * bytes_per_batch_row)
    cap = max(8, min(128, (budget_rows // LANES) // 8 * 8))
    half = max(8, (brows // 2) // 8 * 8)          # >= 2 grid steps
    return min(cap, half)


def nafr_head(tab, txt, img, attn, params, *, block_rows=None):
    (w1, b1, w2, b2, wt, bt, wi, bi, wf, bf, wo, bo) = params
    B, F = tab.shape
    _, Td = txt.shape
    _, Id = img.shape
    H = w1.shape[0]

    # Every parameter rides the scalar path (one tiny f32 SMEM vector).
    scal = jnp.concatenate([
        w1.reshape(-1), b1.reshape(-1), w2.reshape(-1), b2.reshape(-1),
        wt.reshape(-1), jnp.reshape(bt, (1,)),
        wi.reshape(-1), jnp.reshape(bi, (1,)),
        wf.reshape(-1), bf.reshape(-1),
        jnp.reshape(wo, (1,)), jnp.reshape(bo, (1,)),
    ]).astype(jnp.float32)

    # Batch-in-lanes layout: pad B to a multiple of 128, transpose to (feat, B),
    # then a free reshape to (feat, Brows, 128).
    B_pad = ((B + LANES - 1) // LANES) * LANES
    Brows = B_pad // LANES

    def to_lanes(x):
        xp = jnp.pad(x, ((0, B_pad - B), (0, 0))) if B_pad != B else x
        return xp.T.reshape(x.shape[1], Brows, LANES)   # dtype preserved (bf16 ok)

    tab_l, txt_l, img_l = to_lanes(tab), to_lanes(txt), to_lanes(img)

    bytes_per_batch_row = 4 * (F + Td + Id + F + 4)
    if block_rows is None:
        block_rows = _pick_block_rows(Brows, bytes_per_batch_row)
    grid = (pl.cdiv(Brows, block_rows),)

    def spec(d):
        return pl.BlockSpec((d, block_rows, LANES), lambda i: (0, i, 0))

    kernel = functools.partial(_nafr_kernel, F=F, H=H, Td=Td, Id=Id)

    cost = pl.CostEstimate(
        flops=int(B_pad * (4 * F * H + F + 2 * (Td + Id) + 40)),
        transcendentals=int(4 * B_pad),
        bytes_accessed=int(4 * B_pad * (F + Td + Id + F + 4) + 4 * scal.size),
    )

    contrib_l, pack_l = pl.pallas_call(
        kernel,
        out_shape=(
            jax.ShapeDtypeStruct((F, Brows, LANES), jnp.float32),
            jax.ShapeDtypeStruct((4, Brows, LANES), jnp.float32),
        ),
        grid=grid,
        in_specs=[
            pl.BlockSpec(memory_space=pltpu.MemorySpace.SMEM),   # scal
            spec(F), spec(Td), spec(Id),
        ],
        out_specs=(spec(F), spec(4)),
        compiler_params=pltpu.CompilerParams(
            dimension_semantics=("parallel",),
            vmem_limit_bytes=32 << 20,
        ),
        cost_estimate=cost,
    )(scal, tab_l, txt_l, img_l)

    # Un-pack / un-pad in the wrapper (layout plumbing only).
    contribs = contrib_l.reshape(F, B_pad).T[:B]          # (B, F)
    pack = pack_l.reshape(4, B_pad)[:, :B]                # (4, B)
    weights = pack[:3].T                                  # (B, 3)
    out = pack[3:4].T                                     # (B, 1)

    # attn is returned untouched, matching the PyTorch forward.
    return out, contribs, attn, weights


def init_params(key, tab_dim, text_dim, img_dim, hidden):
    ks = jax.random.split(key, 12)
    f32 = jnp.float32
    w1 = jax.random.normal(ks[0], (hidden, tab_dim), f32) * 0.5
    b1 = jax.random.normal(ks[1], (hidden, tab_dim), f32) * 0.1
    w2 = jax.random.normal(ks[2], (hidden, tab_dim), f32) * 0.5
    b2 = jax.random.normal(ks[3], (tab_dim,), f32) * 0.1
    wt = jax.random.normal(ks[4], (text_dim,), f32) * (1.0 / (text_dim ** 0.5))
    bt = jax.random.normal(ks[5], (), f32) * 0.1
    wi = jax.random.normal(ks[6], (img_dim,), f32) * (1.0 / (img_dim ** 0.5))
    bi = jax.random.normal(ks[7], (), f32) * 0.1
    wf = jax.random.normal(ks[8], (3, 3), f32) * 0.5       # "scores @ wf" orientation
    bf = jax.random.normal(ks[9], (3,), f32) * 0.1
    wo = jax.random.normal(ks[10], (), f32)
    bo = jax.random.normal(ks[11], (), f32) * 0.1
    return (w1, b1, w2, b2, wt, bt, wi, bi, wf, bf, wo, bo)


def reference_forward(tab, txt, img, attn, params):
    (w1, b1, w2, b2, wt, bt, wi, bi, wf, bf, wo, bo) = params
    h = jnp.maximum(tab[:, None, :] * w1[None] + b1[None], 0.0)     # (B, H, F)
    contribs = jnp.sum(h * w2[None], axis=1) + b2                   # (B, F)
    tab_score = jnp.sum(contribs, axis=1, keepdims=True)
    txt_score = txt @ wt[:, None] + bt
    img_score = img @ wi[:, None] + bi
    scores = jnp.concatenate([tab_score, txt_score, img_score], axis=1)
    logits = scores @ wf + bf
    weights = jax.nn.softmax(logits, axis=1)
    fused = jnp.sum(scores * weights, axis=1, keepdims=True)
    return fused * wo + bo, contribs, attn, weights


def _check(B, tab_dim, text_dim, img_dim, hidden, seed):
    key = jax.random.PRNGKey(seed)
    k_tab, k_txt, k_img, k_attn, k_par = jax.random.split(key, 5)
    tab = jax.random.normal(k_tab, (B, tab_dim), jnp.float32)
    txt = jax.random.normal(k_txt, (B, text_dim), jnp.float32)
    img = jax.random.normal(k_img, (B, img_dim), jnp.float32)
    attn = jax.random.normal(k_attn, (B, 8, 8), jnp.float32)
    params = init_params(k_par, tab_dim, text_dim, img_dim, hidden)

    out, contribs, attn_out, weights = nafr_head(tab, txt, img, attn, params)
    jax.block_until_ready((out, contribs, attn_out, weights))

    ref_out, ref_contribs, _, ref_weights = reference_forward(tab, txt, img, attn, params)
    assert jnp.allclose(contribs, ref_contribs, atol=1e-4, rtol=1e-4)
    assert jnp.allclose(weights, ref_weights, atol=1e-4, rtol=1e-4)
    assert jnp.allclose(out, ref_out, atol=1e-4, rtol=1e-4)
    assert jnp.array_equal(attn_out, attn)


if __name__ == "__main__":
    # Small config from the spec (single block, tiny batch).
    _check(B=2, tab_dim=4, text_dim=32, img_dim=32, hidden=16, seed=0)
    # Multi-step grid with a ragged last block (exercises cdiv padding path).
    _check(B=1200, tab_dim=4, text_dim=32, img_dim=32, hidden=16, seed=1)
    print("KERNEL_OK")
</pallas_src>

<mosaic_0001>
module attributes {stable_mosaic.version = 11 : i64} {
  func.func @_nafr_kernel(%arg0: i32, %arg1: memref<276xf32, #tpu.memory_space<smem>>, %arg2: memref<4x1x128xf32, #tpu.memory_space<vmem>>, %arg3: memref<32x1x128xf32, #tpu.memory_space<vmem>>, %arg4: memref<32x1x128xf32, #tpu.memory_space<vmem>>, %arg5: memref<4x1x128xf32, #tpu.memory_space<vmem>>, %arg6: memref<4x1x128xf32, #tpu.memory_space<vmem>>) attributes {dimension_semantics = [#tpu.dimension_semantics<parallel>], iteration_bounds = array<i64: 1>, scalar_prefetch = 0 : i64, scratch_operands = 0 : i64, tpu.core_type = #tpu.core_type<tc>, window_params = [{transform_indices = @transform_0, window_bounds = array<i64: 276>}, {transform_indices = @transform_1, window_bounds = array<i64: 4, 1, 128>}, {transform_indices = @transform_2, window_bounds = array<i64: 32, 1, 128>}, {transform_indices = @transform_3, window_bounds = array<i64: 32, 1, 128>}, {transform_indices = @transform_4, window_bounds = array<i64: 4, 1, 128>}, {transform_indices = @transform_5, window_bounds = array<i64: 4, 1, 128>}]} {
    %cst = arith.constant 0.000000e+00 : f32
    %0 = vector.broadcast %cst : f32 to vector<1x128xf32>
    %c0 = arith.constant 0 : index
    %c0_0 = arith.constant 0 : index
    %c0_1 = arith.constant 0 : index
    %1 = vector.load %arg2[%c0, %c0_0, %c0_1] : memref<4x1x128xf32, #tpu.memory_space<vmem>>, vector<1x1x128xf32>
    %2 = vector.shape_cast %1 : vector<1x1x128xf32> to vector<1x128xf32>
    %c0_2 = arith.constant 0 : index
    %3 = memref.load %arg1[%c0_2] : memref<276xf32, #tpu.memory_space<smem>>
    %c64 = arith.constant 64 : index
    %4 = memref.load %arg1[%c64] : memref<276xf32, #tpu.memory_space<smem>>
    %c128 = arith.constant 128 : index
    %5 = memref.load %arg1[%c128] : memref<276xf32, #tpu.memory_space<smem>>
    %6 = vector.broadcast %3 : f32 to vector<1x128xf32>
    %7 = arith.mulf %2, %6 : vector<1x128xf32>
    %8 = vector.broadcast %4 : f32 to vector<1x128xf32>
    %9 = arith.addf %7, %8 : vector<1x128xf32>
    %cst_3 = arith.constant 0.000000e+00 : f32
    %10 = vector.broadcast %cst_3 : f32 to vector<1x128xf32>
    %11 = arith.maximumf %9, %10 : vector<1x128xf32>
    %12 = vector.broadcast %5 : f32 to vector<1x128xf32>
    %13 = arith.mulf %11, %12 : vector<1x128xf32>
    %14 = arith.addf %0, %13 : vector<1x128xf32>
    %c4 = arith.constant 4 : index
    %15 = memref.load %arg1[%c4] : memref<276xf32, #tpu.memory_space<smem>>
    %c68 = arith.constant 68 : index
    %16 = memref.load %arg1[%c68] : memref<276xf32, #tpu.memory_space<smem>>
    %c132 = arith.constant 132 : index
    %17 = memref.load %arg1[%c132] : memref<276xf32, #tpu.memory_space<smem>>
    %18 = vector.broadcast %15 : f32 to vector<1x128xf32>
    %19 = arith.mulf %2, %18 : vector<1x128xf32>
    %20 = vector.broadcast %16 : f32 to vector<1x128xf32>
    %21 = arith.addf %19, %20 : vector<1x128xf32>
    %cst_4 = arith.constant 0.000000e+00 : f32
    %22 = vector.broadcast %cst_4 : f32 to vector<1x128xf32>
    %23 = arith.maximumf %21, %22 : vector<1x128xf32>
    %24 = vector.broadcast %17 : f32 to vector<1x128xf32>
    %25 = arith.mulf %23, %24 : vector<1x128xf32>
    %26 = arith.addf %14, %25 : vector<1x128xf32>
    %c8 = arith.constant 8 : index
    %27 = memref.load %arg1[%c8] : memref<276xf32, #tpu.memory_space<smem>>
    %c72 = arith.constant 72 : index
    %28 = memref.load %arg1[%c72] : memref<276xf32, #tpu.memory_space<smem>>
    %c136 = arith.constant 136 : index
    %29 = memref.load %arg1[%c136] : memref<276xf32, #tpu.memory_space<smem>>
    %30 = vector.broadcast %27 : f32 to vector<1x128xf32>
    %31 = arith.mulf %2, %30 : vector<1x128xf32>
    %32 = vector.broadcast %28 : f32 to vector<1x128xf32>
    %33 = arith.addf %31, %32 : vector<1x128xf32>
    %cst_5 = arith.constant 0.000000e+00 : f32
    %34 = vector.broadcast %cst_5 : f32 to vector<1x128xf32>
    %35 = arith.maximumf %33, %34 : vector<1x128xf32>
    %36 = vector.broadcast %29 : f32 to vector<1x128xf32>
    %37 = arith.mulf %35, %36 : vector<1x128xf32>
    %38 = arith.addf %26, %37 : vector<1x128xf32>
    %c12 = arith.constant 12 : index
    %39 = memref.load %arg1[%c12] : memref<276xf32, #tpu.memory_space<smem>>
    %c76 = arith.constant 76 : index
    %40 = memref.load %arg1[%c76] : memref<276xf32, #tpu.memory_space<smem>>
    %c140 = arith.constant 140 : index
    %41 = memref.load %arg1[%c140] : memref<276xf32, #tpu.memory_space<smem>>
    %42 = vector.broadcast %39 : f32 to vector<1x128xf32>
    %43 = arith.mulf %2, %42 : vector<1x128xf32>
    %44 = vector.broadcast %40 : f32 to vector<1x128xf32>
    %45 = arith.addf %43, %44 : vector<1x128xf32>
    %cst_6 = arith.constant 0.000000e+00 : f32
    %46 = vector.broadcast %cst_6 : f32 to vector<1x128xf32>
    %47 = arith.maximumf %45, %46 : vector<1x128xf32>
    %48 = vector.broadcast %41 : f32 to vector<1x128xf32>
    %49 = arith.mulf %47, %48 : vector<1x128xf32>
    %50 = arith.addf %38, %49 : vector<1x128xf32>
    %c16 = arith.constant 16 : index
    %51 = memref.load %arg1[%c16] : memref<276xf32, #tpu.memory_space<smem>>
    %c80 = arith.constant 80 : index
    %52 = memref.load %arg1[%c80] : memref<276xf32, #tpu.memory_space<smem>>
    %c144 = arith.constant 144 : index
    %53 = memref.load %arg1[%c144] : memref<276xf32, #tpu.memory_space<smem>>
    %54 = vector.broadcast %51 : f32 to vector<1x128xf32>
    %55 = arith.mulf %2, %54 : vector<1x128xf32>
    %56 = vector.broadcast %52 : f32 to vector<1x128xf32>
    %57 = arith.addf %55, %56 : vector<1x128xf32>
    %cst_7 = arith.constant 0.000000e+00 : f32
    %58 = vector.broadcast %cst_7 : f32 to vector<1x128xf32>
    %59 = arith.maximumf %57, %58 : vector<1x128xf32>
    %60 = vector.broadcast %53 : f32 to vector<1x128xf32>
    %61 = arith.mulf %59, %60 : vector<1x128xf32>
    %62 = arith.addf %50, %61 : vector<1x128xf32>
    %c20 = arith.constant 20 : index
    %63 = memref.load %arg1[%c20] : memref<276xf32, #tpu.memory_space<smem>>
    %c84 = arith.constant 84 : index
    %64 = memref.load %arg1[%c84] : memref<276xf32, #tpu.memory_space<smem>>
    %c148 = arith.constant 148 : index
    %65 = memref.load %arg1[%c148] : memref<276xf32, #tpu.memory_space<smem>>
    %66 = vector.broadcast %63 : f32 to vector<1x128xf32>
    %67 = arith.mulf %2, %66 : vector<1x128xf32>
    %68 = vector.broadcast %64 : f32 to vector<1x128xf32>
    %69 = arith.addf %67, %68 : vector<1x128xf32>
    %cst_8 = arith.constant 0.000000e+00 : f32
    %70 = vector.broadcast %cst_8 : f32 to vector<1x128xf32>
    %71 = arith.maximumf %69, %70 : vector<1x128xf32>
    %72 = vector.broadcast %65 : f32 to vector<1x128xf32>
    %73 = arith.mulf %71, %72 : vector<1x128xf32>
    %74 = arith.addf %62, %73 : vector<1x128xf32>
    %c24 = arith.constant 24 : index
    %75 = memref.load %arg1[%c24] : memref<276xf32, #tpu.memory_space<smem>>
    %c88 = arith.constant 88 : index
    %76 = memref.load %arg1[%c88] : memref<276xf32, #tpu.memory_space<smem>>
    %c152 = arith.constant 152 : index
    %77 = memref.load %arg1[%c152] : memref<276xf32, #tpu.memory_space<smem>>
    %78 = vector.broadcast %75 : f32 to vector<1x128xf32>
    %79 = arith.mulf %2, %78 : vector<1x128xf32>
    %80 = vector.broadcast %76 : f32 to vector<1x128xf32>
    %81 = arith.addf %79, %80 : vector<1x128xf32>
    %cst_9 = arith.constant 0.000000e+00 : f32
    %82 = vector.broadcast %cst_9 : f32 to vector<1x128xf32>
    %83 = arith.maximumf %81, %82 : vector<1x128xf32>
    %84 = vector.broadcast %77 : f32 to vector<1x128xf32>
    %85 = arith.mulf %83, %84 : vector<1x128xf32>
    %86 = arith.addf %74, %85 : vector<1x128xf32>
    %c28 = arith.constant 28 : index
    %87 = memref.load %arg1[%c28] : memref<276xf32, #tpu.memory_space<smem>>
    %c92 = arith.constant 92 : index
    %88 = memref.load %arg1[%c92] : memref<276xf32, #tpu.memory_space<smem>>
    %c156 = arith.constant 156 : index
    %89 = memref.load %arg1[%c156] : memref<276xf32, #tpu.memory_space<smem>>
    %90 = vector.broadcast %87 : f32 to vector<1x128xf32>
    %91 = arith.mulf %2, %90 : vector<1x128xf32>
    %92 = vector.broadcast %88 : f32 to vector<1x128xf32>
    %93 = arith.addf %91, %92 : vector<1x128xf32>
    %cst_10 = arith.constant 0.000000e+00 : f32
    %94 = vector.broadcast %cst_10 : f32 to vector<1x128xf32>
    %95 = arith.maximumf %93, %94 : vector<1x128xf32>
    %96 = vector.broadcast %89 : f32 to vector<1x128xf32>
    %97 = arith.mulf %95, %96 : vector<1x128xf32>
    %98 = arith.addf %86, %97 : vector<1x128xf32>
    %c32 = arith.constant 32 : index
    %99 = memref.load %arg1[%c32] : memref<276xf32, #tpu.memory_space<smem>>
    %c96 = arith.constant 96 : index
    %100 = memref.load %arg1[%c96] : memref<276xf32, #tpu.memory_space<smem>>
    %c160 = arith.constant 160 : index
    %101 = memref.load %arg1[%c160] : memref<276xf32, #tpu.memory_space<smem>>
    %102 = vector.broadcast %99 : f32 to vector<1x128xf32>
    %103 = arith.mulf %2, %102 : vector<1x128xf32>
    %104 = vector.broadcast %100 : f32 to vector<1x128xf32>
    %105 = arith.addf %103, %104 : vector<1x128xf32>
    %cst_11 = arith.constant 0.000000e+00 : f32
    %106 = vector.broadcast %cst_11 : f32 to vector<1x128xf32>
    %107 = arith.maximumf %105, %106 : vector<1x128xf32>
    %108 = vector.broadcast %101 : f32 to vector<1x128xf32>
    %109 = arith.mulf %107, %108 : vector<1x128xf32>
    %110 = arith.addf %98, %109 : vector<1x128xf32>
    %c36 = arith.constant 36 : index
    %111 = memref.load %arg1[%c36] : memref<276xf32, #tpu.memory_space<smem>>
    %c100 = arith.constant 100 : index
    %112 = memref.load %arg1[%c100] : memref<276xf32, #tpu.memory_space<smem>>
    %c164 = arith.constant 164 : index
    %113 = memref.load %arg1[%c164] : memref<276xf32, #tpu.memory_space<smem>>
    %114 = vector.broadcast %111 : f32 to vector<1x128xf32>
    %115 = arith.mulf %2, %114 : vector<1x128xf32>
    %116 = vector.broadcast %112 : f32 to vector<1x128xf32>
    %117 = arith.addf %115, %116 : vector<1x128xf32>
    %cst_12 = arith.constant 0.000000e+00 : f32
    %118 = vector.broadcast %cst_12 : f32 to vector<1x128xf32>
    %119 = arith.maximumf %117, %118 : vector<1x128xf32>
    %120 = vector.broadcast %113 : f32 to vector<1x128xf32>
    %121 = arith.mulf %119, %120 : vector<1x128xf32>
    %122 = arith.addf %110, %121 : vector<1x128xf32>
    %c40 = arith.constant 40 : index
    %123 = memref.load %arg1[%c40] : memref<276xf32, #tpu.memory_space<smem>>
    %c104 = arith.constant 104 : index
    %124 = memref.load %arg1[%c104] : memref<276xf32, #tpu.memory_space<smem>>
    %c168 = arith.constant 168 : index
    %125 = memref.load %arg1[%c168] : memref<276xf32, #tpu.memory_space<smem>>
    %126 = vector.broadcast %123 : f32 to vector<1x128xf32>
    %127 = arith.mulf %2, %126 : vector<1x128xf32>
    %128 = vector.broadcast %124 : f32 to vector<1x128xf32>
    %129 = arith.addf %127, %128 : vector<1x128xf32>
    %cst_13 = arith.constant 0.000000e+00 : f32
    %130 = vector.broadcast %cst_13 : f32 to vector<1x128xf32>
    %131 = arith.maximumf %129, %130 : vector<1x128xf32>
    %132 = vector.broadcast %125 : f32 to vector<1x128xf32>
    %133 = arith.mulf %131, %132 : vector<1x128xf32>
    %134 = arith.addf %122, %133 : vector<1x128xf32>
    %c44 = arith.constant 44 : index
    %135 = memref.load %arg1[%c44] : memref<276xf32, #tpu.memory_space<smem>>
    %c108 = arith.constant 108 : index
    %136 = memref.load %arg1[%c108] : memref<276xf32, #tpu.memory_space<smem>>
    %c172 = arith.constant 172 : index
    %137 = memref.load %arg1[%c172] : memref<276xf32, #tpu.memory_space<smem>>
    %138 = vector.broadcast %135 : f32 to vector<1x128xf32>
    %139 = arith.mulf %2, %138 : vector<1x128xf32>
    %140 = vector.broadcast %136 : f32 to vector<1x128xf32>
    %141 = arith.addf %139, %140 : vector<1x128xf32>
    %cst_14 = arith.constant 0.000000e+00 : f32
    %142 = vector.broadcast %cst_14 : f32 to vector<1x128xf32>
    %143 = arith.maximumf %141, %142 : vector<1x128xf32>
    %144 = vector.broadcast %137 : f32 to vector<1x128xf32>
    %145 = arith.mulf %143, %144 : vector<1x128xf32>
    %146 = arith.addf %134, %145 : vector<1x128xf32>
    %c48 = arith.constant 48 : index
    %147 = memref.load %arg1[%c48] : memref<276xf32, #tpu.memory_space<smem>>
    %c112 = arith.constant 112 : index
    %148 = memref.load %arg1[%c112] : memref<276xf32, #tpu.memory_space<smem>>
    %c176 = arith.constant 176 : index
    %149 = memref.load %arg1[%c176] : memref<276xf32, #tpu.memory_space<smem>>
    %150 = vector.broadcast %147 : f32 to vector<1x128xf32>
    %151 = arith.mulf %2, %150 : vector<1x128xf32>
    %152 = vector.broadcast %148 : f32 to vector<1x128xf32>
    %153 = arith.addf %151, %152 : vector<1x128xf32>
    %cst_15 = arith.constant 0.000000e+00 : f32
    %154 = vector.broadcast %cst_15 : f32 to vector<1x128xf32>
    %155 = arith.maximumf %153, %154 : vector<1x128xf32>
    %156 = vector.broadcast %149 : f32 to vector<1x128xf32>
    %157 = arith.mulf %155, %156 : vector<1x128xf32>
    %158 = arith.addf %146, %157 : vector<1x128xf32>
    %c52 = arith.constant 52 : index
    %159 = memref.load %arg1[%c52] : memref<276xf32, #tpu.memory_space<smem>>
    %c116 = arith.constant 116 : index
    %160 = memref.load %arg1[%c116] : memref<276xf32, #tpu.memory_space<smem>>
    %c180 = arith.constant 180 : index
    %161 = memref.load %arg1[%c180] : memref<276xf32, #tpu.memory_space<smem>>
    %162 = vector.broadcast %159 : f32 to vector<1x128xf32>
    %163 = arith.mulf %2, %162 : vector<1x128xf32>
    %164 = vector.broadcast %160 : f32 to vector<1x128xf32>
    %165 = arith.addf %163, %164 : vector<1x128xf32>
    %cst_16 = arith.constant 0.000000e+00 : f32
    %166 = vector.broadcast %cst_16 : f32 to vector<1x128xf32>
    %167 = arith.maximumf %165, %166 : vector<1x128xf32>
    %168 = vector.broadcast %161 : f32 to vector<1x128xf32>
    %169 = arith.mulf %167, %168 : vector<1x128xf32>
    %170 = arith.addf %158, %169 : vector<1x128xf32>
    %c56 = arith.constant 56 : index
    %171 = memref.load %arg1[%c56] : memref<276xf32, #tpu.memory_space<smem>>
    %c120 = arith.constant 120 : index
    %172 = memref.load %arg1[%c120] : memref<276xf32, #tpu.memory_space<smem>>
    %c184 = arith.constant 184 : index
    %173 = memref.load %arg1[%c184] : memref<276xf32, #tpu.memory_space<smem>>
    %174 = vector.broadcast %171 : f32 to vector<1x128xf32>
    %175 = arith.mulf %2, %174 : vector<1x128xf32>
    %176 = vector.broadcast %172 : f32 to vector<1x128xf32>
    %177 = arith.addf %175, %176 : vector<1x128xf32>
    %cst_17 = arith.constant 0.000000e+00 : f32
    %178 = vector.broadcast %cst_17 : f32 to vector<1x128xf32>
    %179 = arith.maximumf %177, %178 : vector<1x128xf32>
    %180 = vector.broadcast %173 : f32 to vector<1x128xf32>
    %181 = arith.mulf %179, %180 : vector<1x128xf32>
    %182 = arith.addf %170, %181 : vector<1x128xf32>
    %c60 = arith.constant 60 : index
    %183 = memref.load %arg1[%c60] : memref<276xf32, #tpu.memory_space<smem>>
    %c124 = arith.constant 124 : index
    %184 = memref.load %arg1[%c124] : memref<276xf32, #tpu.memory_space<smem>>
    %c188 = arith.constant 188 : index
    %185 = memref.load %arg1[%c188] : memref<276xf32, #tpu.memory_space<smem>>
    %186 = vector.broadcast %183 : f32 to vector<1x128xf32>
    %187 = arith.mulf %2, %186 : vector<1x128xf32>
    %188 = vector.broadcast %184 : f32 to vector<1x128xf32>
    %189 = arith.addf %187, %188 : vector<1x128xf32>
    %cst_18 = arith.constant 0.000000e+00 : f32
    %190 = vector.broadcast %cst_18 : f32 to vector<1x128xf32>
    %191 = arith.maximumf %189, %190 : vector<1x128xf32>
    %192 = vector.broadcast %185 : f32 to vector<1x128xf32>
    %193 = arith.mulf %191, %192 : vector<1x128xf32>
    %194 = arith.addf %182, %193 : vector<1x128xf32>
    %c192 = arith.constant 192 : index
    %195 = memref.load %arg1[%c192] : memref<276xf32, #tpu.memory_space<smem>>
    %196 = vector.broadcast %195 : f32 to vector<1x128xf32>
    %197 = arith.addf %194, %196 : vector<1x128xf32>
    %c0_19 = arith.constant 0 : index
    %c0_20 = arith.constant 0 : index
    %c0_21 = arith.constant 0 : index
    %198 = vector.load %arg5[%c0_19, %c0_20, %c0_21] : memref<4x1x128xf32, #tpu.memory_space<vmem>>, vector<1x1x128xf32>
    %199 = vector.shape_cast %198 : vector<1x1x128xf32> to vector<1x128xf32>
    %200 = vector.shape_cast %197 : vector<1x128xf32> to vector<1x1x128xf32>
    tpu.vector_store %arg5[%c0_19, %c0_20, %c0_21], %200 {strides = array<i32>} : memref<4x1x128xf32, #tpu.memory_space<vmem>>, vector<1x1x128xf32>,
    %201 = arith.addf %0, %197 : vector<1x128xf32>
    %c1 = arith.constant 1 : index
    %c0_22 = arith.constant 0 : index
    %c0_23 = arith.constant 0 : index
    %202 = vector.load %arg2[%c1, %c0_22, %c0_23] : memref<4x1x128xf32, #tpu.memory_space<vmem>>, vector<1x1x128xf32>
    %203 = vector.shape_cast %202 : vector<1x1x128xf32> to vector<1x128xf32>
    %c1_24 = arith.constant 1 : index
    %204 = memref.load %arg1[%c1_24] : memref<276xf32, #tpu.memory_space<smem>>
    %c65 = arith.constant 65 : index
    %205 = memref.load %arg1[%c65] : memref<276xf32, #tpu.memory_space<smem>>
    %c129 = arith.constant 129 : index
    %206 = memref.load %arg1[%c129] : memref<276xf32, #tpu.memory_space<smem>>
    %207 = vector.broadcast %204 : f32 to vector<1x128xf32>
    %208 = arith.mulf %203, %207 : vector<1x128xf32>
    %209 = vector.broadcast %205 : f32 to vector<1x128xf32>
    %210 = arith.addf %208, %209 : vector<1x128xf32>
    %cst_25 = arith.constant 0.000000e+00 : f32
    %211 = vector.broadcast %cst_25 : f32 to vector<1x128xf32>
    %212 = arith.maximumf %210, %211 : vector<1x128xf32>
    %213 = vector.broadcast %206 : f32 to vector<1x128xf32>
    %214 = arith.mulf %212, %213 : vector<1x128xf32>
    %215 = arith.addf %0, %214 : vector<1x128xf32>
    %c5 = arith.constant 5 : index
    %216 = memref.load %arg1[%c5] : memref<276xf32, #tpu.memory_space<smem>>
    %c69 = arith.constant 69 : index
    %217 = memref.load %arg1[%c69] : memref<276xf32, #tpu.memory_space<smem>>
    %c133 = arith.constant 133 : index
    %218 = memref.load %arg1[%c133] : memref<276xf32, #tpu.memory_space<smem>>
    %219 = vector.broadcast %216 : f32 to vector<1x128xf32>
    %220 = arith.mulf %203, %219 : vector<1x128xf32>
    %221 = vector.broadcast %217 : f32 to vector<1x128xf32>
    %222 = arith.addf %220, %221 : vector<1x128xf32>
    %cst_26 = arith.constant 0.000000e+00 : f32
    %223 = vector.broadcast %cst_26 : f32 to vector<1x128xf32>
    %224 = arith.maximumf %222, %223 : vector<1x128xf32>
    %225 = vector.broadcast %218 : f32 to vector<1x128xf32>
    %226 = arith.mulf %224, %225 : vector<1x128xf32>
    %227 = arith.addf %215, %226 : vector<1x128xf32>
    %c9 = arith.constant 9 : index
    %228 = memref.load %arg1[%c9] : memref<276xf32, #tpu.memory_space<smem>>
    %c73 = arith.constant 73 : index
    %229 = memref.load %arg1[%c73] : memref<276xf32, #tpu.memory_space<smem>>
    %c137 = arith.constant 137 : index
    %230 = memref.load %arg1[%c137] : memref<276xf32, #tpu.memory_space<smem>>
    %231 = vector.broadcast %228 : f32 to vector<1x128xf32>
    %232 = arith.mulf %203, %231 : vector<1x128xf32>
    %233 = vector.broadcast %229 : f32 to vector<1x128xf32>
    %234 = arith.addf %232, %233 : vector<1x128xf32>
    %cst_27 = arith.constant 0.000000e+00 : f32
    %235 = vector.broadcast %cst_27 : f32 to vector<1x128xf32>
    %236 = arith.maximumf %234, %235 : vector<1x128xf32>
    %237 = vector.broadcast %230 : f32 to vector<1x128xf32>
    %238 = arith.mulf %236, %237 : vector<1x128xf32>
    %239 = arith.addf %227, %238 : vector<1x128xf32>
    %c13 = arith.constant 13 : index
    %240 = memref.load %arg1[%c13] : memref<276xf32, #tpu.memory_space<smem>>
    %c77 = arith.constant 77 : index
    %241 = memref.load %arg1[%c77] : memref<276xf32, #tpu.memory_space<smem>>
    %c141 = arith.constant 141 : index
    %242 = memref.load %arg1[%c141] : memref<276xf32, #tpu.memory_space<smem>>
    %243 = vector.broadcast %240 : f32 to vector<1x128xf32>
    %244 = arith.mulf %203, %243 : vector<1x128xf32>
    %245 = vector.broadcast %241 : f32 to vector<1x128xf32>
    %246 = arith.addf %244, %245 : vector<1x128xf32>
    %cst_28 = arith.constant 0.000000e+00 : f32
    %247 = vector.broadcast %cst_28 : f32 to vector<1x128xf32>
    %248 = arith.maximumf %246, %247 : vector<1x128xf32>
    %249 = vector.broadcast %242 : f32 to vector<1x128xf32>
    %250 = arith.mulf %248, %249 : vector<1x128xf32>
    %251 = arith.addf %239, %250 : vector<1x128xf32>
    %c17 = arith.constant 17 : index
    %252 = memref.load %arg1[%c17] : memref<276xf32, #tpu.memory_space<smem>>
    %c81 = arith.constant 81 : index
    %253 = memref.load %arg1[%c81] : memref<276xf32, #tpu.memory_space<smem>>
    %c145 = arith.constant 145 : index
    %254 = memref.load %arg1[%c145] : memref<276xf32, #tpu.memory_space<smem>>
    %255 = vector.broadcast %252 : f32 to vector<1x128xf32>
    %256 = arith.mulf %203, %255 : vector<1x128xf32>
    %257 = vector.broadcast %253 : f32 to vector<1x128xf32>
    %258 = arith.addf %256, %257 : vector<1x128xf32>
    %cst_29 = arith.constant 0.000000e+00 : f32
    %259 = vector.broadcast %cst_29 : f32 to vector<1x128xf32>
    %260 = arith.maximumf %258, %259 : vector<1x128xf32>
    %261 = vector.broadcast %254 : f32 to vector<1x128xf32>
    %262 = arith.mulf %260, %261 : vector<1x128xf32>
    %263 = arith.addf %251, %262 : vector<1x128xf32>
    %c21 = arith.constant 21 : index
    %264 = memref.load %arg1[%c21] : memref<276xf32, #tpu.memory_space<smem>>
    %c85 = arith.constant 85 : index
    %265 = memref.load %arg1[%c85] : memref<276xf32, #tpu.memory_space<smem>>
    %c149 = arith.constant 149 : index
    %266 = memref.load %arg1[%c149] : memref<276xf32, #tpu.memory_space<smem>>
    %267 = vector.broadcast %264 : f32 to vector<1x128xf32>
    %268 = arith.mulf %203, %267 : vector<1x128xf32>
    %269 = vector.broadcast %265 : f32 to vector<1x128xf32>
    %270 = arith.addf %268, %269 : vector<1x128xf32>
    %cst_30 = arith.constant 0.000000e+00 : f32
    %271 = vector.broadcast %cst_30 : f32 to vector<1x128xf32>
    %272 = arith.maximumf %270, %271 : vector<1x128xf32>
    %273 = vector.broadcast %266 : f32 to vector<1x128xf32>
    %274 = arith.mulf %272, %273 : vector<1x128xf32>
    %275 = arith.addf %263, %274 : vector<1x128xf32>
    %c25 = arith.constant 25 : index
    %276 = memref.load %arg1[%c25] : memref<276xf32, #tpu.memory_space<smem>>
    %c89 = arith.constant 89 : index
    %277 = memref.load %arg1[%c89] : memref<276xf32, #tpu.memory_space<smem>>
    %c153 = arith.constant 153 : index
    %278 = memref.load %arg1[%c153] : memref<276xf32, #tpu.memory_space<smem>>
    %279 = vector.broadcast %276 : f32 to vector<1x128xf32>
    %280 = arith.mulf %203, %279 : vector<1x128xf32>
    %281 = vector.broadcast %277 : f32 to vector<1x128xf32>
    %282 = arith.addf %280, %281 : vector<1x128xf32>
    %cst_31 = arith.constant 0.000000e+00 : f32
    %283 = vector.broadcast %cst_31 : f32 to vector<1x128xf32>
    %284 = arith.maximumf %282, %283 : vector<1x128xf32>
    %285 = vector.broadcast %278 : f32 to vector<1x128xf32>
    %286 = arith.mulf %284, %285 : vector<1x128xf32>
    %287 = arith.addf %275, %286 : vector<1x128xf32>
    %c29 = arith.constant 29 : index
    %288 = memref.load %arg1[%c29] : memref<276xf32, #tpu.memory_space<smem>>
    %c93 = arith.constant 93 : index
    %289 = memref.load %arg1[%c93] : memref<276xf32, #tpu.memory_space<smem>>
    %c157 = arith.constant 157 : index
    %290 = memref.load %arg1[%c157] : memref<276xf32, #tpu.memory_space<smem>>
    %291 = vector.broadcast %288 : f32 to vector<1x128xf32>
    %292 = arith.mulf %203, %291 : vector<1x128xf32>
    %293 = vector.broadcast %289 : f32 to vector<1x128xf32>
    %294 = arith.addf %292, %293 : vector<1x128xf32>
    %cst_32 = arith.constant 0.000000e+00 : f32
    %295 = vector.broadcast %cst_32 : f32 to vector<1x128xf32>
    %296 = arith.maximumf %294, %295 : vector<1x128xf32>
    %297 = vector.broadcast %290 : f32 to vector<1x128xf32>
    %298 = arith.mulf %296, %297 : vector<1x128xf32>
    %299 = arith.addf %287, %298 : vector<1x128xf32>
    %c33 = arith.constant 33 : index
    %300 = memref.load %arg1[%c33] : memref<276xf32, #tpu.memory_space<smem>>
    %c97 = arith.constant 97 : index
    %301 = memref.load %arg1[%c97] : memref<276xf32, #tpu.memory_space<smem>>
    %c161 = arith.constant 161 : index
    %302 = memref.load %arg1[%c161] : memref<276xf32, #tpu.memory_space<smem>>
    %303 = vector.broadcast %300 : f32 to vector<1x128xf32>
    %304 = arith.mulf %203, %303 : vector<1x128xf32>
    %305 = vector.broadcast %301 : f32 to vector<1x128xf32>
    %306 = arith.addf %304, %305 : vector<1x128xf32>
    %cst_33 = arith.constant 0.000000e+00 : f32
    %307 = vector.broadcast %cst_33 : f32 to vector<1x128xf32>
    %308 = arith.maximumf %306, %307 : vector<1x128xf32>
    %309 = vector.broadcast %302 : f32 to vector<1x128xf32>
    %310 = arith.mulf %308, %309 : vector<1x128xf32>
    %311 = arith.addf %299, %310 : vector<1x128xf32>
    %c37 = arith.constant 37 : index
    %312 = memref.load %arg1[%c37] : memref<276xf32, #tpu.memory_space<smem>>
    %c101 = arith.constant 101 : index
    %313 = memref.load %arg1[%c101] : memref<276xf32, #tpu.memory_space<smem>>
    %c165 = arith.constant 165 : index
    %314 = memref.load %arg1[%c165] : memref<276xf32, #tpu.memory_space<smem>>
    %315 = vector.broadcast %312 : f32 to vector<1x128xf32>
    %316 = arith.mulf %203, %315 : vector<1x128xf32>
    %317 = vector.broadcast %313 : f32 to vector<1x128xf32>
    %318 = arith.addf %316, %317 : vector<1x128xf32>
    %cst_34 = arith.constant 0.000000e+00 : f32
    %319 = vector.broadcast %cst_34 : f32 to vector<1x128xf32>
    %320 = arith.maximumf %318, %319 : vector<1x128xf32>
    %321 = vector.broadcast %314 : f32 to vector<1x128xf32>
    %322 = arith.mulf %320, %321 : vector<1x128xf32>
    %323 = arith.addf %311, %322 : vector<1x128xf32>
    %c41 = arith.constant 41 : index
    %324 = memref.load %arg1[%c41] : memref<276xf32, #tpu.memory_space<smem>>
    %c105 = arith.constant 105 : index
    %325 = memref.load %arg1[%c105] : memref<276xf32, #tpu.memory_space<smem>>
    %c169 = arith.constant 169 : index
    %326 = memref.load %arg1[%c169] : memref<276xf32, #tpu.memory_space<smem>>
    %327 = vector.broadcast %324 : f32 to vector<1x128xf32>
    %328 = arith.mulf %203, %327 : vector<1x128xf32>
    %329 = vector.broadcast %325 : f32 to vector<1x128xf32>
    %330 = arith.addf %328, %329 : vector<1x128xf32>
    %cst_35 = arith.constant 0.000000e+00 : f32
    %331 = vector.broadcast %cst_35 : f32 to vector<1x128xf32>
    %332 = arith.maximumf %330, %331 : vector<1x128xf32>
    %333 = vector.broadcast %326 : f32 to vector<1x128xf32>
    %334 = arith.mulf %332, %333 : vector<1x128xf32>
    %335 = arith.addf %323, %334 : vector<1x128xf32>
    %c45 = arith.constant 45 : index
    %336 = memref.load %arg1[%c45] : memref<276xf32, #tpu.memory_space<smem>>
    %c109 = arith.constant 109 : index
    %337 = memref.load %arg1[%c109] : memref<276xf32, #tpu.memory_space<smem>>
    %c173 = arith.constant 173 : index
    %338 = memref.load %arg1[%c173] : memref<276xf32, #tpu.memory_space<smem>>
    %339 = vector.broadcast %336 : f32 to vector<1x128xf32>
    %340 = arith.mulf %203, %339 : vector<1x128xf32>
    %341 = vector.broadcast %337 : f32 to vector<1x128xf32>
    %342 = arith.addf %340, %341 : vector<1x128xf32>
    %cst_36 = arith.constant 0.000000e+00 : f32
    %343 = vector.broadcast %cst_36 : f32 to vector<1x128xf32>
    %344 = arith.maximumf %342, %343 : vector<1x128xf32>
    %345 = vector.broadcast %338 : f32 to vector<1x128xf32>
    %346 = arith.mulf %344, %345 : vector<1x128xf32>
    %347 = arith.addf %335, %346 : vector<1x128xf32>
    %c49 = arith.constant 49 : index
    %348 = memref.load %arg1[%c49] : memref<276xf32, #tpu.memory_space<smem>>
    %c113 = arith.constant 113 : index
    %349 = memref.load %arg1[%c113] : memref<276xf32, #tpu.memory_space<smem>>
    %c177 = arith.constant 177 : index
    %350 = memref.load %arg1[%c177] : memref<276xf32, #tpu.memory_space<smem>>
    %351 = vector.broadcast %348 : f32 to vector<1x128xf32>
    %352 = arith.mulf %203, %351 : vector<1x128xf32>
    %353 = vector.broadcast %349 : f32 to vector<1x128xf32>
    %354 = arith.addf %352, %353 : vector<1x128xf32>
    %cst_37 = arith.constant 0.000000e+00 : f32
    %355 = vector.broadcast %cst_37 : f32 to vector<1x128xf32>
    %356 = arith.maximumf %354, %355 : vector<1x128xf32>
    %357 = vector.broadcast %350 : f32 to vector<1x128xf32>
    %358 = arith.mulf %356, %357 : vector<1x128xf32>
    %359 = arith.addf %347, %358 : vector<1x128xf32>
    %c53 = arith.constant 53 : index
    %360 = memref.load %arg1[%c53] : memref<276xf32, #tpu.memory_space<smem>>
    %c117 = arith.constant 117 : index
    %361 = memref.load %arg1[%c117] : memref<276xf32, #tpu.memory_space<smem>>
    %c181 = arith.constant 181 : index
    %362 = memref.load %arg1[%c181] : memref<276xf32, #tpu.memory_space<smem>>
    %363 = vector.broadcast %360 : f32 to vector<1x128xf32>
    %364 = arith.mulf %203, %363 : vector<1x128xf32>
    %365 = vector.broadcast %361 : f32 to vector<1x128xf32>
    %366 = arith.addf %364, %365 : vector<1x128xf32>
    %cst_38 = arith.constant 0.000000e+00 : f32
    %367 = vector.broadcast %cst_38 : f32 to vector<1x128xf32>
    %368 = arith.maximumf %366, %367 : vector<1x128xf32>
    %369 = vector.broadcast %362 : f32 to vector<1x128xf32>
    %370 = arith.mulf %368, %369 : vector<1x128xf32>
    %371 = arith.addf %359, %370 : vector<1x128xf32>
    %c57 = arith.constant 57 : index
    %372 = memref.load %arg1[%c57] : memref<276xf32, #tpu.memory_space<smem>>
    %c121 = arith.constant 121 : index
    %373 = memref.load %arg1[%c121] : memref<276xf32, #tpu.memory_space<smem>>
    %c185 = arith.constant 185 : index
    %374 = memref.load %arg1[%c185] : memref<276xf32, #tpu.memory_space<smem>>
    %375 = vector.broadcast %372 : f32 to vector<1x128xf32>
    %376 = arith.mulf %203, %375 : vector<1x128xf32>
    %377 = vector.broadcast %373 : f32 to vector<1x128xf32>
    %378 = arith.addf %376, %377 : vector<1x128xf32>
    %cst_39 = arith.constant 0.000000e+00 : f32
    %379 = vector.broadcast %cst_39 : f32 to vector<1x128xf32>
    %380 = arith.maximumf %378, %379 : vector<1x128xf32>
    %381 = vector.broadcast %374 : f32 to vector<1x128xf32>
    %382 = arith.mulf %380, %381 : vector<1x128xf32>
    %383 = arith.addf %371, %382 : vector<1x128xf32>
    %c61 = arith.constant 61 : index
    %384 = memref.load %arg1[%c61] : memref<276xf32, #tpu.memory_space<smem>>
    %c125 = arith.constant 125 : index
    %385 = memref.load %arg1[%c125] : memref<276xf32, #tpu.memory_space<smem>>
    %c189 = arith.constant 189 : index
    %386 = memref.load %arg1[%c189] : memref<276xf32, #tpu.memory_space<smem>>
    %387 = vector.broadcast %384 : f32 to vector<1x128xf32>
    %388 = arith.mulf %203, %387 : vector<1x128xf32>
    %389 = vector.broadcast %385 : f32 to vector<1x128xf32>
    %390 = arith.addf %388, %389 : vector<1x128xf32>
    %cst_40 = arith.constant 0.000000e+00 : f32
    %391 = vector.broadcast %cst_40 : f32 to vector<1x128xf32>
    %392 = arith.maximumf %390, %391 : vector<1x128xf32>
    %393 = vector.broadcast %386 : f32 to vector<1x128xf32>
    %394 = arith.mulf %392, %393 : vector<1x128xf32>
    %395 = arith.addf %383, %394 : vector<1x128xf32>
    %c193 = arith.constant 193 : index
    %396 = memref.load %arg1[%c193] : memref<276xf32, #tpu.memory_space<smem>>
    %397 = vector.broadcast %396 : f32 to vector<1x128xf32>
    %398 = arith.addf %395, %397 : vector<1x128xf32>
    %c1_41 = arith.constant 1 : index
    %c0_42 = arith.constant 0 : index
    %c0_43 = arith.constant 0 : index
    %399 = vector.load %arg5[%c1_41, %c0_42, %c0_43] : memref<4x1x128xf32, #tpu.memory_space<vmem>>, vector<1x1x128xf32>
    %400 = vector.shape_cast %399 : vector<1x1x128xf32> to vector<1x128xf32>
    %401 = vector.shape_cast %398 : vector<1x128xf32> to vector<1x1x128xf32>
    tpu.vector_store %arg5[%c1_41, %c0_42, %c0_43], %401 {strides = array<i32>} : memref<4x1x128xf32, #tpu.memory_space<vmem>>, vector<1x1x128xf32>,
    %402 = arith.addf %201, %398 : vector<1x128xf32>
    %c2 = arith.constant 2 : index
    %c0_44 = arith.constant 0 : index
    %c0_45 = arith.constant 0 : index
    %403 = vector.load %arg2[%c2, %c0_44, %c0_45] : memref<4x1x128xf32, #tpu.memory_space<vmem>>, vector<1x1x128xf32>
    %404 = vector.shape_cast %403 : vector<1x1x128xf32> to vector<1x128xf32>
    %c2_46 = arith.constant 2 : index
    %405 = memref.load %arg1[%c2_46] : memref<276xf32, #tpu.memory_space<smem>>
    %c66 = arith.constant 66 : index
    %406 = memref.load %arg1[%c66] : memref<276xf32, #tpu.memory_space<smem>>
    %c130 = arith.constant 130 : index
    %407 = memref.load %arg1[%c130] : memref<276xf32, #tpu.memory_space<smem>>
    %408 = vector.broadcast %405 : f32 to vector<1x128xf32>
    %409 = arith.mulf %404, %408 : vector<1x128xf32>
    %410 = vector.broadcast %406 : f32 to vector<1x128xf32>
    %411 = arith.addf %409, %410 : vector<1x128xf32>
    %cst_47 = arith.constant 0.000000e+00 : f32
    %412 = vector.broadcast %cst_47 : f32 to vector<1x128xf32>
    %413 = arith.maximumf %411, %412 : vector<1x128xf32>
    %414 = vector.broadcast %407 : f32 to vector<1x128xf32>
    %415 = arith.mulf %413, %414 : vector<1x128xf32>
    %416 = arith.addf %0, %415 : vector<1x128xf32>
    %c6 = arith.constant 6 : index
    %417 = memref.load %arg1[%c6] : memref<276xf32, #tpu.memory_space<smem>>
    %c70 = arith.constant 70 : index
    %418 = memref.load %arg1[%c70] : memref<276xf32, #tpu.memory_space<smem>>
    %c134 = arith.constant 134 : index
    %419 = memref.load %arg1[%c134] : memref<276xf32, #tpu.memory_space<smem>>
    %420 = vector.broadcast %417 : f32 to vector<1x128xf32>
    %421 = arith.mulf %404, %420 : vector<1x128xf32>
    %422 = vector.broadcast %418 : f32 to vector<1x128xf32>
    %423 = arith.addf %421, %422 : vector<1x128xf32>
    %cst_48 = arith.constant 0.000000e+00 : f32
    %424 = vector.broadcast %cst_48 : f32 to vector<1x128xf32>
    %425 = arith.maximumf %423, %424 : vector<1x128xf32>
    %426 = vector.broadcast %419 : f32 to vector<1x128xf32>
    %427 = arith.mulf %425, %426 : vector<1x128xf32>
    %428 = arith.addf %416, %427 : vector<1x128xf32>
    %c10 = arith.constant 10 : index
    %429 = memref.load %arg1[%c10] : memref<276xf32, #tpu.memory_space<smem>>
    %c74 = arith.constant 74 : index
    %430 = memref.load %arg1[%c74] : memref<276xf32, #tpu.memory_space<smem>>
    %c138 = arith.constant 138 : index
    %431 = memref.load %arg1[%c138] : memref<276xf32, #tpu.memory_space<smem>>
    %432 = vector.broadcast %429 : f32 to vector<1x128xf32>
    %433 = arith.mulf %404, %432 : vector<1x128xf32>
    %434 = vector.broadcast %430 : f32 to vector<1x128xf32>
    %435 = arith.addf %433, %434 : vector<1x128xf32>
    %cst_49 = arith.constant 0.000000e+00 : f32
    %436 = vector.broadcast %cst_49 : f32 to vector<1x128xf32>
    %437 = arith.maximumf %435, %436 : vector<1x128xf32>
    %438 = vector.broadcast %431 : f32 to vector<1x128xf32>
    %439 = arith.mulf %437, %438 : vector<1x128xf32>
    %440 = arith.addf %428, %439 : vector<1x128xf32>
    %c14 = arith.constant 14 : index
    %441 = memref.load %arg1[%c14] : memref<276xf32, #tpu.memory_space<smem>>
    %c78 = arith.constant 78 : index
    %442 = memref.load %arg1[%c78] : memref<276xf32, #tpu.memory_space<smem>>
    %c142 = arith.constant 142 : index
    %443 = memref.load %arg1[%c142] : memref<276xf32, #tpu.memory_space<smem>>
    %444 = vector.broadcast %441 : f32 to vector<1x128xf32>
    %445 = arith.mulf %404, %444 : vector<1x128xf32>
    %446 = vector.broadcast %442 : f32 to vector<1x128xf32>
    %447 = arith.addf %445, %446 : vector<1x128xf32>
    %cst_50 = arith.constant 0.000000e+00 : f32
    %448 = vector.broadcast %cst_50 : f32 to vector<1x128xf32>
    %449 = arith.maximumf %447, %448 : vector<1x128xf32>
    %450 = vector.broadcast %443 : f32 to vector<1x128xf32>
    %451 = arith.mulf %449, %450 : vector<1x128xf32>
    %452 = arith.addf %440, %451 : vector<1x128xf32>
    %c18 = arith.constant 18 : index
    %453 = memref.load %arg1[%c18] : memref<276xf32, #tpu.memory_space<smem>>
    %c82 = arith.constant 82 : index
    %454 = memref.load %arg1[%c82] : memref<276xf32, #tpu.memory_space<smem>>
    %c146 = arith.constant 146 : index
    %455 = memref.load %arg1[%c146] : memref<276xf32, #tpu.memory_space<smem>>
    %456 = vector.broadcast %453 : f32 to vector<1x128xf32>
    %457 = arith.mulf %404, %456 : vector<1x128xf32>
    %458 = vector.broadcast %454 : f32 to vector<1x128xf32>
    %459 = arith.addf %457, %458 : vector<1x128xf32>
    %cst_51 = arith.constant 0.000000e+00 : f32
    %460 = vector.broadcast %cst_51 : f32 to vector<1x128xf32>
    %461 = arith.maximumf %459, %460 : vector<1x128xf32>
    %462 = vector.broadcast %455 : f32 to vector<1x128xf32>
    %463 = arith.mulf %461, %462 : vector<1x128xf32>
    %464 = arith.addf %452, %463 : vector<1x128xf32>
    %c22 = arith.constant 22 : index
    %465 = memref.load %arg1[%c22] : memref<276xf32, #tpu.memory_space<smem>>
    %c86 = arith.constant 86 : index
    %466 = memref.load %arg1[%c86] : memref<276xf32, #tpu.memory_space<smem>>
    %c150 = arith.constant 150 : index
    %467 = memref.load %arg1[%c150] : memref<276xf32, #tpu.memory_space<smem>>
    %468 = vector.broadcast %465 : f32 to vector<1x128xf32>
    %469 = arith.mulf %404, %468 : vector<1x128xf32>
    %470 = vector.broadcast %466 : f32 to vector<1x128xf32>
    %471 = arith.addf %469, %470 : vector<1x128xf32>
    %cst_52 = arith.constant 0.000000e+00 : f32
    %472 = vector.broadcast %cst_52 : f32 to vector<1x128xf32>
    %473 = arith.maximumf %471, %472 : vector<1x128xf32>
    %474 = vector.broadcast %467 : f32 to vector<1x128xf32>
    %475 = arith.mulf %473, %474 : vector<1x128xf32>
    %476 = arith.addf %464, %475 : vector<1x128xf32>
    %c26 = arith.constant 26 : index
    %477 = memref.load %arg1[%c26] : memref<276xf32, #tpu.memory_space<smem>>
    %c90 = arith.constant 90 : index
    %478 = memref.load %arg1[%c90] : memref<276xf32, #tpu.memory_space<smem>>
    %c154 = arith.constant 154 : index
    %479 = memref.load %arg1[%c154] : memref<276xf32, #tpu.memory_space<smem>>
    %480 = vector.broadcast %477 : f32 to vector<1x128xf32>
    %481 = arith.mulf %404, %480 : vector<1x128xf32>
    %482 = vector.broadcast %478 : f32 to vector<1x128xf32>
    %483 = arith.addf %481, %482 : vector<1x128xf32>
    %cst_53 = arith.constant 0.000000e+00 : f32
    %484 = vector.broadcast %cst_53 : f32 to vector<1x128xf32>
    %485 = arith.maximumf %483, %484 : vector<1x128xf32>
    %486 = vector.broadcast %479 : f32 to vector<1x128xf32>
    %487 = arith.mulf %485, %486 : vector<1x128xf32>
    %488 = arith.addf %476, %487 : vector<1x128xf32>
    %c30 = arith.constant 30 : index
    %489 = memref.load %arg1[%c30] : memref<276xf32, #tpu.memory_space<smem>>
    %c94 = arith.constant 94 : index
    %490 = memref.load %arg1[%c94] : memref<276xf32, #tpu.memory_space<smem>>
    %c158 = arith.constant 158 : index
    %491 = memref.load %arg1[%c158] : memref<276xf32, #tpu.memory_space<smem>>
    %492 = vector.broadcast %489 : f32 to vector<1x128xf32>
    %493 = arith.mulf %404, %492 : vector<1x128xf32>
    %494 = vector.broadcast %490 : f32 to vector<1x128xf32>
    %495 = arith.addf %493, %494 : vector<1x128xf32>
    %cst_54 = arith.constant 0.000000e+00 : f32
    %496 = vector.broadcast %cst_54 : f32 to vector<1x128xf32>
    %497 = arith.maximumf %495, %496 : vector<1x128xf32>
    %498 = vector.broadcast %491 : f32 to vector<1x128xf32>
    %499 = arith.mulf %497, %498 : vector<1x128xf32>
    %500 = arith.addf %488, %499 : vector<1x128xf32>
    %c34 = arith.constant 34 : index
    %501 = memref.load %arg1[%c34] : memref<276xf32, #tpu.memory_space<smem>>
    %c98 = arith.constant 98 : index
    %502 = memref.load %arg1[%c98] : memref<276xf32, #tpu.memory_space<smem>>
    %c162 = arith.constant 162 : index
    %503 = memref.load %arg1[%c162] : memref<276xf32, #tpu.memory_space<smem>>
    %504 = vector.broadcast %501 : f32 to vector<1x128xf32>
    %505 = arith.mulf %404, %504 : vector<1x128xf32>
    %506 = vector.broadcast %502 : f32 to vector<1x128xf32>
    %507 = arith.addf %505, %506 : vector<1x128xf32>
    %cst_55 = arith.constant 0.000000e+00 : f32
    %508 = vector.broadcast %cst_55 : f32 to vector<1x128xf32>
    %509 = arith.maximumf %507, %508 : vector<1x128xf32>
    %510 = vector.broadcast %503 : f32 to vector<1x128xf32>
    %511 = arith.mulf %509, %510 : vector<1x128xf32>
    %512 = arith.addf %500, %511 : vector<1x128xf32>
    %c38 = arith.constant 38 : index
    %513 = memref.load %arg1[%c38] : memref<276xf32, #tpu.memory_space<smem>>
    %c102 = arith.constant 102 : index
    %514 = memref.load %arg1[%c102] : memref<276xf32, #tpu.memory_space<smem>>
    %c166 = arith.constant 166 : index
    %515 = memref.load %arg1[%c166] : memref<276xf32, #tpu.memory_space<smem>>
    %516 = vector.broadcast %513 : f32 to vector<1x128xf32>
    %517 = arith.mulf %404, %516 : vector<1x128xf32>
    %518 = vector.broadcast %514 : f32 to vector<1x128xf32>
    %519 = arith.addf %517, %518 : vector<1x128xf32>
    %cst_56 = arith.constant 0.000000e+00 : f32
    %520 = vector.broadcast %cst_56 : f32 to vector<1x128xf32>
    %521 = arith.maximumf %519, %520 : vector<1x128xf32>
    %522 = vector.broadcast %515 : f32 to vector<1x128xf32>
    %523 = arith.mulf %521, %522 : vector<1x128xf32>
    %524 = arith.addf %512, %523 : vector<1x128xf32>
    %c42 = arith.constant 42 : index
    %525 = memref.load %arg1[%c42] : memref<276xf32, #tpu.memory_space<smem>>
    %c106 = arith.constant 106 : index
    %526 = memref.load %arg1[%c106] : memref<276xf32, #tpu.memory_space<smem>>
    %c170 = arith.constant 170 : index
    %527 = memref.load %arg1[%c170] : memref<276xf32, #tpu.memory_space<smem>>
    %528 = vector.broadcast %525 : f32 to vector<1x128xf32>
    %529 = arith.mulf %404, %528 : vector<1x128xf32>
    %530 = vector.broadcast %526 : f32 to vector<1x128xf32>
    %531 = arith.addf %529, %530 : vector<1x128xf32>
    %cst_57 = arith.constant 0.000000e+00 : f32
    %532 = vector.broadcast %cst_57 : f32 to vector<1x128xf32>
    %533 = arith.maximumf %531, %532 : vector<1x128xf32>
    %534 = vector.broadcast %527 : f32 to vector<1x128xf32>
    %535 = arith.mulf %533, %534 : vector<1x128xf32>
    %536 = arith.addf %524, %535 : vector<1x128xf32>
    %c46 = arith.constant 46 : index
    %537 = memref.load %arg1[%c46] : memref<276xf32, #tpu.memory_space<smem>>
    %c110 = arith.constant 110 : index
    %538 = memref.load %arg1[%c110] : memref<276xf32, #tpu.memory_space<smem>>
    %c174 = arith.constant 174 : index
    %539 = memref.load %arg1[%c174] : memref<276xf32, #tpu.memory_space<smem>>
    %540 = vector.broadcast %537 : f32 to vector<1x128xf32>
    %541 = arith.mulf %404, %540 : vector<1x128xf32>
    %542 = vector.broadcast %538 : f32 to vector<1x128xf32>
    %543 = arith.addf %541, %542 : vector<1x128xf32>
    %cst_58 = arith.constant 0.000000e+00 : f32
    %544 = vector.broadcast %cst_58 : f32 to vector<1x128xf32>
    %545 = arith.maximumf %543, %544 : vector<1x128xf32>
    %546 = vector.broadcast %539 : f32 to vector<1x128xf32>
    %547 = arith.mulf %545, %546 : vector<1x128xf32>
    %548 = arith.addf %536, %547 : vector<1x128xf32>
    %c50 = arith.constant 50 : index
    %549 = memref.load %arg1[%c50] : memref<276xf32, #tpu.memory_space<smem>>
    %c114 = arith.constant 114 : index
    %550 = memref.load %arg1[%c114] : memref<276xf32, #tpu.memory_space<smem>>
    %c178 = arith.constant 178 : index
    %551 = memref.load %arg1[%c178] : memref<276xf32, #tpu.memory_space<smem>>
    %552 = vector.broadcast %549 : f32 to vector<1x128xf32>
    %553 = arith.mulf %404, %552 : vector<1x128xf32>
    %554 = vector.broadcast %550 : f32 to vector<1x128xf32>
    %555 = arith.addf %553, %554 : vector<1x128xf32>
    %cst_59 = arith.constant 0.000000e+00 : f32
    %556 = vector.broadcast %cst_59 : f32 to vector<1x128xf32>
    %557 = arith.maximumf %555, %556 : vector<1x128xf32>
    %558 = vector.broadcast %551 : f32 to vector<1x128xf32>
    %559 = arith.mulf %557, %558 : vector<1x128xf32>
    %560 = arith.addf %548, %559 : vector<1x128xf32>
    %c54 = arith.constant 54 : index
    %561 = memref.load %arg1[%c54] : memref<276xf32, #tpu.memory_space<smem>>
    %c118 = arith.constant 118 : index
    %562 = memref.load %arg1[%c118] : memref<276xf32, #tpu.memory_space<smem>>
    %c182 = arith.constant 182 : index
    %563 = memref.load %arg1[%c182] : memref<276xf32, #tpu.memory_space<smem>>
    %564 = vector.broadcast %561 : f32 to vector<1x128xf32>
    %565 = arith.mulf %404, %564 : vector<1x128xf32>
    %566 = vector.broadcast %562 : f32 to vector<1x128xf32>
    %567 = arith.addf %565, %566 : vector<1x128xf32>
    %cst_60 = arith.constant 0.000000e+00 : f32
    %568 = vector.broadcast %cst_60 : f32 to vector<1x128xf32>
    %569 = arith.maximumf %567, %568 : vector<1x128xf32>
    %570 = vector.broadcast %563 : f32 to vector<1x128xf32>
    %571 = arith.mulf %569, %570 : vector<1x128xf32>
    %572 = arith.addf %560, %571 : vector<1x128xf32>
    %c58 = arith.constant 58 : index
    %573 = memref.load %arg1[%c58] : memref<276xf32, #tpu.memory_space<smem>>
    %c122 = arith.constant 122 : index
    %574 = memref.load %arg1[%c122] : memref<276xf32, #tpu.memory_space<smem>>
    %c186 = arith.constant 186 : index
    %575 = memref.load %arg1[%c186] : memref<276xf32, #tpu.memory_space<smem>>
    %576 = vector.broadcast %573 : f32 to vector<1x128xf32>
    %577 = arith.mulf %404, %576 : vector<1x128xf32>
    %578 = vector.broadcast %574 : f32 to vector<1x128xf32>
    %579 = arith.addf %577, %578 : vector<1x128xf32>
    %cst_61 = arith.constant 0.000000e+00 : f32
    %580 = vector.broadcast %cst_61 : f32 to vector<1x128xf32>
    %581 = arith.maximumf %579, %580 : vector<1x128xf32>
    %582 = vector.broadcast %575 : f32 to vector<1x128xf32>
    %583 = arith.mulf %581, %582 : vector<1x128xf32>
    %584 = arith.addf %572, %583 : vector<1x128xf32>
    %c62 = arith.constant 62 : index
    %585 = memref.load %arg1[%c62] : memref<276xf32, #tpu.memory_space<smem>>
    %c126 = arith.constant 126 : index
    %586 = memref.load %arg1[%c126] : memref<276xf32, #tpu.memory_space<smem>>
    %c190 = arith.constant 190 : index
    %587 = memref.load %arg1[%c190] : memref<276xf32, #tpu.memory_space<smem>>
    %588 = vector.broadcast %585 : f32 to vector<1x128xf32>
    %589 = arith.mulf %404, %588 : vector<1x128xf32>
    %590 = vector.broadcast %586 : f32 to vector<1x128xf32>
    %591 = arith.addf %589, %590 : vector<1x128xf32>
    %cst_62 = arith.constant 0.000000e+00 : f32
    %592 = vector.broadcast %cst_62 : f32 to vector<1x128xf32>
    %593 = arith.maximumf %591, %592 : vector<1x128xf32>
    %594 = vector.broadcast %587 : f32 to vector<1x128xf32>
    %595 = arith.mulf %593, %594 : vector<1x128xf32>
    %596 = arith.addf %584, %595 : vector<1x128xf32>
    %c194 = arith.constant 194 : index
    %597 = memref.load %arg1[%c194] : memref<276xf32, #tpu.memory_space<smem>>
    %598 = vector.broadcast %597 : f32 to vector<1x128xf32>
    %599 = arith.addf %596, %598 : vector<1x128xf32>
    %c2_63 = arith.constant 2 : index
    %c0_64 = arith.constant 0 : index
    %c0_65 = arith.constant 0 : index
    %600 = vector.load %arg5[%c2_63, %c0_64, %c0_65] : memref<4x1x128xf32, #tpu.memory_space<vmem>>, vector<1x1x128xf32>
    %601 = vector.shape_cast %600 : vector<1x1x128xf32> to vector<1x128xf32>
    %602 = vector.shape_cast %599 : vector<1x128xf32> to vector<1x1x128xf32>
    tpu.vector_store %arg5[%c2_63, %c0_64, %c0_65], %602 {strides = array<i32>} : memref<4x1x128xf32, #tpu.memory_space<vmem>>, vector<1x1x128xf32>,
    %603 = arith.addf %402, %599 : vector<1x128xf32>
    %c3 = arith.constant 3 : index
    %c0_66 = arith.constant 0 : index
    %c0_67 = arith.constant 0 : index
    %604 = vector.load %arg2[%c3, %c0_66, %c0_67] : memref<4x1x128xf32, #tpu.memory_space<vmem>>, vector<1x1x128xf32>
    %605 = vector.shape_cast %604 : vector<1x1x128xf32> to vector<1x128xf32>
    %c3_68 = arith.constant 3 : index
    %606 = memref.load %arg1[%c3_68] : memref<276xf32, #tpu.memory_space<smem>>
    %c67 = arith.constant 67 : index
    %607 = memref.load %arg1[%c67] : memref<276xf32, #tpu.memory_space<smem>>
    %c131 = arith.constant 131 : index
    %608 = memref.load %arg1[%c131] : memref<276xf32, #tpu.memory_space<smem>>
    %609 = vector.broadcast %606 : f32 to vector<1x128xf32>
    %610 = arith.mulf %605, %609 : vector<1x128xf32>
    %611 = vector.broadcast %607 : f32 to vector<1x128xf32>
    %612 = arith.addf %610, %611 : vector<1x128xf32>
    %cst_69 = arith.constant 0.000000e+00 : f32
    %613 = vector.broadcast %cst_69 : f32 to vector<1x128xf32>
    %614 = arith.maximumf %612, %613 : vector<1x128xf32>
    %615 = vector.broadcast %608 : f32 to vector<1x128xf32>
    %616 = arith.mulf %614, %615 : vector<1x128xf32>
    %617 = arith.addf %0, %616 : vector<1x128xf32>
    %c7 = arith.constant 7 : index
    %618 = memref.load %arg1[%c7] : memref<276xf32, #tpu.memory_space<smem>>
    %c71 = arith.constant 71 : index
    %619 = memref.load %arg1[%c71] : memref<276xf32, #tpu.memory_space<smem>>
    %c135 = arith.constant 135 : index
    %620 = memref.load %arg1[%c135] : memref<276xf32, #tpu.memory_space<smem>>
    %621 = vector.broadcast %618 : f32 to vector<1x128xf32>
    %622 = arith.mulf %605, %621 : vector<1x128xf32>
    %623 = vector.broadcast %619 : f32 to vector<1x128xf32>
    %624 = arith.addf %622, %623 : vector<1x128xf32>
    %cst_70 = arith.constant 0.000000e+00 : f32
    %625 = vector.broadcast %cst_70 : f32 to vector<1x128xf32>
    %626 = arith.maximumf %624, %625 : vector<1x128xf32>
    %627 = vector.broadcast %620 : f32 to vector<1x128xf32>
    %628 = arith.mulf %626, %627 : vector<1x128xf32>
    %629 = arith.addf %617, %628 : vector<1x128xf32>
    %c11 = arith.constant 11 : index
    %630 = memref.load %arg1[%c11] : memref<276xf32, #tpu.memory_space<smem>>
    %c75 = arith.constant 75 : index
    %631 = memref.load %arg1[%c75] : memref<276xf32, #tpu.memory_space<smem>>
    %c139 = arith.constant 139 : index
    %632 = memref.load %arg1[%c139] : memref<276xf32, #tpu.memory_space<smem>>
    %633 = vector.broadcast %630 : f32 to vector<1x128xf32>
    %634 = arith.mulf %605, %633 : vector<1x128xf32>
    %635 = vector.broadcast %631 : f32 to vector<1x128xf32>
    %636 = arith.addf %634, %635 : vector<1x128xf32>
    %cst_71 = arith.constant 0.000000e+00 : f32
    %637 = vector.broadcast %cst_71 : f32 to vector<1x128xf32>
    %638 = arith.maximumf %636, %637 : vector<1x128xf32>
    %639 = vector.broadcast %632 : f32 to vector<1x128xf32>
    %640 = arith.mulf %638, %639 : vector<1x128xf32>
    %641 = arith.addf %629, %640 : vector<1x128xf32>
    %c15 = arith.constant 15 : index
    %642 = memref.load %arg1[%c15] : memref<276xf32, #tpu.memory_space<smem>>
    %c79 = arith.constant 79 : index
    %643 = memref.load %arg1[%c79] : memref<276xf32, #tpu.memory_space<smem>>
    %c143 = arith.constant 143 : index
    %644 = memref.load %arg1[%c143] : memref<276xf32, #tpu.memory_space<smem>>
    %645 = vector.broadcast %642 : f32 to vector<1x128xf32>
    %646 = arith.mulf %605, %645 : vector<1x128xf32>
    %647 = vector.broadcast %643 : f32 to vector<1x128xf32>
    %648 = arith.addf %646, %647 : vector<1x128xf32>
    %cst_72 = arith.constant 0.000000e+00 : f32
    %649 = vector.broadcast %cst_72 : f32 to vector<1x128xf32>
    %650 = arith.maximumf %648, %649 : vector<1x128xf32>
    %651 = vector.broadcast %644 : f32 to vector<1x128xf32>
    %652 = arith.mulf %650, %651 : vector<1x128xf32>
    %653 = arith.addf %641, %652 : vector<1x128xf32>
    %c19 = arith.constant 19 : index
    %654 = memref.load %arg1[%c19] : memref<276xf32, #tpu.memory_space<smem>>
    %c83 = arith.constant 83 : index
    %655 = memref.load %arg1[%c83] : memref<276xf32, #tpu.memory_space<smem>>
    %c147 = arith.constant 147 : index
    %656 = memref.load %arg1[%c147] : memref<276xf32, #tpu.memory_space<smem>>
    %657 = vector.broadcast %654 : f32 to vector<1x128xf32>
    %658 = arith.mulf %605, %657 : vector<1x128xf32>
    %659 = vector.broadcast %655 : f32 to vector<1x128xf32>
    %660 = arith.addf %658, %659 : vector<1x128xf32>
    %cst_73 = arith.constant 0.000000e+00 : f32
    %661 = vector.broadcast %cst_73 : f32 to vector<1x128xf32>
    %662 = arith.maximumf %660, %661 : vector<1x128xf32>
    %663 = vector.broadcast %656 : f32 to vector<1x128xf32>
    %664 = arith.mulf %662, %663 : vector<1x128xf32>
    %665 = arith.addf %653, %664 : vector<1x128xf32>
    %c23 = arith.constant 23 : index
    %666 = memref.load %arg1[%c23] : memref<276xf32, #tpu.memory_space<smem>>
    %c87 = arith.constant 87 : index
    %667 = memref.load %arg1[%c87] : memref<276xf32, #tpu.memory_space<smem>>
    %c151 = arith.constant 151 : index
    %668 = memref.load %arg1[%c151] : memref<276xf32, #tpu.memory_space<smem>>
    %669 = vector.broadcast %666 : f32 to vector<1x128xf32>
    %670 = arith.mulf %605, %669 : vector<1x128xf32>
    %671 = vector.broadcast %667 : f32 to vector<1x128xf32>
    %672 = arith.addf %670, %671 : vector<1x128xf32>
    %cst_74 = arith.constant 0.000000e+00 : f32
    %673 = vector.broadcast %cst_74 : f32 to vector<1x128xf32>
    %674 = arith.maximumf %672, %673 : vector<1x128xf32>
    %675 = vector.broadcast %668 : f32 to vector<1x128xf32>
    %676 = arith.mulf %674, %675 : vector<1x128xf32>
    %677 = arith.addf %665, %676 : vector<1x128xf32>
    %c27 = arith.constant 27 : index
    %678 = memref.load %arg1[%c27] : memref<276xf32, #tpu.memory_space<smem>>
    %c91 = arith.constant 91 : index
    %679 = memref.load %arg1[%c91] : memref<276xf32, #tpu.memory_space<smem>>
    %c155 = arith.constant 155 : index
    %680 = memref.load %arg1[%c155] : memref<276xf32, #tpu.memory_space<smem>>
    %681 = vector.broadcast %678 : f32 to vector<1x128xf32>
    %682 = arith.mulf %605, %681 : vector<1x128xf32>
    %683 = vector.broadcast %679 : f32 to vector<1x128xf32>
    %684 = arith.addf %682, %683 : vector<1x128xf32>
    %cst_75 = arith.constant 0.000000e+00 : f32
    %685 = vector.broadcast %cst_75 : f32 to vector<1x128xf32>
    %686 = arith.maximumf %684, %685 : vector<1x128xf32>
    %687 = vector.broadcast %680 : f32 to vector<1x128xf32>
    %688 = arith.mulf %686, %687 : vector<1x128xf32>
    %689 = arith.addf %677, %688 : vector<1x128xf32>
    %c31 = arith.constant 31 : index
    %690 = memref.load %arg1[%c31] : memref<276xf32, #tpu.memory_space<smem>>
    %c95 = arith.constant 95 : index
    %691 = memref.load %arg1[%c95] : memref<276xf32, #tpu.memory_space<smem>>
    %c159 = arith.constant 159 : index
    %692 = memref.load %arg1[%c159] : memref<276xf32, #tpu.memory_space<smem>>
    %693 = vector.broadcast %690 : f32 to vector<1x128xf32>
    %694 = arith.mulf %605, %693 : vector<1x128xf32>
    %695 = vector.broadcast %691 : f32 to vector<1x128xf32>
    %696 = arith.addf %694, %695 : vector<1x128xf32>
    %cst_76 = arith.constant 0.000000e+00 : f32
    %697 = vector.broadcast %cst_76 : f32 to vector<1x128xf32>
    %698 = arith.maximumf %696, %697 : vector<1x128xf32>
    %699 = vector.broadcast %692 : f32 to vector<1x128xf32>
    %700 = arith.mulf %698, %699 : vector<1x128xf32>
    %701 = arith.addf %689, %700 : vector<1x128xf32>
    %c35 = arith.constant 35 : index
    %702 = memref.load %arg1[%c35] : memref<276xf32, #tpu.memory_space<smem>>
    %c99 = arith.constant 99 : index
    %703 = memref.load %arg1[%c99] : memref<276xf32, #tpu.memory_space<smem>>
    %c163 = arith.constant 163 : index
    %704 = memref.load %arg1[%c163] : memref<276xf32, #tpu.memory_space<smem>>
    %705 = vector.broadcast %702 : f32 to vector<1x128xf32>
    %706 = arith.mulf %605, %705 : vector<1x128xf32>
    %707 = vector.broadcast %703 : f32 to vector<1x128xf32>
    %708 = arith.addf %706, %707 : vector<1x128xf32>
    %cst_77 = arith.constant 0.000000e+00 : f32
    %709 = vector.broadcast %cst_77 : f32 to vector<1x128xf32>
    %710 = arith.maximumf %708, %709 : vector<1x128xf32>
    %711 = vector.broadcast %704 : f32 to vector<1x128xf32>
    %712 = arith.mulf %710, %711 : vector<1x128xf32>
    %713 = arith.addf %701, %712 : vector<1x128xf32>
    %c39 = arith.constant 39 : index
    %714 = memref.load %arg1[%c39] : memref<276xf32, #tpu.memory_space<smem>>
    %c103 = arith.constant 103 : index
    %715 = memref.load %arg1[%c103] : memref<276xf32, #tpu.memory_space<smem>>
    %c167 = arith.constant 167 : index
    %716 = memref.load %arg1[%c167] : memref<276xf32, #tpu.memory_space<smem>>
    %717 = vector.broadcast %714 : f32 to vector<1x128xf32>
    %718 = arith.mulf %605, %717 : vector<1x128xf32>
    %719 = vector.broadcast %715 : f32 to vector<1x128xf32>
    %720 = arith.addf %718, %719 : vector<1x128xf32>
    %cst_78 = arith.constant 0.000000e+00 : f32
    %721 = vector.broadcast %cst_78 : f32 to vector<1x128xf32>
    %722 = arith.maximumf %720, %721 : vector<1x128xf32>
    %723 = vector.broadcast %716 : f32 to vector<1x128xf32>
    %724 = arith.mulf %722, %723 : vector<1x128xf32>
    %725 = arith.addf %713, %724 : vector<1x128xf32>
    %c43 = arith.constant 43 : index
    %726 = memref.load %arg1[%c43] : memref<276xf32, #tpu.memory_space<smem>>
    %c107 = arith.constant 107 : index
    %727 = memref.load %arg1[%c107] : memref<276xf32, #tpu.memory_space<smem>>
    %c171 = arith.constant 171 : index
    %728 = memref.load %arg1[%c171] : memref<276xf32, #tpu.memory_space<smem>>
    %729 = vector.broadcast %726 : f32 to vector<1x128xf32>
    %730 = arith.mulf %605, %729 : vector<1x128xf32>
    %731 = vector.broadcast %727 : f32 to vector<1x128xf32>
    %732 = arith.addf %730, %731 : vector<1x128xf32>
    %cst_79 = arith.constant 0.000000e+00 : f32
    %733 = vector.broadcast %cst_79 : f32 to vector<1x128xf32>
    %734 = arith.maximumf %732, %733 : vector<1x128xf32>
    %735 = vector.broadcast %728 : f32 to vector<1x128xf32>
    %736 = arith.mulf %734, %735 : vector<1x128xf32>
    %737 = arith.addf %725, %736 : vector<1x128xf32>
    %c47 = arith.constant 47 : index
    %738 = memref.load %arg1[%c47] : memref<276xf32, #tpu.memory_space<smem>>
    %c111 = arith.constant 111 : index
    %739 = memref.load %arg1[%c111] : memref<276xf32, #tpu.memory_space<smem>>
    %c175 = arith.constant 175 : index
    %740 = memref.load %arg1[%c175] : memref<276xf32, #tpu.memory_space<smem>>
    %741 = vector.broadcast %738 : f32 to vector<1x128xf32>
    %742 = arith.mulf %605, %741 : vector<1x128xf32>
    %743 = vector.broadcast %739 : f32 to vector<1x128xf32>
    %744 = arith.addf %742, %743 : vector<1x128xf32>
    %cst_80 = arith.constant 0.000000e+00 : f32
    %745 = vector.broadcast %cst_80 : f32 to vector<1x128xf32>
    %746 = arith.maximumf %744, %745 : vector<1x128xf32>
    %747 = vector.broadcast %740 : f32 to vector<1x128xf32>
    %748 = arith.mulf %746, %747 : vector<1x128xf32>
    %749 = arith.addf %737, %748 : vector<1x128xf32>
    %c51 = arith.constant 51 : index
    %750 = memref.load %arg1[%c51] : memref<276xf32, #tpu.memory_space<smem>>
    %c115 = arith.constant 115 : index
    %751 = memref.load %arg1[%c115] : memref<276xf32, #tpu.memory_space<smem>>
    %c179 = arith.constant 179 : index
    %752 = memref.load %arg1[%c179] : memref<276xf32, #tpu.memory_space<smem>>
    %753 = vector.broadcast %750 : f32 to vector<1x128xf32>
    %754 = arith.mulf %605, %753 : vector<1x128xf32>
    %755 = vector.broadcast %751 : f32 to vector<1x128xf32>
    %756 = arith.addf %754, %755 : vector<1x128xf32>
    %cst_81 = arith.constant 0.000000e+00 : f32
    %757 = vector.broadcast %cst_81 : f32 to vector<1x128xf32>
    %758 = arith.maximumf %756, %757 : vector<1x128xf32>
    %759 = vector.broadcast %752 : f32 to vector<1x128xf32>
    %760 = arith.mulf %758, %759 : vector<1x128xf32>
    %761 = arith.addf %749, %760 : vector<1x128xf32>
    %c55 = arith.constant 55 : index
    %762 = memref.load %arg1[%c55] : memref<276xf32, #tpu.memory_space<smem>>
    %c119 = arith.constant 119 : index
    %763 = memref.load %arg1[%c119] : memref<276xf32, #tpu.memory_space<smem>>
    %c183 = arith.constant 183 : index
    %764 = memref.load %arg1[%c183] : memref<276xf32, #tpu.memory_space<smem>>
    %765 = vector.broadcast %762 : f32 to vector<1x128xf32>
    %766 = arith.mulf %605, %765 : vector<1x128xf32>
    %767 = vector.broadcast %763 : f32 to vector<1x128xf32>
    %768 = arith.addf %766, %767 : vector<1x128xf32>
    %cst_82 = arith.constant 0.000000e+00 : f32
    %769 = vector.broadcast %cst_82 : f32 to vector<1x128xf32>
    %770 = arith.maximumf %768, %769 : vector<1x128xf32>
    %771 = vector.broadcast %764 : f32 to vector<1x128xf32>
    %772 = arith.mulf %770, %771 : vector<1x128xf32>
    %773 = arith.addf %761, %772 : vector<1x128xf32>
    %c59 = arith.constant 59 : index
    %774 = memref.load %arg1[%c59] : memref<276xf32, #tpu.memory_space<smem>>
    %c123 = arith.constant 123 : index
    %775 = memref.load %arg1[%c123] : memref<276xf32, #tpu.memory_space<smem>>
    %c187 = arith.constant 187 : index
    %776 = memref.load %arg1[%c187] : memref<276xf32, #tpu.memory_space<smem>>
    %777 = vector.broadcast %774 : f32 to vector<1x128xf32>
    %778 = arith.mulf %605, %777 : vector<1x128xf32>
    %779 = vector.broadcast %775 : f32 to vector<1x128xf32>
    %780 = arith.addf %778, %779 : vector<1x128xf32>
    %cst_83 = arith.constant 0.000000e+00 : f32
    %781 = vector.broadcast %cst_83 : f32 to vector<1x128xf32>
    %782 = arith.maximumf %780, %781 : vector<1x128xf32>
    %783 = vector.broadcast %776 : f32 to vector<1x128xf32>
    %784 = arith.mulf %782, %783 : vector<1x128xf32>
    %785 = arith.addf %773, %784 : vector<1x128xf32>
    %c63 = arith.constant 63 : index
    %786 = memref.load %arg1[%c63] : memref<276xf32, #tpu.memory_space<smem>>
    %c127 = arith.constant 127 : index
    %787 = memref.load %arg1[%c127] : memref<276xf32, #tpu.memory_space<smem>>
    %c191 = arith.constant 191 : index
    %788 = memref.load %arg1[%c191] : memref<276xf32, #tpu.memory_space<smem>>
    %789 = vector.broadcast %786 : f32 to vector<1x128xf32>
    %790 = arith.mulf %605, %789 : vector<1x128xf32>
    %791 = vector.broadcast %787 : f32 to vector<1x128xf32>
    %792 = arith.addf %790, %791 : vector<1x128xf32>
    %cst_84 = arith.constant 0.000000e+00 : f32
    %793 = vector.broadcast %cst_84 : f32 to vector<1x128xf32>
    %794 = arith.maximumf %792, %793 : vector<1x128xf32>
    %795 = vector.broadcast %788 : f32 to vector<1x128xf32>
    %796 = arith.mulf %794, %795 : vector<1x128xf32>
    %797 = arith.addf %785, %796 : vector<1x128xf32>
    %c195 = arith.constant 195 : index
    %798 = memref.load %arg1[%c195] : memref<276xf32, #tpu.memory_space<smem>>
    %799 = vector.broadcast %798 : f32 to vector<1x128xf32>
    %800 = arith.addf %797, %799 : vector<1x128xf32>
    %c3_85 = arith.constant 3 : index
    %c0_86 = arith.constant 0 : index
    %c0_87 = arith.constant 0 : index
    %801 = vector.load %arg5[%c3_85, %c0_86, %c0_87] : memref<4x1x128xf32, #tpu.memory_space<vmem>>, vector<1x1x128xf32>
    %802 = vector.shape_cast %801 : vector<1x1x128xf32> to vector<1x128xf32>
    %803 = vector.shape_cast %800 : vector<1x128xf32> to vector<1x1x128xf32>
    tpu.vector_store %arg5[%c3_85, %c0_86, %c0_87], %803 {strides = array<i32>} : memref<4x1x128xf32, #tpu.memory_space<vmem>>, vector<1x1x128xf32>,
    %804 = arith.addf %603, %800 : vector<1x128xf32>
    %c0_88 = arith.constant 0 : index
    %c0_89 = arith.constant 0 : index
    %c0_90 = arith.constant 0 : index
    %805 = vector.load %arg3[%c0_88, %c0_89, %c0_90] : memref<32x1x128xf32, #tpu.memory_space<vmem>>, vector<1x1x128xf32>
    %806 = vector.shape_cast %805 : vector<1x1x128xf32> to vector<1x128xf32>
    %c196 = arith.constant 196 : index
    %807 = memref.load %arg1[%c196] : memref<276xf32, #tpu.memory_space<smem>>
    %808 = vector.broadcast %807 : f32 to vector<1x128xf32>
    %809 = arith.mulf %806, %808 : vector<1x128xf32>
    %810 = arith.addf %0, %809 : vector<1x128xf32>
    %c1_91 = arith.constant 1 : index
    %c0_92 = arith.constant 0 : index
    %c0_93 = arith.constant 0 : index
    %811 = vector.load %arg3[%c1_91, %c0_92, %c0_93] : memref<32x1x128xf32, #tpu.memory_space<vmem>>, vector<1x1x128xf32>
    %812 = vector.shape_cast %811 : vector<1x1x128xf32> to vector<1x128xf32>
    %c197 = arith.constant 197 : index
    %813 = memref.load %arg1[%c197] : memref<276xf32, #tpu.memory_space<smem>>
    %814 = vector.broadcast %813 : f32 to vector<1x128xf32>
    %815 = arith.mulf %812, %814 : vector<1x128xf32>
    %816 = arith.addf %810, %815 : vector<1x128xf32>
    %c2_94 = arith.constant 2 : index
    %c0_95 = arith.constant 0 : index
    %c0_96 = arith.constant 0 : index
    %817 = vector.load %arg3[%c2_94, %c0_95, %c0_96] : memref<32x1x128xf32, #tpu.memory_space<vmem>>, vector<1x1x128xf32>
    %818 = vector.shape_cast %817 : vector<1x1x128xf32> to vector<1x128xf32>
    %c198 = arith.constant 198 : index
    %819 = memref.load %arg1[%c198] : memref<276xf32, #tpu.memory_space<smem>>
    %820 = vector.broadcast %819 : f32 to vector<1x128xf32>
    %821 = arith.mulf %818, %820 : vector<1x128xf32>
    %822 = arith.addf %816, %821 : vector<1x128xf32>
    %c3_97 = arith.constant 3 : index
    %c0_98 = arith.constant 0 : index
    %c0_99 = arith.constant 0 : index
    %823 = vector.load %arg3[%c3_97, %c0_98, %c0_99] : memref<32x1x128xf32, #tpu.memory_space<vmem>>, vector<1x1x128xf32>
    %824 = vector.shape_cast %823 : vector<1x1x128xf32> to vector<1x128xf32>
    %c199 = arith.constant 199 : index
    %825 = memref.load %arg1[%c199] : memref<276xf32, #tpu.memory_space<smem>>
    %826 = vector.broadcast %825 : f32 to vector<1x128xf32>
    %827 = arith.mulf %824, %826 : vector<1x128xf32>
    %828 = arith.addf %822, %827 : vector<1x128xf32>
    %c4_100 = arith.constant 4 : index
    %c0_101 = arith.constant 0 : index
    %c0_102 = arith.constant 0 : index
    %829 = vector.load %arg3[%c4_100, %c0_101, %c0_102] : memref<32x1x128xf32, #tpu.memory_space<vmem>>, vector<1x1x128xf32>
    %830 = vector.shape_cast %829 : vector<1x1x128xf32> to vector<1x128xf32>
    %c200 = arith.constant 200 : index
    %831 = memref.load %arg1[%c200] : memref<276xf32, #tpu.memory_space<smem>>
    %832 = vector.broadcast %831 : f32 to vector<1x128xf32>
    %833 = arith.mulf %830, %832 : vector<1x128xf32>
    %834 = arith.addf %828, %833 : vector<1x128xf32>
    %c5_103 = arith.constant 5 : index
    %c0_104 = arith.constant 0 : index
    %c0_105 = arith.constant 0 : index
    %835 = vector.load %arg3[%c5_103, %c0_104, %c0_105] : memref<32x1x128xf32, #tpu.memory_space<vmem>>, vector<1x1x128xf32>
    %836 = vector.shape_cast %835 : vector<1x1x128xf32> to vector<1x128xf32>
    %c201 = arith.constant 201 : index
    %837 = memref.load %arg1[%c201] : memref<276xf32, #tpu.memory_space<smem>>
    %838 = vector.broadcast %837 : f32 to vector<1x128xf32>
    %839 = arith.mulf %836, %838 : vector<1x128xf32>
    %840 = arith.addf %834, %839 : vector<1x128xf32>
    %c6_106 = arith.constant 6 : index
    %c0_107 = arith.constant 0 : index
    %c0_108 = arith.constant 0 : index
    %841 = vector.load %arg3[%c6_106, %c0_107, %c0_108] : memref<32x1x128xf32, #tpu.memory_space<vmem>>, vector<1x1x128xf32>
    %842 = vector.shape_cast %841 : vector<1x1x128xf32> to vector<1x128xf32>
    %c202 = arith.constant 202 : index
    %843 = memref.load %arg1[%c202] : memref<276xf32, #tpu.memory_space<smem>>
    %844 = vector.broadcast %843 : f32 to vector<1x128xf32>
    %845 = arith.mulf %842, %844 : vector<1x128xf32>
    %846 = arith.addf %840, %845 : vector<1x128xf32>
    %c7_109 = arith.constant 7 : index
    %c0_110 = arith.constant 0 : index
    %c0_111 = arith.constant 0 : index
    %847 = vector.load %arg3[%c7_109, %c0_110, %c0_111] : memref<32x1x128xf32, #tpu.memory_space<vmem>>, vector<1x1x128xf32>
    %848 = vector.shape_cast %847 : vector<1x1x128xf32> to vector<1x128xf32>
    %c203 = arith.constant 203 : index
    %849 = memref.load %arg1[%c203] : memref<276xf32, #tpu.memory_space<smem>>
    %850 = vector.broadcast %849 : f32 to vector<1x128xf32>
    %851 = arith.mulf %848, %850 : vector<1x128xf32>
    %852 = arith.addf %846, %851 : vector<1x128xf32>
    %c8_112 = arith.constant 8 : index
    %c0_113 = arith.constant 0 : index
    %c0_114 = arith.constant 0 : index
    %853 = vector.load %arg3[%c8_112, %c0_113, %c0_114] : memref<32x1x128xf32, #tpu.memory_space<vmem>>, vector<1x1x128xf32>
    %854 = vector.shape_cast %853 : vector<1x1x128xf32> to vector<1x128xf32>
    %c204 = arith.constant 204 : index
    %855 = memref.load %arg1[%c204] : memref<276xf32, #tpu.memory_space<smem>>
    %856 = vector.broadcast %855 : f32 to vector<1x128xf32>
    %857 = arith.mulf %854, %856 : vector<1x128xf32>
    %858 = arith.addf %852, %857 : vector<1x128xf32>
    %c9_115 = arith.constant 9 : index
    %c0_116 = arith.constant 0 : index
    %c0_117 = arith.constant 0 : index
    %859 = vector.load %arg3[%c9_115, %c0_116, %c0_117] : memref<32x1x128xf32, #tpu.memory_space<vmem>>, vector<1x1x128xf32>
    %860 = vector.shape_cast %859 : vector<1x1x128xf32> to vector<1x128xf32>
    %c205 = arith.constant 205 : index
    %861 = memref.load %arg1[%c205] : memref<276xf32, #tpu.memory_space<smem>>
    %862 = vector.broadcast %861 : f32 to vector<1x128xf32>
    %863 = arith.mulf %860, %862 : vector<1x128xf32>
    %864 = arith.addf %858, %863 : vector<1x128xf32>
    %c10_118 = arith.constant 10 : index
    %c0_119 = arith.constant 0 : index
    %c0_120 = arith.constant 0 : index
    %865 = vector.load %arg3[%c10_118, %c0_119, %c0_120] : memref<32x1x128xf32, #tpu.memory_space<vmem>>, vector<1x1x128xf32>
    %866 = vector.shape_cast %865 : vector<1x1x128xf32> to vector<1x128xf32>
    %c206 = arith.constant 206 : index
    %867 = memref.load %arg1[%c206] : memref<276xf32, #tpu.memory_space<smem>>
    %868 = vector.broadcast %867 : f32 to vector<1x128xf32>
    %869 = arith.mulf %866, %868 : vector<1x128xf32>
    %870 = arith.addf %864, %869 : vector<1x128xf32>
    %c11_121 = arith.constant 11 : index
    %c0_122 = arith.constant 0 : index
    %c0_123 = arith.constant 0 : index
    %871 = vector.load %arg3[%c11_121, %c0_122, %c0_123] : memref<32x1x128xf32, #tpu.memory_space<vmem>>, vector<1x1x128xf32>
    %872 = vector.shape_cast %871 : vector<1x1x128xf32> to vector<1x128xf32>
    %c207 = arith.constant 207 : index
    %873 = memref.load %arg1[%c207] : memref<276xf32, #tpu.memory_space<smem>>
    %874 = vector.broadcast %873 : f32 to vector<1x128xf32>
    %875 = arith.mulf %872, %874 : vector<1x128xf32>
    %876 = arith.addf %870, %875 : vector<1x128xf32>
    %c12_124 = arith.constant 12 : index
    %c0_125 = arith.constant 0 : index
    %c0_126 = arith.constant 0 : index
    %877 = vector.load %arg3[%c12_124, %c0_125, %c0_126] : memref<32x1x128xf32, #tpu.memory_space<vmem>>, vector<1x1x128xf32>
    %878 = vector.shape_cast %877 : vector<1x1x128xf32> to vector<1x128xf32>
    %c208 = arith.constant 208 : index
    %879 = memref.load %arg1[%c208] : memref<276xf32, #tpu.memory_space<smem>>
    %880 = vector.broadcast %879 : f32 to vector<1x128xf32>
    %881 = arith.mulf %878, %880 : vector<1x128xf32>
    %882 = arith.addf %876, %881 : vector<1x128xf32>
    %c13_127 = arith.constant 13 : index
    %c0_128 = arith.constant 0 : index
    %c0_129 = arith.constant 0 : index
    %883 = vector.load %arg3[%c13_127, %c0_128, %c0_129] : memref<32x1x128xf32, #tpu.memory_space<vmem>>, vector<1x1x128xf32>
    %884 = vector.shape_cast %883 : vector<1x1x128xf32> to vector<1x128xf32>
    %c209 = arith.constant 209 : index
    %885 = memref.load %arg1[%c209] : memref<276xf32, #tpu.memory_space<smem>>
    %886 = vector.broadcast %885 : f32 to vector<1x128xf32>
    %887 = arith.mulf %884, %886 : vector<1x128xf32>
    %888 = arith.addf %882, %887 : vector<1x128xf32>
    %c14_130 = arith.constant 14 : index
    %c0_131 = arith.constant 0 : index
    %c0_132 = arith.constant 0 : index
    %889 = vector.load %arg3[%c14_130, %c0_131, %c0_132] : memref<32x1x128xf32, #tpu.memory_space<vmem>>, vector<1x1x128xf32>
    %890 = vector.shape_cast %889 : vector<1x1x128xf32> to vector<1x128xf32>
    %c210 = arith.constant 210 : index
    %891 = memref.load %arg1[%c210] : memref<276xf32, #tpu.memory_space<smem>>
    %892 = vector.broadcast %891 : f32 to vector<1x128xf32>
    %893 = arith.mulf %890, %892 : vector<1x128xf32>
    %894 = arith.addf %888, %893 : vector<1x128xf32>
    %c15_133 = arith.constant 15 : index
    %c0_134 = arith.constant 0 : index
    %c0_135 = arith.constant 0 : index
    %895 = vector.load %arg3[%c15_133, %c0_134, %c0_135] : memref<32x1x128xf32, #tpu.memory_space<vmem>>, vector<1x1x128xf32>
    %896 = vector.shape_cast %895 : vector<1x1x128xf32> to vector<1x128xf32>
    %c211 = arith.constant 211 : index
    %897 = memref.load %arg1[%c211] : memref<276xf32, #tpu.memory_space<smem>>
    %898 = vector.broadcast %897 : f32 to vector<1x128xf32>
    %899 = arith.mulf %896, %898 : vector<1x128xf32>
    %900 = arith.addf %894, %899 : vector<1x128xf32>
    %c16_136 = arith.constant 16 : index
    %c0_137 = arith.constant 0 : index
    %c0_138 = arith.constant 0 : index
    %901 = vector.load %arg3[%c16_136, %c0_137, %c0_138] : memref<32x1x128xf32, #tpu.memory_space<vmem>>, vector<1x1x128xf32>
    %902 = vector.shape_cast %901 : vector<1x1x128xf32> to vector<1x128xf32>
    %c212 = arith.constant 212 : index
    %903 = memref.load %arg1[%c212] : memref<276xf32, #tpu.memory_space<smem>>
    %904 = vector.broadcast %903 : f32 to vector<1x128xf32>
    %905 = arith.mulf %902, %904 : vector<1x128xf32>
    %906 = arith.addf %900, %905 : vector<1x128xf32>
    %c17_139 = arith.constant 17 : index
    %c0_140 = arith.constant 0 : index
    %c0_141 = arith.constant 0 : index
    %907 = vector.load %arg3[%c17_139, %c0_140, %c0_141] : memref<32x1x128xf32, #tpu.memory_space<vmem>>, vector<1x1x128xf32>
    %908 = vector.shape_cast %907 : vector<1x1x128xf32> to vector<1x128xf32>
    %c213 = arith.constant 213 : index
    %909 = memref.load %arg1[%c213] : memref<276xf32, #tpu.memory_space<smem>>
    %910 = vector.broadcast %909 : f32 to vector<1x128xf32>
    %911 = arith.mulf %908, %910 : vector<1x128xf32>
    %912 = arith.addf %906, %911 : vector<1x128xf32>
    %c18_142 = arith.constant 18 : index
    %c0_143 = arith.constant 0 : index
    %c0_144 = arith.constant 0 : index
    %913 = vector.load %arg3[%c18_142, %c0_143, %c0_144] : memref<32x1x128xf32, #tpu.memory_space<vmem>>, vector<1x1x128xf32>
    %914 = vector.shape_cast %913 : vector<1x1x128xf32> to vector<1x128xf32>
    %c214 = arith.constant 214 : index
    %915 = memref.load %arg1[%c214] : memref<276xf32, #tpu.memory_space<smem>>
    %916 = vector.broadcast %915 : f32 to vector<1x128xf32>
    %917 = arith.mulf %914, %916 : vector<1x128xf32>
    %918 = arith.addf %912, %917 : vector<1x128xf32>
    %c19_145 = arith.constant 19 : index
    %c0_146 = arith.constant 0 : index
    %c0_147 = arith.constant 0 : index
    %919 = vector.load %arg3[%c19_145, %c0_146, %c0_147] : memref<32x1x128xf32, #tpu.memory_space<vmem>>, vector<1x1x128xf32>
    %920 = vector.shape_cast %919 : vector<1x1x128xf32> to vector<1x128xf32>
    %c215 = arith.constant 215 : index
    %921 = memref.load %arg1[%c215] : memref<276xf32, #tpu.memory_space<smem>>
    %922 = vector.broadcast %921 : f32 to vector<1x128xf32>
    %923 = arith.mulf %920, %922 : vector<1x128xf32>
    %924 = arith.addf %918, %923 : vector<1x128xf32>
    %c20_148 = arith.constant 20 : index
    %c0_149 = arith.constant 0 : index
    %c0_150 = arith.constant 0 : index
    %925 = vector.load %arg3[%c20_148, %c0_149, %c0_150] : memref<32x1x128xf32, #tpu.memory_space<vmem>>, vector<1x1x128xf32>
    %926 = vector.shape_cast %925 : vector<1x1x128xf32> to vector<1x128xf32>
    %c216 = arith.constant 216 : index
    %927 = memref.load %arg1[%c216] : memref<276xf32, #tpu.memory_space<smem>>
    %928 = vector.broadcast %927 : f32 to vector<1x128xf32>
    %929 = arith.mulf %926, %928 : vector<1x128xf32>
    %930 = arith.addf %924, %929 : vector<1x128xf32>
    %c21_151 = arith.constant 21 : index
    %c0_152 = arith.constant 0 : index
    %c0_153 = arith.constant 0 : index
    %931 = vector.load %arg3[%c21_151, %c0_152, %c0_153] : memref<32x1x128xf32, #tpu.memory_space<vmem>>, vector<1x1x128xf32>
    %932 = vector.shape_cast %931 : vector<1x1x128xf32> to vector<1x128xf32>
    %c217 = arith.constant 217 : index
    %933 = memref.load %arg1[%c217] : memref<276xf32, #tpu.memory_space<smem>>
    %934 = vector.broadcast %933 : f32 to vector<1x128xf32>
    %935 = arith.mulf %932, %934 : vector<1x128xf32>
    %936 = arith.addf %930, %935 : vector<1x128xf32>
    %c22_154 = arith.constant 22 : index
    %c0_155 = arith.constant 0 : index
    %c0_156 = arith.constant 0 : index
    %937 = vector.load %arg3[%c22_154, %c0_155, %c0_156] : memref<32x1x128xf32, #tpu.memory_space<vmem>>, vector<1x1x128xf32>
    %938 = vector.shape_cast %937 : vector<1x1x128xf32> to vector<1x128xf32>
    %c218 = arith.constant 218 : index
    %939 = memref.load %arg1[%c218] : memref<276xf32, #tpu.memory_space<smem>>
    %940 = vector.broadcast %939 : f32 to vector<1x128xf32>
    %941 = arith.mulf %938, %940 : vector<1x128xf32>
    %942 = arith.addf %936, %941 : vector<1x128xf32>
    %c23_157 = arith.constant 23 : index
    %c0_158 = arith.constant 0 : index
    %c0_159 = arith.constant 0 : index
    %943 = vector.load %arg3[%c23_157, %c0_158, %c0_159] : memref<32x1x128xf32, #tpu.memory_space<vmem>>, vector<1x1x128xf32>
    %944 = vector.shape_cast %943 : vector<1x1x128xf32> to vector<1x128xf32>
    %c219 = arith.constant 219 : index
    %945 = memref.load %arg1[%c219] : memref<276xf32, #tpu.memory_space<smem>>
    %946 = vector.broadcast %945 : f32 to vector<1x128xf32>
    %947 = arith.mulf %944, %946 : vector<1x128xf32>
    %948 = arith.addf %942, %947 : vector<1x128xf32>
    %c24_160 = arith.constant 24 : index
    %c0_161 = arith.constant 0 : index
    %c0_162 = arith.constant 0 : index
    %949 = vector.load %arg3[%c24_160, %c0_161, %c0_162] : memref<32x1x128xf32, #tpu.memory_space<vmem>>, vector<1x1x128xf32>
    %950 = vector.shape_cast %949 : vector<1x1x128xf32> to vector<1x128xf32>
    %c220 = arith.constant 220 : index
    %951 = memref.load %arg1[%c220] : memref<276xf32, #tpu.memory_space<smem>>
    %952 = vector.broadcast %951 : f32 to vector<1x128xf32>
    %953 = arith.mulf %950, %952 : vector<1x128xf32>
    %954 = arith.addf %948, %953 : vector<1x128xf32>
    %c25_163 = arith.constant 25 : index
    %c0_164 = arith.constant 0 : index
    %c0_165 = arith.constant 0 : index
    %955 = vector.load %arg3[%c25_163, %c0_164, %c0_165] : memref<32x1x128xf32, #tpu.memory_space<vmem>>, vector<1x1x128xf32>
    %956 = vector.shape_cast %955 : vector<1x1x128xf32> to vector<1x128xf32>
    %c221 = arith.constant 221 : index
    %957 = memref.load %arg1[%c221] : memref<276xf32, #tpu.memory_space<smem>>
    %958 = vector.broadcast %957 : f32 to vector<1x128xf32>
    %959 = arith.mulf %956, %958 : vector<1x128xf32>
    %960 = arith.addf %954, %959 : vector<1x128xf32>
    %c26_166 = arith.constant 26 : index
    %c0_167 = arith.constant 0 : index
    %c0_168 = arith.constant 0 : index
    %961 = vector.load %arg3[%c26_166, %c0_167, %c0_168] : memref<32x1x128xf32, #tpu.memory_space<vmem>>, vector<1x1x128xf32>
    %962 = vector.shape_cast %961 : vector<1x1x128xf32> to vector<1x128xf32>
    %c222 = arith.constant 222 : index
    %963 = memref.load %arg1[%c222] : memref<276xf32, #tpu.memory_space<smem>>
    %964 = vector.broadcast %963 : f32 to vector<1x128xf32>
    %965 = arith.mulf %962, %964 : vector<1x128xf32>
    %966 = arith.addf %960, %965 : vector<1x128xf32>
    %c27_169 = arith.constant 27 : index
    %c0_170 = arith.constant 0 : index
    %c0_171 = arith.constant 0 : index
    %967 = vector.load %arg3[%c27_169, %c0_170, %c0_171] : memref<32x1x128xf32, #tpu.memory_space<vmem>>, vector<1x1x128xf32>
    %968 = vector.shape_cast %967 : vector<1x1x128xf32> to vector<1x128xf32>
    %c223 = arith.constant 223 : index
    %969 = memref.load %arg1[%c223] : memref<276xf32, #tpu.memory_space<smem>>
    %970 = vector.broadcast %969 : f32 to vector<1x128xf32>
    %971 = arith.mulf %968, %970 : vector<1x128xf32>
    %972 = arith.addf %966, %971 : vector<1x128xf32>
    %c28_172 = arith.constant 28 : index
    %c0_173 = arith.constant 0 : index
    %c0_174 = arith.constant 0 : index
    %973 = vector.load %arg3[%c28_172, %c0_173, %c0_174] : memref<32x1x128xf32, #tpu.memory_space<vmem>>, vector<1x1x128xf32>
    %974 = vector.shape_cast %973 : vector<1x1x128xf32> to vector<1x128xf32>
    %c224 = arith.constant 224 : index
    %975 = memref.load %arg1[%c224] : memref<276xf32, #tpu.memory_space<smem>>
    %976 = vector.broadcast %975 : f32 to vector<1x128xf32>
    %977 = arith.mulf %974, %976 : vector<1x128xf32>
    %978 = arith.addf %972, %977 : vector<1x128xf32>
    %c29_175 = arith.constant 29 : index
    %c0_176 = arith.constant 0 : index
    %c0_177 = arith.constant 0 : index
    %979 = vector.load %arg3[%c29_175, %c0_176, %c0_177] : memref<32x1x128xf32, #tpu.memory_space<vmem>>, vector<1x1x128xf32>
    %980 = vector.shape_cast %979 : vector<1x1x128xf32> to vector<1x128xf32>
    %c225 = arith.constant 225 : index
    %981 = memref.load %arg1[%c225] : memref<276xf32, #tpu.memory_space<smem>>
    %982 = vector.broadcast %981 : f32 to vector<1x128xf32>
    %983 = arith.mulf %980, %982 : vector<1x128xf32>
    %984 = arith.addf %978, %983 : vector<1x128xf32>
    %c30_178 = arith.constant 30 : index
    %c0_179 = arith.constant 0 : index
    %c0_180 = arith.constant 0 : index
    %985 = vector.load %arg3[%c30_178, %c0_179, %c0_180] : memref<32x1x128xf32, #tpu.memory_space<vmem>>, vector<1x1x128xf32>
    %986 = vector.shape_cast %985 : vector<1x1x128xf32> to vector<1x128xf32>
    %c226 = arith.constant 226 : index
    %987 = memref.load %arg1[%c226] : memref<276xf32, #tpu.memory_space<smem>>
    %988 = vector.broadcast %987 : f32 to vector<1x128xf32>
    %989 = arith.mulf %986, %988 : vector<1x128xf32>
    %990 = arith.addf %984, %989 : vector<1x128xf32>
    %c31_181 = arith.constant 31 : index
    %c0_182 = arith.constant 0 : index
    %c0_183 = arith.constant 0 : index
    %991 = vector.load %arg3[%c31_181, %c0_182, %c0_183] : memref<32x1x128xf32, #tpu.memory_space<vmem>>, vector<1x1x128xf32>
    %992 = vector.shape_cast %991 : vector<1x1x128xf32> to vector<1x128xf32>
    %c227 = arith.constant 227 : index
    %993 = memref.load %arg1[%c227] : memref<276xf32, #tpu.memory_space<smem>>
    %994 = vector.broadcast %993 : f32 to vector<1x128xf32>
    %995 = arith.mulf %992, %994 : vector<1x128xf32>
    %996 = arith.addf %990, %995 : vector<1x128xf32>
    %c228 = arith.constant 228 : index
    %997 = memref.load %arg1[%c228] : memref<276xf32, #tpu.memory_space<smem>>
    %998 = vector.broadcast %997 : f32 to vector<1x128xf32>
    %999 = arith.addf %996, %998 : vector<1x128xf32>
    %c0_184 = arith.constant 0 : index
    %c0_185 = arith.constant 0 : index
    %c0_186 = arith.constant 0 : index
    %1000 = vector.load %arg4[%c0_184, %c0_185, %c0_186] : memref<32x1x128xf32, #tpu.memory_space<vmem>>, vector<1x1x128xf32>
    %1001 = vector.shape_cast %1000 : vector<1x1x128xf32> to vector<1x128xf32>
    %c229 = arith.constant 229 : index
    %1002 = memref.load %arg1[%c229] : memref<276xf32, #tpu.memory_space<smem>>
    %1003 = vector.broadcast %1002 : f32 to vector<1x128xf32>
    %1004 = arith.mulf %1001, %1003 : vector<1x128xf32>
    %1005 = arith.addf %0, %1004 : vector<1x128xf32>
    %c1_187 = arith.constant 1 : index
    %c0_188 = arith.constant 0 : index
    %c0_189 = arith.constant 0 : index
    %1006 = vector.load %arg4[%c1_187, %c0_188, %c0_189] : memref<32x1x128xf32, #tpu.memory_space<vmem>>, vector<1x1x128xf32>
    %1007 = vector.shape_cast %1006 : vector<1x1x128xf32> to vector<1x128xf32>
    %c230 = arith.constant 230 : index
    %1008 = memref.load %arg1[%c230] : memref<276xf32, #tpu.memory_space<smem>>
    %1009 = vector.broadcast %1008 : f32 to vector<1x128xf32>
    %1010 = arith.mulf %1007, %1009 : vector<1x128xf32>
    %1011 = arith.addf %1005, %1010 : vector<1x128xf32>
    %c2_190 = arith.constant 2 : index
    %c0_191 = arith.constant 0 : index
    %c0_192 = arith.constant 0 : index
    %1012 = vector.load %arg4[%c2_190, %c0_191, %c0_192] : memref<32x1x128xf32, #tpu.memory_space<vmem>>, vector<1x1x128xf32>
    %1013 = vector.shape_cast %1012 : vector<1x1x128xf32> to vector<1x128xf32>
    %c231 = arith.constant 231 : index
    %1014 = memref.load %arg1[%c231] : memref<276xf32, #tpu.memory_space<smem>>
    %1015 = vector.broadcast %1014 : f32 to vector<1x128xf32>
    %1016 = arith.mulf %1013, %1015 : vector<1x128xf32>
    %1017 = arith.addf %1011, %1016 : vector<1x128xf32>
    %c3_193 = arith.constant 3 : index
    %c0_194 = arith.constant 0 : index
    %c0_195 = arith.constant 0 : index
    %1018 = vector.load %arg4[%c3_193, %c0_194, %c0_195] : memref<32x1x128xf32, #tpu.memory_space<vmem>>, vector<1x1x128xf32>
    %1019 = vector.shape_cast %1018 : vector<1x1x128xf32> to vector<1x128xf32>
    %c232 = arith.constant 232 : index
    %1020 = memref.load %arg1[%c232] : memref<276xf32, #tpu.memory_space<smem>>
    %1021 = vector.broadcast %1020 : f32 to vector<1x128xf32>
    %1022 = arith.mulf %1019, %1021 : vector<1x128xf32>
    %1023 = arith.addf %1017, %1022 : vector<1x128xf32>
    %c4_196 = arith.constant 4 : index
    %c0_197 = arith.constant 0 : index
    %c0_198 = arith.constant 0 : index
    %1024 = vector.load %arg4[%c4_196, %c0_197, %c0_198] : memref<32x1x128xf32, #tpu.memory_space<vmem>>, vector<1x1x128xf32>
    %1025 = vector.shape_cast %1024 : vector<1x1x128xf32> to vector<1x128xf32>
    %c233 = arith.constant 233 : index
    %1026 = memref.load %arg1[%c233] : memref<276xf32, #tpu.memory_space<smem>>
    %1027 = vector.broadcast %1026 : f32 to vector<1x128xf32>
    %1028 = arith.mulf %1025, %1027 : vector<1x128xf32>
    %1029 = arith.addf %1023, %1028 : vector<1x128xf32>
    %c5_199 = arith.constant 5 : index
    %c0_200 = arith.constant 0 : index
    %c0_201 = arith.constant 0 : index
    %1030 = vector.load %arg4[%c5_199, %c0_200, %c0_201] : memref<32x1x128xf32, #tpu.memory_space<vmem>>, vector<1x1x128xf32>
    %1031 = vector.shape_cast %1030 : vector<1x1x128xf32> to vector<1x128xf32>
    %c234 = arith.constant 234 : index
    %1032 = memref.load %arg1[%c234] : memref<276xf32, #tpu.memory_space<smem>>
    %1033 = vector.broadcast %1032 : f32 to vector<1x128xf32>
    %1034 = arith.mulf %1031, %1033 : vector<1x128xf32>
    %1035 = arith.addf %1029, %1034 : vector<1x128xf32>
    %c6_202 = arith.constant 6 : index
    %c0_203 = arith.constant 0 : index
    %c0_204 = arith.constant 0 : index
    %1036 = vector.load %arg4[%c6_202, %c0_203, %c0_204] : memref<32x1x128xf32, #tpu.memory_space<vmem>>, vector<1x1x128xf32>
    %1037 = vector.shape_cast %1036 : vector<1x1x128xf32> to vector<1x128xf32>
    %c235 = arith.constant 235 : index
    %1038 = memref.load %arg1[%c235] : memref<276xf32, #tpu.memory_space<smem>>
    %1039 = vector.broadcast %1038 : f32 to vector<1x128xf32>
    %1040 = arith.mulf %1037, %1039 : vector<1x128xf32>
    %1041 = arith.addf %1035, %1040 : vector<1x128xf32>
    %c7_205 = arith.constant 7 : index
    %c0_206 = arith.constant 0 : index
    %c0_207 = arith.constant 0 : index
    %1042 = vector.load %arg4[%c7_205, %c0_206, %c0_207] : memref<32x1x128xf32, #tpu.memory_space<vmem>>, vector<1x1x128xf32>
    %1043 = vector.shape_cast %1042 : vector<1x1x128xf32> to vector<1x128xf32>
    %c236 = arith.constant 236 : index
    %1044 = memref.load %arg1[%c236] : memref<276xf32, #tpu.memory_space<smem>>
    %1045 = vector.broadcast %1044 : f32 to vector<1x128xf32>
    %1046 = arith.mulf %1043, %1045 : vector<1x128xf32>
    %1047 = arith.addf %1041, %1046 : vector<1x128xf32>
    %c8_208 = arith.constant 8 : index
    %c0_209 = arith.constant 0 : index
    %c0_210 = arith.constant 0 : index
    %1048 = vector.load %arg4[%c8_208, %c0_209, %c0_210] : memref<32x1x128xf32, #tpu.memory_space<vmem>>, vector<1x1x128xf32>
    %1049 = vector.shape_cast %1048 : vector<1x1x128xf32> to vector<1x128xf32>
    %c237 = arith.constant 237 : index
    %1050 = memref.load %arg1[%c237] : memref<276xf32, #tpu.memory_space<smem>>
    %1051 = vector.broadcast %1050 : f32 to vector<1x128xf32>
    %1052 = arith.mulf %1049, %1051 : vector<1x128xf32>
    %1053 = arith.addf %1047, %1052 : vector<1x128xf32>
    %c9_211 = arith.constant 9 : index
    %c0_212 = arith.constant 0 : index
    %c0_213 = arith.constant 0 : index
    %1054 = vector.load %arg4[%c9_211, %c0_212, %c0_213] : memref<32x1x128xf32, #tpu.memory_space<vmem>>, vector<1x1x128xf32>
    %1055 = vector.shape_cast %1054 : vector<1x1x128xf32> to vector<1x128xf32>
    %c238 = arith.constant 238 : index
    %1056 = memref.load %arg1[%c238] : memref<276xf32, #tpu.memory_space<smem>>
    %1057 = vector.broadcast %1056 : f32 to vector<1x128xf32>
    %1058 = arith.mulf %1055, %1057 : vector<1x128xf32>
    %1059 = arith.addf %1053, %1058 : vector<1x128xf32>
    %c10_214 = arith.constant 10 : index
    %c0_215 = arith.constant 0 : index
    %c0_216 = arith.constant 0 : index
    %1060 = vector.load %arg4[%c10_214, %c0_215, %c0_216] : memref<32x1x128xf32, #tpu.memory_space<vmem>>, vector<1x1x128xf32>
    %1061 = vector.shape_cast %1060 : vector<1x1x128xf32> to vector<1x128xf32>
    %c239 = arith.constant 239 : index
    %1062 = memref.load %arg1[%c239] : memref<276xf32, #tpu.memory_space<smem>>
    %1063 = vector.broadcast %1062 : f32 to vector<1x128xf32>
    %1064 = arith.mulf %1061, %1063 : vector<1x128xf32>
    %1065 = arith.addf %1059, %1064 : vector<1x128xf32>
    %c11_217 = arith.constant 11 : index
    %c0_218 = arith.constant 0 : index
    %c0_219 = arith.constant 0 : index
    %1066 = vector.load %arg4[%c11_217, %c0_218, %c0_219] : memref<32x1x128xf32, #tpu.memory_space<vmem>>, vector<1x1x128xf32>
    %1067 = vector.shape_cast %1066 : vector<1x1x128xf32> to vector<1x128xf32>
    %c240 = arith.constant 240 : index
    %1068 = memref.load %arg1[%c240] : memref<276xf32, #tpu.memory_space<smem>>
    %1069 = vector.broadcast %1068 : f32 to vector<1x128xf32>
    %1070 = arith.mulf %1067, %1069 : vector<1x128xf32>
    %1071 = arith.addf %1065, %1070 : vector<1x128xf32>
    %c12_220 = arith.constant 12 : index
    %c0_221 = arith.constant 0 : index
    %c0_222 = arith.constant 0 : index
    %1072 = vector.load %arg4[%c12_220, %c0_221, %c0_222] : memref<32x1x128xf32, #tpu.memory_space<vmem>>, vector<1x1x128xf32>
    %1073 = vector.shape_cast %1072 : vector<1x1x128xf32> to vector<1x128xf32>
    %c241 = arith.constant 241 : index
    %1074 = memref.load %arg1[%c241] : memref<276xf32, #tpu.memory_space<smem>>
    %1075 = vector.broadcast %1074 : f32 to vector<1x128xf32>
    %1076 = arith.mulf %1073, %1075 : vector<1x128xf32>
    %1077 = arith.addf %1071, %1076 : vector<1x128xf32>
    %c13_223 = arith.constant 13 : index
    %c0_224 = arith.constant 0 : index
    %c0_225 = arith.constant 0 : index
    %1078 = vector.load %arg4[%c13_223, %c0_224, %c0_225] : memref<32x1x128xf32, #tpu.memory_space<vmem>>, vector<1x1x128xf32>
    %1079 = vector.shape_cast %1078 : vector<1x1x128xf32> to vector<1x128xf32>
    %c242 = arith.constant 242 : index
    %1080 = memref.load %arg1[%c242] : memref<276xf32, #tpu.memory_space<smem>>
    %1081 = vector.broadcast %1080 : f32 to vector<1x128xf32>
    %1082 = arith.mulf %1079, %1081 : vector<1x128xf32>
    %1083 = arith.addf %1077, %1082 : vector<1x128xf32>
    %c14_226 = arith.constant 14 : index
    %c0_227 = arith.constant 0 : index
    %c0_228 = arith.constant 0 : index
    %1084 = vector.load %arg4[%c14_226, %c0_227, %c0_228] : memref<32x1x128xf32, #tpu.memory_space<vmem>>, vector<1x1x128xf32>
    %1085 = vector.shape_cast %1084 : vector<1x1x128xf32> to vector<1x128xf32>
    %c243 = arith.constant 243 : index
    %1086 = memref.load %arg1[%c243] : memref<276xf32, #tpu.memory_space<smem>>
    %1087 = vector.broadcast %1086 : f32 to vector<1x128xf32>
    %1088 = arith.mulf %1085, %1087 : vector<1x128xf32>
    %1089 = arith.addf %1083, %1088 : vector<1x128xf32>
    %c15_229 = arith.constant 15 : index
    %c0_230 = arith.constant 0 : index
    %c0_231 = arith.constant 0 : index
    %1090 = vector.load %arg4[%c15_229, %c0_230, %c0_231] : memref<32x1x128xf32, #tpu.memory_space<vmem>>, vector<1x1x128xf32>
    %1091 = vector.shape_cast %1090 : vector<1x1x128xf32> to vector<1x128xf32>
    %c244 = arith.constant 244 : index
    %1092 = memref.load %arg1[%c244] : memref<276xf32, #tpu.memory_space<smem>>
    %1093 = vector.broadcast %1092 : f32 to vector<1x128xf32>
    %1094 = arith.mulf %1091, %1093 : vector<1x128xf32>
    %1095 = arith.addf %1089, %1094 : vector<1x128xf32>
    %c16_232 = arith.constant 16 : index
    %c0_233 = arith.constant 0 : index
    %c0_234 = arith.constant 0 : index
    %1096 = vector.load %arg4[%c16_232, %c0_233, %c0_234] : memref<32x1x128xf32, #tpu.memory_space<vmem>>, vector<1x1x128xf32>
    %1097 = vector.shape_cast %1096 : vector<1x1x128xf32> to vector<1x128xf32>
    %c245 = arith.constant 245 : index
    %1098 = memref.load %arg1[%c245] : memref<276xf32, #tpu.memory_space<smem>>
    %1099 = vector.broadcast %1098 : f32 to vector<1x128xf32>
    %1100 = arith.mulf %1097, %1099 : vector<1x128xf32>
    %1101 = arith.addf %1095, %1100 : vector<1x128xf32>
    %c17_235 = arith.constant 17 : index
    %c0_236 = arith.constant 0 : index
    %c0_237 = arith.constant 0 : index
    %1102 = vector.load %arg4[%c17_235, %c0_236, %c0_237] : memref<32x1x128xf32, #tpu.memory_space<vmem>>, vector<1x1x128xf32>
    %1103 = vector.shape_cast %1102 : vector<1x1x128xf32> to vector<1x128xf32>
    %c246 = arith.constant 246 : index
    %1104 = memref.load %arg1[%c246] : memref<276xf32, #tpu.memory_space<smem>>
    %1105 = vector.broadcast %1104 : f32 to vector<1x128xf32>
    %1106 = arith.mulf %1103, %1105 : vector<1x128xf32>
    %1107 = arith.addf %1101, %1106 : vector<1x128xf32>
    %c18_238 = arith.constant 18 : index
    %c0_239 = arith.constant 0 : index
    %c0_240 = arith.constant 0 : index
    %1108 = vector.load %arg4[%c18_238, %c0_239, %c0_240] : memref<32x1x128xf32, #tpu.memory_space<vmem>>, vector<1x1x128xf32>
    %1109 = vector.shape_cast %1108 : vector<1x1x128xf32> to vector<1x128xf32>
    %c247 = arith.constant 247 : index
    %1110 = memref.load %arg1[%c247] : memref<276xf32, #tpu.memory_space<smem>>
    %1111 = vector.broadcast %1110 : f32 to vector<1x128xf32>
    %1112 = arith.mulf %1109, %1111 : vector<1x128xf32>
    %1113 = arith.addf %1107, %1112 : vector<1x128xf32>
    %c19_241 = arith.constant 19 : index
    %c0_242 = arith.constant 0 : index
    %c0_243 = arith.constant 0 : index
    %1114 = vector.load %arg4[%c19_241, %c0_242, %c0_243] : memref<32x1x128xf32, #tpu.memory_space<vmem>>, vector<1x1x128xf32>
    %1115 = vector.shape_cast %1114 : vector<1x1x128xf32> to vector<1x128xf32>
    %c248 = arith.constant 248 : index
    %1116 = memref.load %arg1[%c248] : memref<276xf32, #tpu.memory_space<smem>>
    %1117 = vector.broadcast %1116 : f32 to vector<1x128xf32>
    %1118 = arith.mulf %1115, %1117 : vector<1x128xf32>
    %1119 = arith.addf %1113, %1118 : vector<1x128xf32>
    %c20_244 = arith.constant 20 : index
    %c0_245 = arith.constant 0 : index
    %c0_246 = arith.constant 0 : index
    %1120 = vector.load %arg4[%c20_244, %c0_245, %c0_246] : memref<32x1x128xf32, #tpu.memory_space<vmem>>, vector<1x1x128xf32>
    %1121 = vector.shape_cast %1120 : vector<1x1x128xf32> to vector<1x128xf32>
    %c249 = arith.constant 249 : index
    %1122 = memref.load %arg1[%c249] : memref<276xf32, #tpu.memory_space<smem>>
    %1123 = vector.broadcast %1122 : f32 to vector<1x128xf32>
    %1124 = arith.mulf %1121, %1123 : vector<1x128xf32>
    %1125 = arith.addf %1119, %1124 : vector<1x128xf32>
    %c21_247 = arith.constant 21 : index
    %c0_248 = arith.constant 0 : index
    %c0_249 = arith.constant 0 : index
    %1126 = vector.load %arg4[%c21_247, %c0_248, %c0_249] : memref<32x1x128xf32, #tpu.memory_space<vmem>>, vector<1x1x128xf32>
    %1127 = vector.shape_cast %1126 : vector<1x1x128xf32> to vector<1x128xf32>
    %c250 = arith.constant 250 : index
    %1128 = memref.load %arg1[%c250] : memref<276xf32, #tpu.memory_space<smem>>
    %1129 = vector.broadcast %1128 : f32 to vector<1x128xf32>
    %1130 = arith.mulf %1127, %1129 : vector<1x128xf32>
    %1131 = arith.addf %1125, %1130 : vector<1x128xf32>
    %c22_250 = arith.constant 22 : index
    %c0_251 = arith.constant 0 : index
    %c0_252 = arith.constant 0 : index
    %1132 = vector.load %arg4[%c22_250, %c0_251, %c0_252] : memref<32x1x128xf32, #tpu.memory_space<vmem>>, vector<1x1x128xf32>
    %1133 = vector.shape_cast %1132 : vector<1x1x128xf32> to vector<1x128xf32>
    %c251 = arith.constant 251 : index
    %1134 = memref.load %arg1[%c251] : memref<276xf32, #tpu.memory_space<smem>>
    %1135 = vector.broadcast %1134 : f32 to vector<1x128xf32>
    %1136 = arith.mulf %1133, %1135 : vector<1x128xf32>
    %1137 = arith.addf %1131, %1136 : vector<1x128xf32>
    %c23_253 = arith.constant 23 : index
    %c0_254 = arith.constant 0 : index
    %c0_255 = arith.constant 0 : index
    %1138 = vector.load %arg4[%c23_253, %c0_254, %c0_255] : memref<32x1x128xf32, #tpu.memory_space<vmem>>, vector<1x1x128xf32>
    %1139 = vector.shape_cast %1138 : vector<1x1x128xf32> to vector<1x128xf32>
    %c252 = arith.constant 252 : index
    %1140 = memref.load %arg1[%c252] : memref<276xf32, #tpu.memory_space<smem>>
    %1141 = vector.broadcast %1140 : f32 to vector<1x128xf32>
    %1142 = arith.mulf %1139, %1141 : vector<1x128xf32>
    %1143 = arith.addf %1137, %1142 : vector<1x128xf32>
    %c24_256 = arith.constant 24 : index
    %c0_257 = arith.constant 0 : index
    %c0_258 = arith.constant 0 : index
    %1144 = vector.load %arg4[%c24_256, %c0_257, %c0_258] : memref<32x1x128xf32, #tpu.memory_space<vmem>>, vector<1x1x128xf32>
    %1145 = vector.shape_cast %1144 : vector<1x1x128xf32> to vector<1x128xf32>
    %c253 = arith.constant 253 : index
    %1146 = memref.load %arg1[%c253] : memref<276xf32, #tpu.memory_space<smem>>
    %1147 = vector.broadcast %1146 : f32 to vector<1x128xf32>
    %1148 = arith.mulf %1145, %1147 : vector<1x128xf32>
    %1149 = arith.addf %1143, %1148 : vector<1x128xf32>
    %c25_259 = arith.constant 25 : index
    %c0_260 = arith.constant 0 : index
    %c0_261 = arith.constant 0 : index
    %1150 = vector.load %arg4[%c25_259, %c0_260, %c0_261] : memref<32x1x128xf32, #tpu.memory_space<vmem>>, vector<1x1x128xf32>
    %1151 = vector.shape_cast %1150 : vector<1x1x128xf32> to vector<1x128xf32>
    %c254 = arith.constant 254 : index
    %1152 = memref.load %arg1[%c254] : memref<276xf32, #tpu.memory_space<smem>>
    %1153 = vector.broadcast %1152 : f32 to vector<1x128xf32>
    %1154 = arith.mulf %1151, %1153 : vector<1x128xf32>
    %1155 = arith.addf %1149, %1154 : vector<1x128xf32>
    %c26_262 = arith.constant 26 : index
    %c0_263 = arith.constant 0 : index
    %c0_264 = arith.constant 0 : index
    %1156 = vector.load %arg4[%c26_262, %c0_263, %c0_264] : memref<32x1x128xf32, #tpu.memory_space<vmem>>, vector<1x1x128xf32>
    %1157 = vector.shape_cast %1156 : vector<1x1x128xf32> to vector<1x128xf32>
    %c255 = arith.constant 255 : index
    %1158 = memref.load %arg1[%c255] : memref<276xf32, #tpu.memory_space<smem>>
    %1159 = vector.broadcast %1158 : f32 to vector<1x128xf32>
    %1160 = arith.mulf %1157, %1159 : vector<1x128xf32>
    %1161 = arith.addf %1155, %1160 : vector<1x128xf32>
    %c27_265 = arith.constant 27 : index
    %c0_266 = arith.constant 0 : index
    %c0_267 = arith.constant 0 : index
    %1162 = vector.load %arg4[%c27_265, %c0_266, %c0_267] : memref<32x1x128xf32, #tpu.memory_space<vmem>>, vector<1x1x128xf32>
    %1163 = vector.shape_cast %1162 : vector<1x1x128xf32> to vector<1x128xf32>
    %c256 = arith.constant 256 : index
    %1164 = memref.load %arg1[%c256] : memref<276xf32, #tpu.memory_space<smem>>
    %1165 = vector.broadcast %1164 : f32 to vector<1x128xf32>
    %1166 = arith.mulf %1163, %1165 : vector<1x128xf32>
    %1167 = arith.addf %1161, %1166 : vector<1x128xf32>
    %c28_268 = arith.constant 28 : index
    %c0_269 = arith.constant 0 : index
    %c0_270 = arith.constant 0 : index
    %1168 = vector.load %arg4[%c28_268, %c0_269, %c0_270] : memref<32x1x128xf32, #tpu.memory_space<vmem>>, vector<1x1x128xf32>
    %1169 = vector.shape_cast %1168 : vector<1x1x128xf32> to vector<1x128xf32>
    %c257 = arith.constant 257 : index
    %1170 = memref.load %arg1[%c257] : memref<276xf32, #tpu.memory_space<smem>>
    %1171 = vector.broadcast %1170 : f32 to vector<1x128xf32>
    %1172 = arith.mulf %1169, %1171 : vector<1x128xf32>
    %1173 = arith.addf %1167, %1172 : vector<1x128xf32>
    %c29_271 = arith.constant 29 : index
    %c0_272 = arith.constant 0 : index
    %c0_273 = arith.constant 0 : index
    %1174 = vector.load %arg4[%c29_271, %c0_272, %c0_273] : memref<32x1x128xf32, #tpu.memory_space<vmem>>, vector<1x1x128xf32>
    %1175 = vector.shape_cast %1174 : vector<1x1x128xf32> to vector<1x128xf32>
    %c258 = arith.constant 258 : index
    %1176 = memref.load %arg1[%c258] : memref<276xf32, #tpu.memory_space<smem>>
    %1177 = vector.broadcast %1176 : f32 to vector<1x128xf32>
    %1178 = arith.mulf %1175, %1177 : vector<1x128xf32>
    %1179 = arith.addf %1173, %1178 : vector<1x128xf32>
    %c30_274 = arith.constant 30 : index
    %c0_275 = arith.constant 0 : index
    %c0_276 = arith.constant 0 : index
    %1180 = vector.load %arg4[%c30_274, %c0_275, %c0_276] : memref<32x1x128xf32, #tpu.memory_space<vmem>>, vector<1x1x128xf32>
    %1181 = vector.shape_cast %1180 : vector<1x1x128xf32> to vector<1x128xf32>
    %c259 = arith.constant 259 : index
    %1182 = memref.load %arg1[%c259] : memref<276xf32, #tpu.memory_space<smem>>
    %1183 = vector.broadcast %1182 : f32 to vector<1x128xf32>
    %1184 = arith.mulf %1181, %1183 : vector<1x128xf32>
    %1185 = arith.addf %1179, %1184 : vector<1x128xf32>
    %c31_277 = arith.constant 31 : index
    %c0_278 = arith.constant 0 : index
    %c0_279 = arith.constant 0 : index
    %1186 = vector.load %arg4[%c31_277, %c0_278, %c0_279] : memref<32x1x128xf32, #tpu.memory_space<vmem>>, vector<1x1x128xf32>
    %1187 = vector.shape_cast %1186 : vector<1x1x128xf32> to vector<1x128xf32>
    %c260 = arith.constant 260 : index
    %1188 = memref.load %arg1[%c260] : memref<276xf32, #tpu.memory_space<smem>>
    %1189 = vector.broadcast %1188 : f32 to vector<1x128xf32>
    %1190 = arith.mulf %1187, %1189 : vector<1x128xf32>
    %1191 = arith.addf %1185, %1190 : vector<1x128xf32>
    %c261 = arith.constant 261 : index
    %1192 = memref.load %arg1[%c261] : memref<276xf32, #tpu.memory_space<smem>>
    %1193 = vector.broadcast %1192 : f32 to vector<1x128xf32>
    %1194 = arith.addf %1191, %1193 : vector<1x128xf32>
    %c262 = arith.constant 262 : index
    %1195 = memref.load %arg1[%c262] : memref<276xf32, #tpu.memory_space<smem>>
    %1196 = vector.broadcast %1195 : f32 to vector<1x128xf32>
    %1197 = arith.mulf %804, %1196 : vector<1x128xf32>
    %c265 = arith.constant 265 : index
    %1198 = memref.load %arg1[%c265] : memref<276xf32, #tpu.memory_space<smem>>
    %1199 = vector.broadcast %1198 : f32 to vector<1x128xf32>
    %1200 = arith.mulf %999, %1199 : vector<1x128xf32>
    %1201 = arith.addf %1197, %1200 : vector<1x128xf32>
    %c268 = arith.constant 268 : index
    %1202 = memref.load %arg1[%c268] : memref<276xf32, #tpu.memory_space<smem>>
    %1203 = vector.broadcast %1202 : f32 to vector<1x128xf32>
    %1204 = arith.mulf %1194, %1203 : vector<1x128xf32>
    %1205 = arith.addf %1201, %1204 : vector<1x128xf32>
    %c271 = arith.constant 271 : index
    %1206 = memref.load %arg1[%c271] : memref<276xf32, #tpu.memory_space<smem>>
    %1207 = vector.broadcast %1206 : f32 to vector<1x128xf32>
    %1208 = arith.addf %1205, %1207 : vector<1x128xf32>
    %c263 = arith.constant 263 : index
    %1209 = memref.load %arg1[%c263] : memref<276xf32, #tpu.memory_space<smem>>
    %1210 = vector.broadcast %1209 : f32 to vector<1x128xf32>
    %1211 = arith.mulf %804, %1210 : vector<1x128xf32>
    %c266 = arith.constant 266 : index
    %1212 = memref.load %arg1[%c266] : memref<276xf32, #tpu.memory_space<smem>>
    %1213 = vector.broadcast %1212 : f32 to vector<1x128xf32>
    %1214 = arith.mulf %999, %1213 : vector<1x128xf32>
    %1215 = arith.addf %1211, %1214 : vector<1x128xf32>
    %c269 = arith.constant 269 : index
    %1216 = memref.load %arg1[%c269] : memref<276xf32, #tpu.memory_space<smem>>
    %1217 = vector.broadcast %1216 : f32 to vector<1x128xf32>
    %1218 = arith.mulf %1194, %1217 : vector<1x128xf32>
    %1219 = arith.addf %1215, %1218 : vector<1x128xf32>
    %c272 = arith.constant 272 : index
    %1220 = memref.load %arg1[%c272] : memref<276xf32, #tpu.memory_space<smem>>
    %1221 = vector.broadcast %1220 : f32 to vector<1x128xf32>
    %1222 = arith.addf %1219, %1221 : vector<1x128xf32>
    %c264 = arith.constant 264 : index
    %1223 = memref.load %arg1[%c264] : memref<276xf32, #tpu.memory_space<smem>>
    %1224 = vector.broadcast %1223 : f32 to vector<1x128xf32>
    %1225 = arith.mulf %804, %1224 : vector<1x128xf32>
    %c267 = arith.constant 267 : index
    %1226 = memref.load %arg1[%c267] : memref<276xf32, #tpu.memory_space<smem>>
    %1227 = vector.broadcast %1226 : f32 to vector<1x128xf32>
    %1228 = arith.mulf %999, %1227 : vector<1x128xf32>
    %1229 = arith.addf %1225, %1228 : vector<1x128xf32>
    %c270 = arith.constant 270 : index
    %1230 = memref.load %arg1[%c270] : memref<276xf32, #tpu.memory_space<smem>>
    %1231 = vector.broadcast %1230 : f32 to vector<1x128xf32>
    %1232 = arith.mulf %1194, %1231 : vector<1x128xf32>
    %1233 = arith.addf %1229, %1232 : vector<1x128xf32>
    %c273 = arith.constant 273 : index
    %1234 = memref.load %arg1[%c273] : memref<276xf32, #tpu.memory_space<smem>>
    %1235 = vector.broadcast %1234 : f32 to vector<1x128xf32>
    %1236 = arith.addf %1233, %1235 : vector<1x128xf32>
    %1237 = arith.maximumf %1208, %1222 : vector<1x128xf32>
    %1238 = arith.maximumf %1237, %1236 : vector<1x128xf32>
    %1239 = arith.subf %1208, %1238 : vector<1x128xf32>
    %1240 = math.exp %1239 : vector<1x128xf32>
    %1241 = arith.subf %1222, %1238 : vector<1x128xf32>
    %1242 = math.exp %1241 : vector<1x128xf32>
    %1243 = arith.subf %1236, %1238 : vector<1x128xf32>
    %1244 = math.exp %1243 : vector<1x128xf32>
    %1245 = arith.addf %1240, %1242 : vector<1x128xf32>
    %1246 = arith.addf %1245, %1244 : vector<1x128xf32>
    %cst_280 = arith.constant 1.000000e+00 : f32
    %1247 = vector.broadcast %cst_280 : f32 to vector<1x128xf32>
    %1248 = arith.divf %1247, %1246 : vector<1x128xf32>
    %1249 = arith.mulf %1240, %1248 : vector<1x128xf32>
    %1250 = arith.mulf %1242, %1248 : vector<1x128xf32>
    %1251 = arith.mulf %1244, %1248 : vector<1x128xf32>
    %1252 = arith.mulf %804, %1249 : vector<1x128xf32>
    %1253 = arith.mulf %999, %1250 : vector<1x128xf32>
    %1254 = arith.addf %1252, %1253 : vector<1x128xf32>
    %1255 = arith.mulf %1194, %1251 : vector<1x128xf32>
    %1256 = arith.addf %1254, %1255 : vector<1x128xf32>
    %c274 = arith.constant 274 : index
    %1257 = memref.load %arg1[%c274] : memref<276xf32, #tpu.memory_space<smem>>
    %1258 = vector.broadcast %1257 : f32 to vector<1x128xf32>
    %1259 = arith.mulf %1256, %1258 : vector<1x128xf32>
    %c275 = arith.constant 275 : index
    %1260 = memref.load %arg1[%c275] : memref<276xf32, #tpu.memory_space<smem>>
    %1261 = vector.broadcast %1260 : f32 to vector<1x128xf32>
    %1262 = arith.addf %1259, %1261 : vector<1x128xf32>
    %c0_281 = arith.constant 0 : index
    %c0_282 = arith.constant 0 : index
    %c0_283 = arith.constant 0 : index
    %1263 = vector.load %arg6[%c0_281, %c0_282, %c0_283] : memref<4x1x128xf32, #tpu.memory_space<vmem>>, vector<1x1x128xf32>
    %1264 = vector.shape_cast %1263 : vector<1x1x128xf32> to vector<1x128xf32>
    %1265 = vector.shape_cast %1249 : vector<1x128xf32> to vector<1x1x128xf32>
    tpu.vector_store %arg6[%c0_281, %c0_282, %c0_283], %1265 {strides = array<i32>} : memref<4x1x128xf32, #tpu.memory_space<vmem>>, vector<1x1x128xf32>,
    %c1_284 = arith.constant 1 : index
    %c0_285 = arith.constant 0 : index
    %c0_286 = arith.constant 0 : index
    %1266 = vector.load %arg6[%c1_284, %c0_285, %c0_286] : memref<4x1x128xf32, #tpu.memory_space<vmem>>, vector<1x1x128xf32>
    %1267 = vector.shape_cast %1266 : vector<1x1x128xf32> to vector<1x128xf32>
    %1268 = vector.shape_cast %1250 : vector<1x128xf32> to vector<1x1x128xf32>
    tpu.vector_store %arg6[%c1_284, %c0_285, %c0_286], %1268 {strides = array<i32>} : memref<4x1x128xf32, #tpu.memory_space<vmem>>, vector<1x1x128xf32>,
    %c2_287 = arith.constant 2 : index
    %c0_288 = arith.constant 0 : index
    %c0_289 = arith.constant 0 : index
    %1269 = vector.load %arg6[%c2_287, %c0_288, %c0_289] : memref<4x1x128xf32, #tpu.memory_space<vmem>>, vector<1x1x128xf32>
    %1270 = vector.shape_cast %1269 : vector<1x1x128xf32> to vector<1x128xf32>
    %1271 = vector.shape_cast %1251 : vector<1x128xf32> to vector<1x1x128xf32>
    tpu.vector_store %arg6[%c2_287, %c0_288, %c0_289], %1271 {strides = array<i32>} : memref<4x1x128xf32, #tpu.memory_space<vmem>>, vector<1x1x128xf32>,
    %c3_290 = arith.constant 3 : index
    %c0_291 = arith.constant 0 : index
    %c0_292 = arith.constant 0 : index
    %1272 = vector.load %arg6[%c3_290, %c0_291, %c0_292] : memref<4x1x128xf32, #tpu.memory_space<vmem>>, vector<1x1x128xf32>
    %1273 = vector.shape_cast %1272 : vector<1x1x128xf32> to vector<1x128xf32>
    %1274 = vector.shape_cast %1262 : vector<1x128xf32> to vector<1x1x128xf32>
    tpu.vector_store %arg6[%c3_290, %c0_291, %c0_292], %1274 {strides = array<i32>} : memref<4x1x128xf32, #tpu.memory_space<vmem>>, vector<1x1x128xf32>,
    return
  }
  func.func @transform_0(%arg0: i32) -> i32 {
    %c0_i32 = arith.constant 0 : i32
    %c0_i32_0 = arith.constant 0 : i32
    return %c0_i32 : i32
  }
  func.func @transform_1(%arg0: i32) -> (i32, i32, i32) {
    %c0_i32 = arith.constant 0 : i32
    %c0_i32_0 = arith.constant 0 : i32
    %c0_i32_1 = arith.constant 0 : i32
    return %c0_i32, %arg0, %c0_i32_0 : i32, i32, i32
  }
  func.func @transform_2(%arg0: i32) -> (i32, i32, i32) {
    %c0_i32 = arith.constant 0 : i32
    %c0_i32_0 = arith.constant 0 : i32
    %c0_i32_1 = arith.constant 0 : i32
    return %c0_i32, %arg0, %c0_i32_0 : i32, i32, i32
  }
  func.func @transform_3(%arg0: i32) -> (i32, i32, i32) {
    %c0_i32 = arith.constant 0 : i32
    %c0_i32_0 = arith.constant 0 : i32
    %c0_i32_1 = arith.constant 0 : i32
    return %c0_i32, %arg0, %c0_i32_0 : i32, i32, i32
  }
  func.func @transform_4(%arg0: i32) -> (i32, i32, i32) {
    %c0_i32 = arith.constant 0 : i32
    %c0_i32_0 = arith.constant 0 : i32
    %c0_i32_1 = arith.constant 0 : i32
    return %c0_i32, %arg0, %c0_i32_0 : i32, i32, i32
  }
  func.func @transform_5(%arg0: i32) -> (i32, i32, i32) {
    %c0_i32 = arith.constant 0 : i32
    %c0_i32_0 = arith.constant 0 : i32
    %c0_i32_1 = arith.constant 0 : i32
    return %c0_i32, %arg0, %c0_i32_0 : i32, i32, i32
  }
}

</mosaic_0001>

<bundles_post_ra>
// kernel: tpu_custom_call.1
= control target key start
LH: loop header
LB: loop body
LE: loop exit
PB: predicated region body
PF: predicated region fallthrough
CT: control target
= control target key end

     0   :  { %11 = vsyncpa [#allocation5], 0  ;;  %s2746_s0 = inlined_call_operand.hbm [shape: f32[276], index: 0, kind: input, shape index: {}]   ;;  %s2747_s1 = inlined_call_operand.hbm [shape: f32[4,1,128], index: 1, kind: input, shape index: {}]   ;;  %s2748_s2 = inlined_call_operand.hbm [shape: f32[32,1,128], index: 2, kind: input, shape index: {}]   ;;  %s2749_s3 = inlined_call_operand.hbm [shape: f32[32,1,128], index: 3, kind: input, shape index: {}]   ;;  %s2750_s4 = inlined_call_operand.hbm [shape: f32[4,1,128], index: 4, kind: output, shape index: {0}]   ;;  %s2751_s5 = inlined_call_operand.hbm [shape: f32[4,1,128], index: 5, kind: output, shape index: {1}]  }
   0x1   :  { %12 = vsyncpa [#allocation3], 0 }
   0x2   :  { %13 = vsyncpa [#allocation8], 0 }
   0x3   :  { %14 = vsyncpa [#allocation4], 0 }
   0x4   :  { %15 = vsyncpa [#allocation12], 0  ;;  %s1729_s18 = smov [#allocation7]   ;;  %s1730_s20 = smov [#allocation6]  }
   0x5   :  { %s41_s19 = sshll.u32 %s1729_s18, 4  ;;  %s29_s21 = sshll.u32 %s1730_s20, 4  ;;  %s42_s19 = int_to_ptr.vmem [resolvable:$true] %s41_s19  ;;  %s30_s21 = int_to_ptr.vmem [resolvable:$true] %s29_s21 }
   0x6   :  { %s1599_s24 = scalar_lea.hbm %s2748_s2, 512 }
   0x7   :  { %p1600_p0 = scmp.ne.s32.totalorder %s2748_s2, %s1599_s24  ;;  %p1603_p1 = scmp.lt.u32.totalorder %s1599_s24, %s2748_s2 }
   0x9   :  { %p1605_p2 = pnand %p1603_p1, %p1600_p0 }
   0xb   :  { %1608 = shalt.err (!%p1605_p2)
}
   0xc   :  { %s1609_s29 = scalar_lea.vmem %s42_s19, 512  ;;  %p1614_p4 = scmp.lt.s32.totalorder %s42_s19, %s42_s19 }
   0xd   :  { %p1610_p3 = scmp.ne.s32.totalorder %s42_s19, %s1609_s29  ;;  %p1615_p5 = scmp.lt.s32.totalorder %s1609_s29, %s1609_s29 }
   0xf   :  { %p1616_p6 = por %p1615_p5, %p1614_p4 }
  0x11   :  { %p1617_p7 = pnand %p1616_p6, %p1610_p3 }
  0x13   :  { %1620 = shalt.err (!%p1617_p7)
}
  0x14   :  { %s1731_s30 = smov 16   ;;  %s1732_s6 = smov 1  }
  0x15   :  { %47 = dma.hbm_to_vmem [thread:$0]  %s2748_s2, 512, %s42_s19, [#allocation8], %s1731_s30, %s1731_s30, %s1732_s6  }
  0x16   :  { %s1621_s11 = scalar_lea.hbm %s2746_s0, 48  ;;  %s1623_s16 = scalar_lea.hbm %s2746_s0, 64 }
  0x17   :  { %p1622_p8 = scmp.ne.s32.totalorder %s2746_s0, %s1621_s11  ;;  %p1624_p9 = scmp.lt.u32.totalorder %s1623_s16, %s1621_s11 }
  0x18   :  { %p1625_p10 = scmp.lt.u32.totalorder %s1621_s11, %s2746_s0 }
  0x1a   :  { %p1626_p11 = por %p1625_p10, %p1624_p9 }
  0x1c   :  { %p1627_p12 = pnand %p1626_p11, %p1622_p8 }
  0x1e   :  { %1630 = shalt.err (!%p1627_p12)
}
  0x1f   :  { %s1733_s2 = smov [#allocation2]   ;;  %s1631_s24 = scalar_lea.hbm %s2747_s1, 64 }
  0x20   :  { %23 = dma.hbm_to_smem %s2746_s0, 48, %s1733_s2, [#allocation5]  }
  0x21   :  { %p1632_p13 = scmp.ne.s32.totalorder %s2747_s1, %s1631_s24  ;;  %p1635_p0 = scmp.lt.u32.totalorder %s1631_s24, %s2747_s1 }
  0x23   :  { %p1637_p1 = pnand %p1635_p0, %p1632_p13 }
  0x25   :  { %1640 = shalt.err (!%p1637_p1)
}
  0x26   :  { %s1641_s29 = scalar_lea.vmem %s30_s21, 64  ;;  %p1646_p3 = scmp.lt.s32.totalorder %s30_s21, %s30_s21 }
  0x27   :  { %p1642_p2 = scmp.ne.s32.totalorder %s30_s21, %s1641_s29  ;;  %p1647_p4 = scmp.lt.s32.totalorder %s1641_s29, %s1641_s29 }
  0x29   :  { %p1648_p5 = por %p1647_p4, %p1646_p3 }
  0x2b   :  { %p1649_p6 = pnand %p1648_p5, %p1642_p2 }
  0x2d   :  { %1652 = shalt.err (!%p1649_p6)
}
  0x2e   :  { %35 = dma.hbm_to_vmem [thread:$0]  %s2747_s1, 64, %s30_s21, [#allocation3], %s1731_s30, %s1731_s30, %s1732_s6  }
  0x2f   :  { %s1734_s8 = smov [#allocation9]   ;;  %s1653_s12 = scalar_lea.hbm %s2749_s3, 512 }
  0x30   :  { %s53_s9 = sshll.u32 %s1734_s8, 4  ;;  %p1654_p7 = scmp.ne.s32.totalorder %s2749_s3, %s1653_s12  ;;  %s54_s9 = int_to_ptr.vmem [resolvable:$true] %s53_s9 }
  0x31   :  { %p1657_p8 = scmp.lt.u32.totalorder %s1653_s12, %s2749_s3 }
  0x33   :  { %p1659_p9 = pnand %p1657_p8, %p1654_p7 }
  0x35   :  { %1662 = shalt.err (!%p1659_p9)
}
  0x36   :  { %s1663_s17 = scalar_lea.vmem %s54_s9, 512  ;;  %p1668_p11 = scmp.lt.s32.totalorder %s54_s9, %s54_s9 }
  0x37   :  { %p1664_p10 = scmp.ne.s32.totalorder %s54_s9, %s1663_s17  ;;  %p1669_p12 = scmp.lt.s32.totalorder %s1663_s17, %s1663_s17 }
  0x39   :  { %p1670_p13 = por %p1669_p12, %p1668_p11 }
  0x3b   :  { %p1671_p0 = pnand %p1670_p13, %p1664_p10 }
  0x3d   :  { %1674 = shalt.err (!%p1671_p0)
}
  0x3e   :  { %59 = dma.hbm_to_vmem [thread:$0]  %s2749_s3, 512, %s54_s9, [#allocation8], %s1731_s30, %s1731_s30, %s1732_s6  }
  0x3f   :  { %1719 = dma.done.wait [#allocation5], 48  }
  0x40   :  { %1720 = vsyncadd [#allocation5], 4294967248 }
  0x41   :  { %1721 = dma.done.wait [#allocation3], 64  }
  0x42   :  { %1722 = vsyncadd [#allocation3], 4294967232 }
  0x43   :  { %1723 = dma.done.wait [#allocation8], 1024  }
  0x44   :  { %1724 = vsyncadd [#allocation8], 4294966272 }
  0x45   :  { %72 = sfence }
  0x46   :  { %s74_s18 = sld [smem:[#allocation2]]  ;;  %s1310_s20 = sld [smem:[#allocation2 + $0x4]]  ;;  %v1833_v0 = vld [vmem:[#allocation6] sm:$0x1] }
  0x47   :  { %s1308_s2 = sld [smem:[#allocation2 + $0x40]]  ;;  %s1311_s22 = sld [smem:[#allocation2 + $0x44]] }
  0x48   :  { %s1827_s19 = sld [smem:[#allocation2 + $0x80]]  ;;  %s1829_s23 = sld [smem:[#allocation2 + $0x84]] }
  0x49   :  { %s1313_s24 = sld [smem:[#allocation2 + $0x8]]  ;;  %s1316_s26 = sld [smem:[#allocation2 + $0xc]] }
  0x4a   :  { %s1831_s25 = sld [smem:[#allocation2 + $0x48]]  ;;  %s1837_s27 = sld [smem:[#allocation2 + $0x4c]] }
  0x4b   :  { %s1835_s3 = sld [smem:[#allocation2 + $0x88]]  ;;  %s1839_s28 = sld [smem:[#allocation2 + $0x8c]] }
  0x4c   :  { %v77_v1 = vstv %s74_s18  ;;  %s1841_s29 = sld [smem:[#allocation2 + $0x10]]  ;;  %v88_v4 = vstv %s1310_s20  ;;  %s1848_s8 = sld [smem:[#allocation2 + $0x14]] }
  0x4d   :  { %v79_v2 = vstv %s1308_s2  ;;  %s1843_s0 = sld [smem:[#allocation2 + $0x50]]  ;;  %v78_v3 = vmul.f32 %v77_v1, %v1833_v0  ;;  %v89_v5 = vmul.f32 %v88_v4, %v1833_v0  ;;  %v90_v6 = vstv %s1311_s22  ;;  %s1851_s9 = sld [smem:[#allocation2 + $0x54]] }
  0x4e   :  { %s1846_s7 = sld [smem:[#allocation2 + $0x90]]  ;;  %v82_v8 = vstv %s1827_s19  ;;  %v93_v12 = vstv %s1829_s23  ;;  %s1861_s12 = sld [smem:[#allocation2 + $0x94]] }
  0x4f   :  { %v80_v7 = vadd.f32 %v79_v2, %v78_v3  ;;  %v99_v9 = vstv %s1313_s24  ;;  %s1855_s10 = sld [smem:[#allocation2 + $0x18]]  ;;  %v91_v11 = vadd.f32 %v90_v6, %v89_v5  ;;  %v110_v14 = vstv %s1316_s26  ;;  %s1863_s13 = sld [smem:[#allocation2 + $0x1c]] }
  0x50   :  { %v101_v10 = vstv %s1831_s25  ;;  %s1857_s11 = sld [smem:[#allocation2 + $0x58]]  ;;  %v100_v13 = vmul.f32 %v99_v9, %v1833_v0  ;;  %v111_v17 = vmul.f32 %v110_v14, %v1833_v0  ;;  %v112_v18 = vstv %s1837_s27  ;;  %s1870_s15 = sld [smem:[#allocation2 + $0x5c]] }
  0x51   :  { %v81_v15 = vmax.f32 %v80_v7, 0.0  ;;  %v104_v16 = vstv %s1835_s3  ;;  %s1868_s14 = sld [smem:[#allocation2 + $0x98]]  ;;  %v92_v19 = vmax.f32 %v91_v11, 0.0  ;;  %v115_v25 = vstv %s1839_s28  ;;  %s1880_s1 = sld [smem:[#allocation2 + $0x9c]] }
  0x52   :  { %v102_v20 = vadd.f32 %v101_v10, %v100_v13  ;;  %v121_v21 = vstv %s1841_s29  ;;  %s1874_s16 = sld [smem:[#allocation2 + $0x20]]  ;;  %v113_v24 = vadd.f32 %v112_v18, %v111_v17  ;;  %v132_v29 = vstv %s1848_s8  ;;  %s1884_s21 = sld [smem:[#allocation2 + $0x24]] }
  0x53   :  { %v123_v22 = vstv %s1843_s0  ;;  %s1876_s17 = sld [smem:[#allocation2 + $0x60]]  ;;  %v83_v23 = vmul.f32 %v82_v8, %v81_v15  ;;  %v122_v26 = vmul.f32 %v121_v21, %v1833_v0  ;;  %v94_v27 = vmul.f32 %v93_v12, %v92_v19  ;;  %s1886_s18 = sld [smem:[#allocation2 + $0x64]] }
  0x54   :  { %v103_v28 = vmax.f32 %v102_v20, 0.0  ;;  %v134_v30 = vstv %s1851_s9  ;;  %v114_v31 = vmax.f32 %v113_v24, 0.0  ;;  %v126_v33 = vstv %s1846_s7  ;;  %s1890_s2 = sld [smem:[#allocation2 + $0xa0]]  ;;  %s1899_s22 = sld [smem:[#allocation2 + $0xa4]] }
  0x55   :  { %v124_v32 = vadd.f32 %v123_v22, %v122_v26  ;;  %v133_v34 = vmul.f32 %v132_v29, %v1833_v0  ;;  %v95_v35 = vadd.f32 %v94_v27, %v83_v23  ;;  %v143_v37 = vstv %s1855_s10  ;;  %s1894_s19 = sld [smem:[#allocation2 + $0x28]]  ;;  %s1904_s23 = sld [smem:[#allocation2 + $0x2c]] }
  0x56   :  { %v105_v36 = vmul.f32 %v104_v16, %v103_v28  ;;  %v145_v38 = vstv %s1857_s11  ;;  %s1896_s20 = sld [smem:[#allocation2 + $0x68]]  ;;  %v116_v39 = vmul.f32 %v115_v25, %v114_v31  ;;  %v144_v42 = vmul.f32 %v143_v37, %v1833_v0  ;;  %s1906_s24 = sld [smem:[#allocation2 + $0x6c]] }
  0x57   :  { %v125_v40 = vmax.f32 %v124_v32, 0.0  ;;  %v135_v41 = vadd.f32 %v134_v30, %v133_v34  ;;  %v137_v44 = vstv %s1861_s12  ;;  %v154_v45 = vstv %s1863_s13  ;;  %s1909_s25 = sld [smem:[#allocation2 + $0xa8]]  ;;  %s1919_s27 = sld [smem:[#allocation2 + $0xac]] }
  0x58   :  { %v106_v43 = vadd.f32 %v105_v36, %v95_v35  ;;  %v156_v46 = vstv %s1870_s15  ;;  %v146_v49 = vadd.f32 %v145_v38, %v144_v42  ;;  %v155_v50 = vmul.f32 %v154_v45, %v1833_v0  ;;  %s1914_s3 = sld [smem:[#allocation2 + $0x30]]  ;;  %s1924_s28 = sld [smem:[#allocation2 + $0x34]] }
  0x59   :  { %v127_v47 = vmul.f32 %v126_v33, %v125_v40  ;;  %v136_v48 = vmax.f32 %v135_v41, 0.0  ;;  %v148_v52 = vstv %s1868_s14  ;;  %v165_v53 = vstv %s1874_s16  ;;  %s1916_s26 = sld [smem:[#allocation2 + $0x70]]  ;;  %s1926_s29 = sld [smem:[#allocation2 + $0x74]] }
  0x5a   :  { %v117_v51 = vadd.f32 %v116_v39, %v106_v43  ;;  %v167_v54 = vstv %s1876_s17  ;;  %v147_v56 = vmax.f32 %v146_v49, 0.0  ;;  %v157_v57 = vadd.f32 %v156_v46, %v155_v50  ;;  %s1929_s0 = sld [smem:[#allocation2 + $0xb0]]  ;;  %s1939_s9 = sld [smem:[#allocation2 + $0xb4]] }
  0x5b   :  { %v138_v55 = vmul.f32 %v137_v44, %v136_v48  ;;  %v166_v58 = vmul.f32 %v165_v53, %v1833_v0  ;;  %v159_v60 = vstv %s1880_s1  ;;  %v176_v61 = vstv %s1884_s21  ;;  %s1934_s7 = sld [smem:[#allocation2 + $0x38]]  ;;  %s1944_s10 = sld [smem:[#allocation2 + $0x3c]]  ;;  %v1984_v48 = vld [vmem:[#allocation6 + $0x1] sm:$0x1] }
  0x5c   :  { %v128_v59 = vadd.f32 %v127_v47, %v117_v51  ;;  %v178_v62 = vstv %s1886_s18  ;;  %v149_v63 = vmul.f32 %v148_v52, %v147_v56  ;;  %v158_v1 = vmax.f32 %v157_v57, 0.0  ;;  %s1936_s8 = sld [smem:[#allocation2 + $0x78]]  ;;  %s1946_s11 = sld [smem:[#allocation2 + $0x7c]] }
  0x5d   :  { %v168_v2 = vadd.f32 %v167_v54, %v166_v58  ;;  %v177_v3 = vmul.f32 %v176_v61, %v1833_v0  ;;  %v170_v5 = vstv %s1890_s2  ;;  %v187_v6 = vstv %s1894_s19  ;;  %s1949_s12 = sld [smem:[#allocation2 + $0xb8]]  ;;  %s1954_s13 = sld [smem:[#allocation2 + $0xbc]] }
  0x5e   :  { %v139_v4 = vadd.f32 %v138_v55, %v128_v59  ;;  %v189_v7 = vstv %s1896_s20  ;;  %v160_v8 = vmul.f32 %v159_v60, %v158_v1  ;;  %v188_v11 = vmul.f32 %v187_v6, %v1833_v0  ;;  %s1956_s14 = sld [smem:[#allocation2 + $0x1]]  ;;  %s1959_s15 = sld [smem:[#allocation2 + $0xc0]] }
  0x5f   :  { %v169_v9 = vmax.f32 %v168_v2, 0.0  ;;  %v179_v10 = vadd.f32 %v178_v62, %v177_v3  ;;  %v181_v13 = vstv %s1899_s22  ;;  %v198_v14 = vstv %s1904_s23  ;;  %s1964_s16 = sld [smem:[#allocation2 + $0x41]]  ;;  %s1966_s17 = sld [smem:[#allocation2 + $0x5]] }
  0x60   :  { %v150_v12 = vadd.f32 %v149_v63, %v139_v4  ;;  %v200_v15 = vstv %s1906_s24  ;;  %v190_v18 = vadd.f32 %v189_v7, %v188_v11  ;;  %v199_v19 = vmul.f32 %v198_v14, %v1833_v0  ;;  %s1969_s1 = sld [smem:[#allocation2 + $0x81]]  ;;  %s1974_s21 = sld [smem:[#allocation2 + $0x45]] }
  0x61   :  { %v171_v16 = vmul.f32 %v170_v5, %v169_v9  ;;  %v180_v17 = vmax.f32 %v179_v10, 0.0  ;;  %v192_v21 = vstv %s1909_s25  ;;  %v209_v22 = vstv %s1914_s3  ;;  %s1976_s18 = sld [smem:[#allocation2 + $0x9]]  ;;  %s1979_s2 = sld [smem:[#allocation2 + $0x85]] }
  0x62   :  { %v161_v20 = vadd.f32 %v160_v8, %v150_v12  ;;  %v211_v23 = vstv %s1916_s26  ;;  %v191_v25 = vmax.f32 %v190_v18, 0.0  ;;  %v201_v26 = vadd.f32 %v200_v15, %v199_v19  ;;  %s1986_s19 = sld [smem:[#allocation2 + $0x49]]  ;;  %s1988_s20 = sld [smem:[#allocation2 + $0xd]] }
  0x63   :  { %v182_v24 = vmul.f32 %v181_v13, %v180_v17  ;;  %v210_v27 = vmul.f32 %v209_v22, %v1833_v0  ;;  %v203_v29 = vstv %s1919_s27  ;;  %v220_v30 = vstv %s1924_s28  ;;  %s1991_s22 = sld [smem:[#allocation2 + $0x89]]  ;;  %s1996_s23 = sld [smem:[#allocation2 + $0x4d]] }
  0x64   :  { %v172_v28 = vadd.f32 %v171_v16, %v161_v20  ;;  %v222_v31 = vstv %s1926_s29  ;;  %v193_v32 = vmul.f32 %v192_v21, %v191_v25  ;;  %v202_v33 = vmax.f32 %v201_v26, 0.0  ;;  %s1998_s24 = sld [smem:[#allocation2 + $0x11]]  ;;  %s2001_s25 = sld [smem:[#allocation2 + $0x8d]] }
  0x65   :  { %v212_v34 = vadd.f32 %v211_v23, %v210_v27  ;;  %v221_v35 = vmul.f32 %v220_v30, %v1833_v0  ;;  %v214_v37 = vstv %s1929_s0  ;;  %v231_v38 = vstv %s1934_s7  ;;  %s2006_s3 = sld [smem:[#allocation2 + $0x51]]  ;;  %s2008_s26 = sld [smem:[#allocation2 + $0x15]] }
  0x66   :  { %v183_v36 = vadd.f32 %v182_v24, %v172_v28  ;;  %v233_v39 = vstv %s1936_s8  ;;  %v204_v40 = vmul.f32 %v203_v29, %v202_v33  ;;  %v232_v43 = vmul.f32 %v231_v38, %v1833_v0  ;;  %s2011_s27 = sld [smem:[#allocation2 + $0x91]]  ;;  %s2016_s28 = sld [smem:[#allocation2 + $0x55]] }
  0x67   :  { %v213_v41 = vmax.f32 %v212_v34, 0.0  ;;  %v223_v42 = vadd.f32 %v222_v31, %v221_v35  ;;  %v225_v45 = vstv %s1939_s9  ;;  %v242_v46 = vstv %s1944_s10  ;;  %s2018_s29 = sld [smem:[#allocation2 + $0x19]]  ;;  %s2021_s0 = sld [smem:[#allocation2 + $0x95]] }
  0x68   :  { %v194_v44 = vadd.f32 %v193_v32, %v183_v36  ;;  %v244_v47 = vstv %s1946_s11  ;;  %v234_v51 = vadd.f32 %v233_v39, %v232_v43  ;;  %v243_v52 = vmul.f32 %v242_v46, %v1833_v0  ;;  %s2026_s7 = sld [smem:[#allocation2 + $0x59]]  ;;  %s2028_s8 = sld [smem:[#allocation2 + $0x1d]] }
  0x69   :  { %v215_v49 = vmul.f32 %v214_v37, %v213_v41  ;;  %v224_v50 = vmax.f32 %v223_v42, 0.0  ;;  %v236_v54 = vstv %s1949_s12  ;;  %v247_v55 = vstv %s1954_s13  ;;  %s2031_s9 = sld [smem:[#allocation2 + $0x99]]  ;;  %s2036_s10 = sld [smem:[#allocation2 + $0x5d]] }
  0x6a   :  { %v205_v53 = vadd.f32 %v204_v40, %v194_v44  ;;  %v260_v56 = vstv %s1956_s14  ;;  %v235_v58 = vmax.f32 %v234_v51, 0.0  ;;  %v245_v59 = vadd.f32 %v244_v47, %v243_v52  ;;  %s2038_s11 = sld [smem:[#allocation2 + $0x21]]  ;;  %s2041_s12 = sld [smem:[#allocation2 + $0x9d]] }
  0x6b   :  { %v226_v57 = vmul.f32 %v225_v45, %v224_v50  ;;  %v261_v60 = vmul.f32 %v260_v56, %v1984_v48  ;;  %v251_v61 = vstv %s1959_s15  ;;  %v262_v62 = vstv %s1964_s16  ;;  %s2048_s13 = sld [smem:[#allocation2 + $0x61]]  ;;  %s2050_s14 = sld [smem:[#allocation2 + $0x25]] }
  0x6c   :  { %v216_v0 = vadd.f32 %v215_v49, %v205_v53  ;;  %v271_v63 = vstv %s1966_s17  ;;  %v237_v1 = vmul.f32 %v236_v54, %v235_v58  ;;  %v246_v2 = vmax.f32 %v245_v59, 0.0  ;;  %s2052_s15 = sld [smem:[#allocation2 + $0xa1]]  ;;  %s2059_s16 = sld [smem:[#allocation2 + $0x65]] }
  0x6d   :  { %v263_v3 = vadd.f32 %v262_v62, %v261_v60  ;;  %v272_v4 = vmul.f32 %v271_v63, %v1984_v48  ;;  %v265_v6 = vstv %s1969_s1  ;;  %v273_v7 = vstv %s1974_s21  ;;  %s2061_s17 = sld [smem:[#allocation2 + $0x29]]  ;;  %s2064_s1 = sld [smem:[#allocation2 + $0xa5]] }
  0x6e   :  { %v227_v5 = vadd.f32 %v226_v57, %v216_v0  ;;  %v282_v8 = vstv %s1976_s18  ;;  %v248_v9 = vmul.f32 %v247_v55, %v246_v2  ;;  %v276_v14 = vstv %s1979_s2  ;;  %s2069_s21 = sld [smem:[#allocation2 + $0x69]]  ;;  %s2071_s18 = sld [smem:[#allocation2 + $0x2d]] }
  0x6f   :  { %v264_v10 = vmax.f32 %v263_v3, 0.0  ;;  %v274_v11 = vadd.f32 %v273_v7, %v272_v4  ;;  %v283_v12 = vmul.f32 %v282_v8, %v1984_v48  ;;  %v284_v15 = vstv %s1986_s19  ;;  %s2074_s2 = sld [smem:[#allocation2 + $0xa9]]  ;;  %s2079_s19 = sld [smem:[#allocation2 + $0x6d]] }
  0x70   :  { %v238_v13 = vadd.f32 %v237_v1, %v227_v5  ;;  %v293_v16 = vstv %s1988_s20  ;;  %v287_v22 = vstv %s1991_s22  ;;  %v295_v23 = vstv %s1996_s23  ;;  %s2081_s20 = sld [smem:[#allocation2 + $0x31]]  ;;  %s2084_s22 = sld [smem:[#allocation2 + $0xad]] }
  0x71   :  { %v266_v17 = vmul.f32 %v265_v6, %v264_v10  ;;  %v275_v18 = vmax.f32 %v274_v11, 0.0  ;;  %v285_v19 = vadd.f32 %v284_v15, %v283_v12  ;;  %v294_v20 = vmul.f32 %v293_v16, %v1984_v48  ;;  %s2089_s23 = sld [smem:[#allocation2 + $0x71]] }
  0x72   :  { %v249_v21 = vadd.f32 %v248_v9, %v238_v13  ;;  %v304_v24 = vstv %s1998_s24  ;;  %v298_v30 = vstv %s2001_s25  ;;  %v306_v31 = vstv %s2006_s3  ;;  %s2091_s24 = sld [smem:[#allocation2 + $0x35]]  ;;  %s2094_s25 = sld [smem:[#allocation2 + $0xb1]] }
  0x73   :  { %v277_v25 = vmul.f32 %v276_v14, %v275_v18  ;;  %v286_v26 = vmax.f32 %v285_v19, 0.0  ;;  %v296_v27 = vadd.f32 %v295_v23, %v294_v20  ;;  %v305_v28 = vmul.f32 %v304_v24, %v1984_v48  ;;  %s2099_s3 = sld [smem:[#allocation2 + $0x75]] }
  0x74   :  { %v2043_v29 = vadd.f32 %v251_v61, %v249_v21  ;;  %v315_v32 = vstv %s2008_s26  ;;  %v309_v37 = vstv %s2011_s27  ;;  %v317_v39 = vstv %s2016_s28  ;;  %s2101_s26 = sld [smem:[#allocation2 + $0x39]]  ;;  %s2104_s27 = sld [smem:[#allocation2 + $0xb5]] }
  0x75   :  { %v278_v33 = vadd.f32 %v277_v25, %v266_v17  ;;  %v288_v34 = vmul.f32 %v287_v22, %v286_v26  ;;  %v297_v35 = vmax.f32 %v296_v27, 0.0  ;;  %v307_v36 = vadd.f32 %v306_v31, %v305_v28  ;;  %s2109_s28 = sld [smem:[#allocation2 + $0x79]] }
  0x76   :  { %253 = vst [vmem:[#allocation10] sm:$0x1] %v2043_v29  ;;  %v316_v38 = vmul.f32 %v315_v32, %v1984_v48  ;;  %v326_v40 = vstv %s2018_s29  ;;  %v320_v46 = vstv %s2021_s0  ;;  %v328_v47 = vstv %s2026_s7  ;;  %s2111_s29 = sld [smem:[#allocation2 + $0x3d]]  ;;  %s2114_s0 = sld [smem:[#allocation2 + $0xb9]] }
  0x77   :  { %v289_v41 = vadd.f32 %v288_v34, %v278_v33  ;;  %v299_v42 = vmul.f32 %v298_v30, %v297_v35  ;;  %v308_v43 = vmax.f32 %v307_v36, 0.0  ;;  %v327_v44 = vmul.f32 %v326_v40, %v1984_v48  ;;  %s2119_s7 = sld [smem:[#allocation2 + $0x7d]] }
  0x78   :  { %v318_v45 = vadd.f32 %v317_v39, %v316_v38  ;;  %v337_v49 = vstv %s2028_s8  ;;  %v331_v55 = vstv %s2031_s9  ;;  %v339_v56 = vstv %s2036_s10  ;;  %s2121_s8 = sld [smem:[#allocation2 + $0xbd]]  ;;  %s2124_s9 = sld [smem:[#allocation2 + $0x2]] }
  0x79   :  { %v300_v50 = vadd.f32 %v299_v42, %v289_v41  ;;  %v310_v51 = vmul.f32 %v309_v37, %v308_v43  ;;  %v329_v52 = vadd.f32 %v328_v47, %v327_v44  ;;  %v338_v53 = vmul.f32 %v337_v49, %v1984_v48  ;;  %s2129_s10 = sld [smem:[#allocation2 + $0xc1]] }
  0x7a   :  { %v319_v54 = vmax.f32 %v318_v45, 0.0  ;;  %v348_v57 = vstv %s2038_s11  ;;  %v342_v62 = vstv %s2041_s12  ;;  %v350_v63 = vstv %s2048_s13  ;;  %s2131_s11 = sld [smem:[#allocation2 + $0x42]]  ;;  %s2134_s12 = sld [smem:[#allocation2 + $0x6]] }
  0x7b   :  { %v311_v58 = vadd.f32 %v310_v51, %v300_v50  ;;  %v330_v59 = vmax.f32 %v329_v52, 0.0  ;;  %v340_v60 = vadd.f32 %v339_v56, %v338_v53  ;;  %v349_v0 = vmul.f32 %v348_v57, %v1984_v48  ;;  %s2136_s13 = sld [smem:[#allocation2 + $0x46]]  ;;  %v2153_v52 = vld [vmem:[#allocation6 + $0x2] sm:$0x1] }
  0x7c   :  { %v321_v61 = vmul.f32 %v320_v46, %v319_v54  ;;  %v359_v1 = vstv %s2050_s14  ;;  %v353_v7 = vstv %s2052_s15  ;;  %v361_v8 = vstv %s2059_s16  ;;  %s2141_s14 = sld [smem:[#allocation2 + $0x82]]  ;;  %s2143_s15 = sld [smem:[#allocation2 + $0x86]] }
  0x7d   :  { %v332_v2 = vmul.f32 %v331_v55, %v330_v59  ;;  %v341_v3 = vmax.f32 %v340_v60, 0.0  ;;  %v351_v4 = vadd.f32 %v350_v63, %v349_v0  ;;  %v360_v5 = vmul.f32 %v359_v1, %v1984_v48  ;;  %s2146_s16 = sld [smem:[#allocation2 + $0xa]] }
  0x7e   :  { %v322_v6 = vadd.f32 %v321_v61, %v311_v58  ;;  %v370_v9 = vstv %s2061_s17  ;;  %v364_v15 = vstv %s2064_s1  ;;  %v372_v16 = vstv %s2069_s21  ;;  %s2148_s17 = sld [smem:[#allocation2 + $0x4a]]  ;;  %s2157_s21 = sld [smem:[#allocation2 + $0xe]] }
  0x7f   :  { %v343_v10 = vmul.f32 %v342_v62, %v341_v3  ;;  %v352_v11 = vmax.f32 %v351_v4, 0.0  ;;  %v362_v12 = vadd.f32 %v361_v8, %v360_v5  ;;  %v371_v13 = vmul.f32 %v370_v9, %v1984_v48  ;;  %s2155_s1 = sld [smem:[#allocation2 + $0x8a]] }
  0x80   :  { %v333_v14 = vadd.f32 %v332_v2, %v322_v6  ;;  %v381_v17 = vstv %s2071_s18  ;;  %v375_v23 = vstv %s2074_s2  ;;  %v383_v24 = vstv %s2079_s19  ;;  %s2160_s18 = sld [smem:[#allocation2 + $0x4e]]  ;;  %s2162_s2 = sld [smem:[#allocation2 + $0x12]] }
  0x81   :  { %v354_v18 = vmul.f32 %v353_v7, %v352_v11  ;;  %v363_v19 = vmax.f32 %v362_v12, 0.0  ;;  %v373_v20 = vadd.f32 %v372_v16, %v371_v13  ;;  %v382_v21 = vmul.f32 %v381_v17, %v1984_v48  ;;  %s2168_s19 = sld [smem:[#allocation2 + $0x8e]] }
  0x82   :  { %v344_v22 = vadd.f32 %v343_v10, %v333_v14  ;;  %v392_v25 = vstv %s2081_s20  ;;  %v386_v32 = vstv %s2084_s22  ;;  %v394_v33 = vstv %s2089_s23  ;;  %s2170_s20 = sld [smem:[#allocation2 + $0x52]]  ;;  %s2175_s22 = sld [smem:[#allocation2 + $0x16]] }
  0x83   :  { %v365_v26 = vmul.f32 %v364_v15, %v363_v19  ;;  %v374_v27 = vmax.f32 %v373_v20, 0.0  ;;  %v384_v28 = vadd.f32 %v383_v24, %v382_v21  ;;  %v393_v30 = vmul.f32 %v392_v25, %v1984_v48  ;;  %s2179_s23 = sld [smem:[#allocation2 + $0x56]] }
  0x84   :  { %v355_v31 = vadd.f32 %v354_v18, %v344_v22  ;;  %v403_v34 = vstv %s2091_s24  ;;  %v397_v40 = vstv %s2094_s25  ;;  %v405_v41 = vstv %s2099_s3  ;;  %s2183_s24 = sld [smem:[#allocation2 + $0x92]]  ;;  %s2191_s3 = sld [smem:[#allocation2 + $0x96]] }
  0x85   :  { %v376_v35 = vmul.f32 %v375_v23, %v374_v27  ;;  %v385_v36 = vmax.f32 %v384_v28, 0.0  ;;  %v395_v37 = vadd.f32 %v394_v33, %v393_v30  ;;  %v404_v38 = vmul.f32 %v403_v34, %v1984_v48  ;;  %s2188_s25 = sld [smem:[#allocation2 + $0x1a]] }
  0x86   :  { %v366_v39 = vadd.f32 %v365_v26, %v355_v31  ;;  %v414_v42 = vstv %s2101_s26  ;;  %v408_v49 = vstv %s2104_s27  ;;  %v416_v50 = vstv %s2109_s28  ;;  %s2193_s26 = sld [smem:[#allocation2 + $0x5a]]  ;;  %s2199_s27 = sld [smem:[#allocation2 + $0x1e]] }
  0x87   :  { %v387_v43 = vmul.f32 %v386_v32, %v385_v36  ;;  %v396_v44 = vmax.f32 %v395_v37, 0.0  ;;  %v406_v45 = vadd.f32 %v405_v41, %v404_v38  ;;  %v415_v46 = vmul.f32 %v414_v42, %v1984_v48  ;;  %s2201_s28 = sld [smem:[#allocation2 + $0x9a]] }
  0x88   :  { %v377_v47 = vadd.f32 %v376_v35, %v366_v39  ;;  %v425_v51 = vstv %s2111_s29  ;;  %v419_v58 = vstv %s2114_s0  ;;  %v427_v59 = vstv %s2119_s7  ;;  %s2203_s29 = sld [smem:[#allocation2 + $0x5e]]  ;;  %s2209_s0 = sld [smem:[#allocation2 + $0x22]] }
  0x89   :  { %v398_v53 = vmul.f32 %v397_v40, %v396_v44  ;;  %v407_v54 = vmax.f32 %v406_v45, 0.0  ;;  %v417_v55 = vadd.f32 %v416_v50, %v415_v46  ;;  %v426_v56 = vmul.f32 %v425_v51, %v1984_v48  ;;  %s2211_s7 = sld [smem:[#allocation2 + $0x62]] }
  0x8a   :  { %v388_v57 = vadd.f32 %v387_v43, %v377_v47  ;;  %v430_v60 = vstv %s2121_s8  ;;  %v444_v63 = vstv %s2124_s9  ;;  %v434_v1 = vstv %s2129_s10  ;;  %s2214_s8 = sld [smem:[#allocation2 + $0x9e]]  ;;  %s2216_s9 = sld [smem:[#allocation2 + $0xa2]] }
  0x8b   :  { %v409_v0 = vmul.f32 %v408_v49, %v407_v54  ;;  %v418_v61 = vmax.f32 %v417_v55, 0.0  ;;  %v428_v62 = vadd.f32 %v427_v59, %v426_v56  ;;  %v445_v2 = vmul.f32 %v444_v63, %v2153_v52  ;;  %s2220_s10 = sld [smem:[#allocation2 + $0x26]] }
  0x8c   :  { %v399_v48 = vadd.f32 %v398_v53, %v388_v57  ;;  %v446_v3 = vstv %s2131_s11  ;;  %v455_v6 = vstv %s2134_s12  ;;  %v457_v7 = vstv %s2136_s13  ;;  %s2222_s11 = sld [smem:[#allocation2 + $0x66]]  ;;  %s2231_s13 = sld [smem:[#allocation2 + $0x2a]] }
  0x8d   :  { %v420_v4 = vmul.f32 %v419_v58, %v418_v61  ;;  %v429_v5 = vmax.f32 %v428_v62, 0.0  ;;  %v447_v9 = vadd.f32 %v446_v3, %v445_v2  ;;  %v449_v10 = vstv %s2141_s14  ;;  %s2228_s12 = sld [smem:[#allocation2 + $0xa6]]  ;;  %s2233_s14 = sld [smem:[#allocation2 + $0x6a]] }
  0x8e   :  { %v410_v8 = vadd.f32 %v409_v0, %v399_v48  ;;  %v456_v11 = vmul.f32 %v455_v6, %v2153_v52  ;;  %v460_v13 = vstv %s2143_s15  ;;  %v466_v14 = vstv %s2146_s16  ;;  %s2238_s15 = sld [smem:[#allocation2 + $0xaa]]  ;;  %s2241_s16 = sld [smem:[#allocation2 + $0x2e]] }
  0x8f   :  { %v431_v12 = vmul.f32 %v430_v60, %v429_v5  ;;  %v468_v15 = vstv %s2148_s17  ;;  %v448_v17 = vmax.f32 %v447_v9, 0.0  ;;  %v467_v19 = vmul.f32 %v466_v14, %v2153_v52  ;;  %s2243_s17 = sld [smem:[#allocation2 + $0x6e]] }
  0x90   :  { %v421_v16 = vadd.f32 %v420_v4, %v410_v8  ;;  %v458_v18 = vadd.f32 %v457_v7, %v456_v11  ;;  %v471_v20 = vstv %s2155_s1  ;;  %v477_v21 = vstv %s2157_s21  ;;  %s2248_s1 = sld [smem:[#allocation2 + $0xae]]  ;;  %s2252_s21 = sld [smem:[#allocation2 + $0x32]] }
  0x91   :  { %v479_v22 = vstv %s2160_s18  ;;  %v488_v23 = vstv %s2162_s2  ;;  %v450_v25 = vmul.f32 %v449_v10, %v448_v17  ;;  %v469_v27 = vadd.f32 %v468_v15, %v467_v19  ;;  %s2254_s18 = sld [smem:[#allocation2 + $0x72]] }
  0x92   :  { %v432_v24 = vadd.f32 %v431_v12, %v421_v16  ;;  %v459_v26 = vmax.f32 %v458_v18, 0.0  ;;  %v478_v28 = vmul.f32 %v477_v21, %v2153_v52  ;;  %v482_v30 = vstv %s2168_s19  ;;  %s2258_s2 = sld [smem:[#allocation2 + $0xb2]]  ;;  %s2263_s19 = sld [smem:[#allocation2 + $0x36]] }
  0x93   :  { %v489_v31 = vmul.f32 %v488_v23, %v2153_v52  ;;  %v490_v32 = vstv %s2170_s20  ;;  %v470_v35 = vmax.f32 %v469_v27, 0.0  ;;  %v499_v36 = vstv %s2175_s22  ;;  %s2265_s20 = sld [smem:[#allocation2 + $0x76]] }
  0x94   :  { %v435_v33 = vadd.f32 %v434_v1, %v432_v24  ;;  %v461_v34 = vmul.f32 %v460_v13, %v459_v26  ;;  %v480_v37 = vadd.f32 %v479_v22, %v478_v28  ;;  %v500_v39 = vmul.f32 %v499_v36, %v2153_v52  ;;  %s2268_s22 = sld [smem:[#allocation2 + $0xb6]] }
  0x95   :  { %v491_v38 = vadd.f32 %v490_v32, %v489_v31  ;;  %v501_v40 = vstv %s2179_s23  ;;  %v472_v43 = vmul.f32 %v471_v20, %v470_v35  ;;  %v493_v44 = vstv %s2183_s24  ;;  %s2273_s23 = sld [smem:[#allocation2 + $0x3a]] }
  0x96   :  { %437 = vst [vmem:[#allocation10 + $0x1] sm:$0x1] %v435_v33  ;;  %v2225_v41 = vadd.f32 %v435_v33, %v2043_v29  ;;  %v462_v42 = vadd.f32 %v461_v34, %v450_v25  ;;  %v481_v45 = vmax.f32 %v480_v37, 0.0  ;;  %v502_v47 = vadd.f32 %v501_v40, %v500_v39  ;;  %s2275_s24 = sld [smem:[#allocation2 + $0x7a]] }
  0x97   :  { %v492_v46 = vmax.f32 %v491_v38, 0.0  ;;  %v510_v49 = vstv %s2188_s25  ;;  %v504_v51 = vstv %s2191_s3  ;;  %v512_v53 = vstv %s2193_s26  ;;  %s2278_s25 = sld [smem:[#allocation2 + $0xba]]  ;;  %s2283_s3 = sld [smem:[#allocation2 + $0x3e]] }
  0x98   :  { %v473_v50 = vadd.f32 %v472_v43, %v462_v42  ;;  %v511_v29 = vmul.f32 %v510_v49, %v2153_v52  ;;  %v483_v54 = vmul.f32 %v482_v30, %v481_v45  ;;  %v503_v56 = vmax.f32 %v502_v47, 0.0  ;;  %s2285_s26 = sld [smem:[#allocation2 + $0x7e]] }
  0x99   :  { %v494_v55 = vmul.f32 %v493_v44, %v492_v46  ;;  %v521_v57 = vstv %s2199_s27  ;;  %v515_v59 = vstv %s2201_s28  ;;  %v523_v0 = vstv %s2203_s29  ;;  %s2288_s27 = sld [smem:[#allocation2 + $0xbe]]  ;;  %s2293_s28 = sld [smem:[#allocation2 + $0x3]] }
  0x9a   :  { %v513_v58 = vadd.f32 %v512_v53, %v511_v29  ;;  %v522_v60 = vmul.f32 %v521_v57, %v2153_v52  ;;  %v484_v61 = vadd.f32 %v483_v54, %v473_v50  ;;  %v505_v62 = vmul.f32 %v504_v51, %v503_v56  ;;  %s2295_s29 = sld [smem:[#allocation2 + $0x43]] }
  0x9b   :  { %v532_v63 = vstv %s2209_s0  ;;  %v534_v48 = vstv %s2211_s7  ;;  %v526_v3 = vstv %s2214_s8  ;;  %v537_v6 = vstv %s2216_s9  ;;  %s2298_s0 = sld [smem:[#allocation2 + $0xc2]]  ;;  %s2303_s7 = sld [smem:[#allocation2 + $0x7]] }
  0x9c   :  { %v514_v1 = vmax.f32 %v513_v58, 0.0  ;;  %v524_v2 = vadd.f32 %v523_v0, %v522_v60  ;;  %v533_v4 = vmul.f32 %v532_v63, %v2153_v52  ;;  %v495_v5 = vadd.f32 %v494_v55, %v484_v61  ;;  %s2305_s8 = sld [smem:[#allocation2 + $0x47]]  ;;  %s2308_s9 = sld [smem:[#allocation2 + $0x83]]  ;;  %v2323_v60 = vld [vmem:[#allocation6 + $0x3] sm:$0x1] }
  0x9d   :  { %v543_v7 = vstv %s2220_s10  ;;  %v545_v8 = vstv %s2222_s11  ;;  %v548_v14 = vstv %s2228_s12  ;;  %v554_v15 = vstv %s2231_s13  ;;  %s2313_s10 = sld [smem:[#allocation2 + $0xb]]  ;;  %s2318_s12 = sld [smem:[#allocation2 + $0x87]] }
  0x9e   :  { %v516_v9 = vmul.f32 %v515_v59, %v514_v1  ;;  %v525_v10 = vmax.f32 %v524_v2, 0.0  ;;  %v535_v11 = vadd.f32 %v534_v48, %v533_v4  ;;  %v544_v12 = vmul.f32 %v543_v7, %v2153_v52  ;;  %s2315_s11 = sld [smem:[#allocation2 + $0x4b]]  ;;  %s2325_s13 = sld [smem:[#allocation2 + $0xf]] }
  0x9f   :  { %v506_v13 = vadd.f32 %v505_v62, %v495_v5  ;;  %v556_v16 = vstv %s2233_s14  ;;  %v555_v20 = vmul.f32 %v554_v15, %v2153_v52  ;;  %v559_v22 = vstv %s2238_s15  ;;  %s2327_s14 = sld [smem:[#allocation2 + $0x4f]]  ;;  %s2330_s15 = sld [smem:[#allocation2 + $0x8b]] }
  0xa0   :  { %v527_v17 = vmul.f32 %v526_v3, %v525_v10  ;;  %v536_v18 = vmax.f32 %v535_v11, 0.0  ;;  %v546_v19 = vadd.f32 %v545_v8, %v544_v12  ;;  %v565_v23 = vstv %s2241_s16  ;;  %s2335_s16 = sld [smem:[#allocation2 + $0x13]] }
  0xa1   :  { %v517_v21 = vadd.f32 %v516_v9, %v506_v13  ;;  %v567_v24 = vstv %s2243_s17  ;;  %v557_v27 = vadd.f32 %v556_v16, %v555_v20  ;;  %v566_v28 = vmul.f32 %v565_v23, %v2153_v52  ;;  %s2337_s17 = sld [smem:[#allocation2 + $0x53]] }
  0xa2   :  { %v538_v25 = vmul.f32 %v537_v6, %v536_v18  ;;  %v547_v26 = vmax.f32 %v546_v19, 0.0  ;;  %v570_v31 = vstv %s2248_s1  ;;  %v576_v32 = vstv %s2252_s21  ;;  %s2340_s1 = sld [smem:[#allocation2 + $0x8f]] }
  0xa3   :  { %v528_v30 = vadd.f32 %v527_v17, %v517_v21  ;;  %v578_v33 = vstv %s2254_s18  ;;  %v558_v35 = vmax.f32 %v557_v27, 0.0  ;;  %v568_v36 = vadd.f32 %v567_v24, %v566_v28  ;;  %s2345_s21 = sld [smem:[#allocation2 + $0x17]] }
  0xa4   :  { %v549_v34 = vmul.f32 %v548_v14, %v547_v26  ;;  %v577_v37 = vmul.f32 %v576_v32, %v2153_v52  ;;  %v581_v39 = vstv %s2258_s2  ;;  %v587_v40 = vstv %s2263_s19  ;;  %s2347_s18 = sld [smem:[#allocation2 + $0x57]]  ;;  %s2353_s2 = sld [smem:[#allocation2 + $0x93]] }
  0xa5   :  { %v539_v38 = vadd.f32 %v538_v25, %v528_v30  ;;  %v589_v42 = vstv %s2265_s20  ;;  %v560_v43 = vmul.f32 %v559_v22, %v558_v35  ;;  %v569_v44 = vmax.f32 %v568_v36, 0.0  ;;  %s2355_s19 = sld [smem:[#allocation2 + $0x1b]]  ;;  %s2358_s20 = sld [smem:[#allocation2 + $0x97]] }
  0xa6   :  { %v579_v45 = vadd.f32 %v578_v33, %v577_v37  ;;  %v588_v46 = vmul.f32 %v587_v40, %v2153_v52  ;;  %v592_v49 = vstv %s2268_s22  ;;  %v598_v50 = vstv %s2273_s23  ;;  %s2363_s22 = sld [smem:[#allocation2 + $0x5b]]  ;;  %s2365_s23 = sld [smem:[#allocation2 + $0x1f]] }
  0xa7   :  { %v550_v47 = vadd.f32 %v549_v34, %v539_v38  ;;  %v600_v51 = vstv %s2275_s24  ;;  %v571_v29 = vmul.f32 %v570_v31, %v569_v44  ;;  %v599_v55 = vmul.f32 %v598_v50, %v2153_v52  ;;  %s2368_s24 = sld [smem:[#allocation2 + $0x9b]] }
  0xa8   :  { %v580_v53 = vmax.f32 %v579_v45, 0.0  ;;  %v590_v54 = vadd.f32 %v589_v42, %v588_v46  ;;  %v603_v57 = vstv %s2278_s25  ;;  %v609_v58 = vstv %s2283_s3  ;;  %s2373_s25 = sld [smem:[#allocation2 + $0x5f]]  ;;  %s2375_s3 = sld [smem:[#allocation2 + $0x23]] }
  0xa9   :  { %v561_v56 = vadd.f32 %v560_v43, %v550_v47  ;;  %v611_v59 = vstv %s2285_s26  ;;  %v601_v62 = vadd.f32 %v600_v51, %v599_v55  ;;  %v610_v63 = vmul.f32 %v609_v58, %v2153_v52  ;;  %s2378_s26 = sld [smem:[#allocation2 + $0x9f]] }
  0xaa   :  { %v582_v0 = vmul.f32 %v581_v39, %v580_v53  ;;  %v591_v61 = vmax.f32 %v590_v54, 0.0  ;;  %v614_v1 = vstv %s2288_s27  ;;  %v628_v2 = vstv %s2293_s28  ;;  %s2383_s27 = sld [smem:[#allocation2 + $0x63]]  ;;  %s2385_s28 = sld [smem:[#allocation2 + $0x27]] }
  0xab   :  { %v572_v48 = vadd.f32 %v571_v29, %v561_v56  ;;  %v630_v3 = vstv %s2295_s29  ;;  %v602_v5 = vmax.f32 %v601_v62, 0.0  ;;  %v612_v6 = vadd.f32 %v611_v59, %v610_v63  ;;  %s2387_s29 = sld [smem:[#allocation2 + $0xa3]] }
  0xac   :  { %v593_v4 = vmul.f32 %v592_v49, %v591_v61  ;;  %v629_v7 = vmul.f32 %v628_v2, %v2323_v60  ;;  %v618_v8 = vstv %s2298_s0  ;;  %v639_v9 = vstv %s2303_s7  ;;  %s2395_s0 = sld [smem:[#allocation2 + $0x67]]  ;;  %s2397_s7 = sld [smem:[#allocation2 + $0x2b]] }
  0xad   :  { %v583_v52 = vadd.f32 %v582_v0, %v572_v48  ;;  %v641_v10 = vstv %s2305_s8  ;;  %v604_v11 = vmul.f32 %v603_v57, %v602_v5  ;;  %v613_v12 = vmax.f32 %v612_v6, 0.0  ;;  %s2400_s8 = sld [smem:[#allocation2 + $0xa7]] }
  0xae   :  { %v631_v13 = vadd.f32 %v630_v3, %v629_v7  ;;  %v640_v14 = vmul.f32 %v639_v9, %v2323_v60  ;;  %v633_v16 = vstv %s2308_s9  ;;  %v650_v17 = vstv %s2313_s10  ;;  %s2405_s9 = sld [smem:[#allocation2 + $0x6b]]  ;;  %s2407_s10 = sld [smem:[#allocation2 + $0x2f]] }
  0xaf   :  { %v594_v15 = vadd.f32 %v593_v4, %v583_v52  ;;  %v652_v18 = vstv %s2315_s11  ;;  %v615_v19 = vmul.f32 %v614_v1, %v613_v12  ;;  %v651_v22 = vmul.f32 %v650_v17, %v2323_v60  ;;  %s2410_s11 = sld [smem:[#allocation2 + $0xab]] }
  0xb0   :  { %v632_v20 = vmax.f32 %v631_v13, 0.0  ;;  %v642_v21 = vadd.f32 %v641_v10, %v640_v14  ;;  %v644_v24 = vstv %s2318_s12  ;;  %v661_v25 = vstv %s2325_s13  ;;  %s2415_s12 = sld [smem:[#allocation2 + $0x6f]]  ;;  %s2417_s13 = sld [smem:[#allocation2 + $0x33]] }
  0xb1   :  { %v605_v23 = vadd.f32 %v604_v11, %v594_v15  ;;  %v663_v26 = vstv %s2327_s14  ;;  %v653_v30 = vadd.f32 %v652_v18, %v651_v22  ;;  %v662_v31 = vmul.f32 %v661_v25, %v2323_v60  ;;  %s2420_s14 = sld [smem:[#allocation2 + $0xaf]] }
  0xb2   :  { %v634_v27 = vmul.f32 %v633_v16, %v632_v20  ;;  %v643_v28 = vmax.f32 %v642_v21, 0.0  ;;  %v655_v33 = vstv %s2330_s15  ;;  %v672_v34 = vstv %s2335_s16  ;;  %s2425_s15 = sld [smem:[#allocation2 + $0x73]]  ;;  %s2427_s16 = sld [smem:[#allocation2 + $0x37]] }
  0xb3   :  { %v616_v32 = vadd.f32 %v615_v19, %v605_v23  ;;  %v674_v35 = vstv %s2337_s17  ;;  %v654_v37 = vmax.f32 %v653_v30, 0.0  ;;  %v664_v38 = vadd.f32 %v663_v26, %v662_v31  ;;  %s2430_s17 = sld [smem:[#allocation2 + $0xb3]] }
  0xb4   :  { %v645_v36 = vmul.f32 %v644_v24, %v643_v28  ;;  %v673_v39 = vmul.f32 %v672_v34, %v2323_v60  ;;  %v666_v42 = vstv %s2340_s1  ;;  %v683_v43 = vstv %s2345_s21  ;;  %s2435_s1 = sld [smem:[#allocation2 + $0x77]]  ;;  %s2437_s21 = sld [smem:[#allocation2 + $0x3b]] }
  0xb5   :  { %v619_v40 = vadd.f32 %v618_v8, %v616_v32  ;;  %v685_v44 = vstv %s2347_s18  ;;  %v656_v46 = vmul.f32 %v655_v33, %v654_v37  ;;  %v665_v47 = vmax.f32 %v664_v38, 0.0  ;;  %s2440_s18 = sld [smem:[#allocation2 + $0xb7]] }
  0xb6   :  { %v646_v45 = vadd.f32 %v645_v36, %v634_v27  ;;  %v675_v49 = vadd.f32 %v674_v35, %v673_v39  ;;  %v677_v51 = vstv %s2353_s2  ;;  %v684_v29 = vmul.f32 %v683_v43, %v2323_v60  ;;  %s2445_s2 = sld [smem:[#allocation2 + $0x7b]] }
  0xb7   :  { %621 = vst [vmem:[#allocation10 + $0x2] sm:$0x1] %v619_v40  ;;  %v2390_v50 = vadd.f32 %v619_v40, %v2225_v41  ;;  %v694_v53 = vstv %s2355_s19  ;;  %v667_v55 = vmul.f32 %v666_v42, %v665_v47  ;;  %v688_v58 = vstv %s2358_s20  ;;  %s2447_s19 = sld [smem:[#allocation2 + $0x3f]]  ;;  %s2450_s20 = sld [smem:[#allocation2 + $0xbb]] }
  0xb8   :  { %v657_v54 = vadd.f32 %v656_v46, %v646_v45  ;;  %v676_v56 = vmax.f32 %v675_v49, 0.0  ;;  %v695_v57 = vmul.f32 %v694_v53, %v2323_v60  ;;  %v686_v41 = vadd.f32 %v685_v44, %v684_v29 }
  0xb9   :  { %v696_v59 = vstv %s2363_s22  ;;  %v705_v0 = vstv %s2365_s23  ;;  %v699_v2 = vstv %s2368_s24  ;;  %v707_v3 = vstv %s2373_s25  ;;  %s2455_s22 = sld [smem:[#allocation2 + $0x7f]]  ;;  %s2460_s24 = sld [smem:[#allocation2 + $0xc4]] }
  0xba   :  { %v668_v61 = vadd.f32 %v667_v55, %v657_v54  ;;  %v678_v62 = vmul.f32 %v677_v51, %v676_v56  ;;  %v697_v63 = vadd.f32 %v696_v59, %v695_v57  ;;  %v706_v48 = vmul.f32 %v705_v0, %v2323_v60  ;;  %s2457_s23 = sld [smem:[#allocation2 + $0xbf]]  ;;  %s2465_s25 = sld [smem:[#allocation2 + $0xc5]] }
  0xbb   :  { %v687_v1 = vmax.f32 %v686_v41, 0.0  ;;  %v716_v4 = vstv %s2375_s3  ;;  %v710_v9 = vstv %s2378_s26  ;;  %v718_v10 = vstv %s2383_s27  ;;  %s2467_s3 = sld [smem:[#allocation2 + $0xc6]]  ;;  %s2473_s26 = sld [smem:[#allocation2 + $0xc7]] }
  0xbc   :  { %v679_v5 = vadd.f32 %v678_v62, %v668_v61  ;;  %v698_v6 = vmax.f32 %v697_v63, 0.0  ;;  %v708_v7 = vadd.f32 %v707_v3, %v706_v48  ;;  %v717_v52 = vmul.f32 %v716_v4, %v2323_v60  ;;  %s2475_s27 = sld [smem:[#allocation2 + $0xc8]]  ;;  %v807_v3 = vld [vmem:[#allocation7] sm:$0x1] }
  0xbd   :  { %v689_v8 = vmul.f32 %v688_v58, %v687_v1  ;;  %v727_v11 = vstv %s2385_s28  ;;  %v721_v17 = vstv %s2387_s29  ;;  %v729_v18 = vstv %s2395_s0  ;;  %s2481_s28 = sld [smem:[#allocation2 + $0xc9]]  ;;  %s2484_s29 = sld [smem:[#allocation2 + $0xc3]] }
  0xbe   :  { %v700_v12 = vmul.f32 %v699_v2, %v698_v6  ;;  %v709_v13 = vmax.f32 %v708_v7, 0.0  ;;  %v719_v14 = vadd.f32 %v718_v10, %v717_v52  ;;  %v728_v15 = vmul.f32 %v727_v11, %v2323_v60  ;;  %v813_v52 = vld [vmem:[#allocation7 + $0x1] sm:$0x1]  ;;  %s2489_s0 = sld [smem:[#allocation2 + $0xca]] }
  0xbf   :  { %v690_v16 = vadd.f32 %v689_v8, %v679_v5  ;;  %v738_v19 = vstv %s2397_s7  ;;  %v732_v25 = vstv %s2400_s8  ;;  %v740_v26 = vstv %s2405_s9  ;;  %v819_v8 = vld [vmem:[#allocation7 + $0x2] sm:$0x1]  ;;  %s2494_s7 = sld [smem:[#allocation2 + $0xcb]]  ;;  %s2498_s8 = sld [smem:[#allocation2 + $0xcc]] }
  0xc0   :  { %v711_v20 = vmul.f32 %v710_v9, %v709_v13  ;;  %v720_v21 = vmax.f32 %v719_v14, 0.0  ;;  %v730_v22 = vadd.f32 %v729_v18, %v728_v15  ;;  %v739_v23 = vmul.f32 %v738_v19, %v2323_v60  ;;  %s2501_s9 = sld [smem:[#allocation2 + $0xcd]] }
  0xc1   :  { %v701_v24 = vadd.f32 %v700_v12, %v690_v16  ;;  %v749_v27 = vstv %s2407_s10  ;;  %v743_v34 = vstv %s2410_s11  ;;  %v751_v35 = vstv %s2415_s12  ;;  %v825_v16 = vld [vmem:[#allocation7 + $0x3] sm:$0x1]  ;;  %s2505_s10 = sld [smem:[#allocation2 + $0xce]]  ;;  %s2508_s11 = sld [smem:[#allocation2 + $0xcf]] }
  0xc2   :  { %v722_v28 = vmul.f32 %v721_v17, %v720_v21  ;;  %v731_v30 = vmax.f32 %v730_v22, 0.0  ;;  %v741_v31 = vadd.f32 %v740_v26, %v739_v23  ;;  %v750_v32 = vmul.f32 %v749_v27, %v2323_v60  ;;  %v831_v23 = vld [vmem:[#allocation7 + $0x4] sm:$0x1]  ;;  %s2510_s12 = sld [smem:[#allocation2 + $0xd0]] }
  0xc3   :  { %v712_v33 = vadd.f32 %v711_v20, %v701_v24  ;;  %v760_v36 = vstv %s2417_s13  ;;  %v754_v43 = vstv %s2420_s14  ;;  %v762_v44 = vstv %s2425_s15  ;;  %s2512_s13 = sld [smem:[#allocation2 + $0xd1]]  ;;  %s2514_s14 = sld [smem:[#allocation2 + $0xd2]] }
  0xc4   :  { %v733_v37 = vmul.f32 %v732_v25, %v731_v30  ;;  %v742_v38 = vmax.f32 %v741_v31, 0.0  ;;  %v752_v39 = vadd.f32 %v751_v35, %v750_v32  ;;  %v761_v40 = vmul.f32 %v760_v36, %v2323_v60  ;;  %v837_v30 = vld [vmem:[#allocation7 + $0x5] sm:$0x1]  ;;  %v843_v36 = vld [vmem:[#allocation7 + $0x6] sm:$0x1]  ;;  %s2520_s15 = sld [smem:[#allocation2 + $0xe5]] }
  0xc5   :  { %v723_v42 = vadd.f32 %v722_v28, %v712_v33  ;;  %v771_v45 = vstv %s2427_s16  ;;  %v765_v53 = vstv %s2430_s17  ;;  %v773_v54 = vstv %s2435_s1  ;;  %s2522_s16 = sld [smem:[#allocation2 + $0xe6]]  ;;  %s1735_s17 = smov [#allocation10]  }
  0xc6   :  { %v744_v46 = vmul.f32 %v743_v34, %v742_v38  ;;  %v753_v47 = vmax.f32 %v752_v39, 0.0  ;;  %v763_v49 = vadd.f32 %v762_v44, %v761_v40  ;;  %v772_v51 = vmul.f32 %v771_v45, %v2323_v60  ;;  %s1278_s1 = sshll.u32 %s1735_s17, 4  ;;  %s1279_s1 = int_to_ptr.vmem [resolvable:$true] %s1278_s1 }
  0xc7   :  { %v734_v29 = vadd.f32 %v733_v37, %v723_v42  ;;  %v782_v55 = vstv %s2437_s21  ;;  %v776_v0 = vstv %s2440_s18  ;;  %v784_v61 = vstv %s2445_s2  ;;  %v849_v42 = vld [vmem:[#allocation7 + $0x7] sm:$0x1]  ;;  %s2525_s21 = sld [smem:[#allocation2 + $0xe7]]  ;;  %s1675_s18 = scalar_lea.vmem %s1279_s1, 64 }
  0xc8   :  { %v755_v56 = vmul.f32 %v754_v43, %v753_v47  ;;  %v764_v57 = vmax.f32 %v763_v49, 0.0  ;;  %v774_v41 = vadd.f32 %v773_v54, %v772_v51  ;;  %v783_v58 = vmul.f32 %v782_v55, %v2323_v60  ;;  %v855_v47 = vld [vmem:[#allocation7 + $0x8] sm:$0x1]  ;;  %p1676_p1 = scmp.ne.s32.totalorder %s1279_s1, %s1675_s18  ;;  %p1680_p2 = scmp.lt.s32.totalorder %s1279_s1, %s1279_s1 }
  0xc9   :  { %v745_v59 = vadd.f32 %v744_v46, %v734_v29  ;;  %v793_v62 = vstv %s2447_s19  ;;  %v787_v5 = vstv %s2450_s20  ;;  %v795_v6 = vstv %s2455_s22  ;;  %p1681_p3 = scmp.lt.s32.totalorder %s1675_s18, %s1675_s18 }
  0xca   :  { %v766_v63 = vmul.f32 %v765_v53, %v764_v57  ;;  %v775_v48 = vmax.f32 %v774_v41, 0.0  ;;  %v785_v1 = vadd.f32 %v784_v61, %v783_v58  ;;  %v794_v2 = vmul.f32 %v793_v62, %v2323_v60  ;;  %v861_v53 = vld [vmem:[#allocation7 + $0x9] sm:$0x1] }
  0xcb   :  { %v756_v4 = vadd.f32 %v755_v56, %v745_v59  ;;  %v798_v7 = vstv %s2457_s23  ;;  %v809_v12 = vstv %s2460_s24  ;;  %v815_v14 = vstv %s2465_s25  ;;  %p1682_p4 = por %p1681_p3, %p1680_p2 }
  0xcc   :  { %v777_v9 = vmul.f32 %v776_v0, %v775_v48  ;;  %v786_v10 = vmax.f32 %v785_v1, 0.0  ;;  %v796_v11 = vadd.f32 %v795_v6, %v794_v2  ;;  %v810_v13 = vmul.f32 %v809_v12, %v807_v3 }
  0xcd   :  { %v767_v60 = vadd.f32 %v766_v63, %v756_v4  ;;  %v821_v15 = vstv %s2467_s3  ;;  %v816_v19 = vmul.f32 %v815_v14, %v813_v52  ;;  %v827_v22 = vstv %s2473_s26  ;;  %p1683_p5 = pnand %p1682_p4, %p1676_p1 }
  0xce   :  { %v788_v17 = vmul.f32 %v787_v5, %v786_v10  ;;  %v797_v18 = vmax.f32 %v796_v11, 0.0  ;;  %v822_v20 = vmul.f32 %v821_v15, %v819_v8  ;;  %v833_v24 = vstv %s2475_s27 }
  0xcf   :  { %v778_v21 = vadd.f32 %v777_v9, %v767_v60  ;;  %v817_v26 = vadd.f32 %v816_v19, %v810_v13  ;;  %v828_v27 = vmul.f32 %v827_v22, %v825_v16  ;;  %v839_v31 = vstv %s2481_s28 }
  0xd0   :  { %v799_v25 = vmul.f32 %v798_v7, %v797_v18  ;;  %v802_v32 = vstv %s2484_s29  ;;  %v834_v34 = vmul.f32 %v833_v24, %v831_v23  ;;  %v845_v37 = vstv %s2489_s0 }
  0xd1   :  { %v789_v28 = vadd.f32 %v788_v17, %v778_v21  ;;  %v823_v33 = vadd.f32 %v822_v20, %v817_v26  ;;  %v840_v39 = vmul.f32 %v839_v31, %v837_v30  ;;  %v851_v43 = vstv %s2494_s7 }
  0xd2   :  { %v846_v45 = vmul.f32 %v845_v37, %v843_v36  ;;  %v857_v49 = vstv %s2498_s8  ;;  %v852_v29 = vmul.f32 %v851_v43, %v849_v42  ;;  %v863_v54 = vstv %s2501_s9 }
  0xd3   :  { %v800_v35 = vadd.f32 %v799_v25, %v789_v28  ;;  %v829_v38 = vadd.f32 %v828_v27, %v823_v33  ;;  %v858_v56 = vmul.f32 %v857_v49, %v855_v47 }
  0xd5   :  { %v803_v40 = vadd.f32 %v802_v32, %v800_v35  ;;  %v835_v44 = vadd.f32 %v834_v34, %v829_v38 }
  0xd7   :  { %805 = vst [vmem:[#allocation10 + $0x3] sm:$0x1] %v803_v40  ;;  %v2517_v46 = vadd.f32 %v803_v40, %v2390_v50  ;;  %v841_v51 = vadd.f32 %v840_v39, %v835_v44 }
  0xd9   :  { %v847_v55 = vadd.f32 %v846_v45, %v841_v51 }
  0xda   :  { %1686 = shalt.err (!%p1683_p5)
}
  0xdb   :  { %s1687_s20 = scalar_lea.hbm %s2750_s4, 64 }
  0xdc   :  { %p1688_p6 = scmp.ne.s32.totalorder %s2750_s4, %s1687_s20  ;;  %p1691_p7 = scmp.lt.u32.totalorder %s1687_s20, %s2750_s4 }
  0xde   :  { %p1693_p8 = pnand %p1691_p7, %p1688_p6 }
  0xe0   :  { %1696 = shalt.err (!%p1693_p8)
}
  0xe1   :  { %1284 = dma.vmem_to_hbm [thread:$0]  %s1279_s1, 64, %s2750_s4, [#allocation4], %s1731_s30, %s1731_s30, %s1732_s6   ;;  %v867_v50 = vld [vmem:[#allocation7 + $0xa] sm:$0x1]  ;;  %v853_v41 = vadd.f32 %v852_v29, %v847_v55  ;;  %v864_v58 = vmul.f32 %v863_v54, %v861_v53  ;;  %v873_v59 = vld [vmem:[#allocation7 + $0xb] sm:$0x1] }
  0xe2   :  { %v869_v57 = vstv %s2505_s10  ;;  %s2543_s27 = sld [smem:[#allocation2 + $0xe8]]  ;;  %s2545_s28 = sld [smem:[#allocation2 + $0xe9]]  ;;  %v875_v0 = vstv %s2508_s11  ;;  %v879_v63 = vld [vmem:[#allocation7 + $0xc] sm:$0x1]  ;;  %v881_v48 = vstv %s2510_s12  ;;  %v1001_v1 = vld [vmem:[#allocation9] sm:$0x1]  ;;  %v887_v52 = vstv %s2512_s13 }
  0xe3   :  { %s2548_s29 = sld [smem:[#allocation2 + $0xd3]]  ;;  %s2550_s0 = sld [smem:[#allocation2 + $0xea]]  ;;  %v859_v61 = vadd.f32 %v858_v56, %v853_v41  ;;  %v870_v62 = vmul.f32 %v869_v57, %v867_v50  ;;  %v1007_v2 = vld [vmem:[#allocation9 + $0x1] sm:$0x1]  ;;  %v876_v4 = vmul.f32 %v875_v0, %v873_v59  ;;  %v885_v5 = vld [vmem:[#allocation7 + $0xd] sm:$0x1]  ;;  %v882_v7 = vmul.f32 %v881_v48, %v879_v63 }
  0xe4   :  { %s2553_s4 = sld [smem:[#allocation2 + $0xd4]]  ;;  %s2555_s7 = sld [smem:[#allocation2 + $0xeb]]  ;;  %v1013_v6 = vld [vmem:[#allocation9 + $0x2] sm:$0x1]  ;;  %v1003_v8 = vstv %s2520_s15  ;;  %v1009_v9 = vstv %s2522_s16  ;;  %v1019_v10 = vld [vmem:[#allocation9 + $0x3] sm:$0x1]  ;;  %v1015_v14 = vstv %s2525_s21  ;;  %v893_v15 = vstv %s2514_s14 }
  0xe5   :  { %v865_v3 = vadd.f32 %v864_v58, %v859_v61  ;;  %s2558_s8 = sld [smem:[#allocation2 + $0xd5]]  ;;  %s2562_s9 = sld [smem:[#allocation2 + $0xec]]  ;;  %v891_v12 = vld [vmem:[#allocation7 + $0xe] sm:$0x1]  ;;  %v1004_v60 = vmul.f32 %v1003_v8, %v1001_v1  ;;  %v1010_v13 = vmul.f32 %v1009_v9, %v1007_v2  ;;  %v1016_v16 = vmul.f32 %v1015_v14, %v1013_v6  ;;  %v1025_v18 = vld [vmem:[#allocation9 + $0x4] sm:$0x1] }
  0xe6   :  { %s2566_s10 = sld [smem:[#allocation2 + $0xd6]]  ;;  %s2570_s11 = sld [smem:[#allocation2 + $0xed]]  ;;  %v888_v21 = vmul.f32 %v887_v52, %v885_v5  ;;  %v897_v22 = vld [vmem:[#allocation7 + $0xf] sm:$0x1]  ;;  %v1031_v26 = vld [vmem:[#allocation9 + $0x5] sm:$0x1]  ;;  %v894_v30 = vmul.f32 %v893_v15, %v891_v12 }
  0xe7   :  { %v871_v11 = vadd.f32 %v870_v62, %v865_v3  ;;  %v1011_v23 = vadd.f32 %v1010_v13, %v1004_v60  ;;  %s2573_s12 = sld [smem:[#allocation2 + $0xd7]]  ;;  %s2576_s13 = sld [smem:[#allocation2 + $0xee]]  ;;  %v903_v31 = vld [vmem:[#allocation7 + $0x10] sm:$0x1]  ;;  %v1037_v35 = vld [vmem:[#allocation9 + $0x6] sm:$0x1] }
  0xe8   :  { %v1021_v17 = vstv %s2543_s27  ;;  %v1027_v19 = vstv %s2545_s28  ;;  %s2579_s14 = sld [smem:[#allocation2 + $0xd8]]  ;;  %s2582_s15 = sld [smem:[#allocation2 + $0xef]]  ;;  %v909_v39 = vld [vmem:[#allocation7 + $0x11] sm:$0x1]  ;;  %v1043_v44 = vld [vmem:[#allocation9 + $0x7] sm:$0x1] }
  0xe9   :  { %v877_v20 = vadd.f32 %v876_v4, %v871_v11  ;;  %v1022_v24 = vmul.f32 %v1021_v17, %v1019_v10  ;;  %v899_v25 = vstv %s2548_s29  ;;  %v1033_v27 = vstv %s2550_s0  ;;  %s2585_s16 = sld [smem:[#allocation2 + $0xd9]]  ;;  %s2588_s17 = sld [smem:[#allocation2 + $0xf0]]  ;;  %v915_v51 = vld [vmem:[#allocation7 + $0x12] sm:$0x1]  ;;  %v1049_v55 = vld [vmem:[#allocation9 + $0x8] sm:$0x1] }
  0xea   :  { %v1017_v32 = vadd.f32 %v1016_v16, %v1011_v23  ;;  %v1028_v33 = vmul.f32 %v1027_v19, %v1025_v18  ;;  %v905_v34 = vstv %s2553_s4  ;;  %v1039_v36 = vstv %s2555_s7  ;;  %s2591_s1 = sld [smem:[#allocation2 + $0xda]]  ;;  %s2594_s21 = sld [smem:[#allocation2 + $0xf1]]  ;;  %v921_v41 = vld [vmem:[#allocation7 + $0x13] sm:$0x1]  ;;  %v1055_v61 = vld [vmem:[#allocation9 + $0x9] sm:$0x1] }
  0xeb   :  { %v883_v28 = vadd.f32 %v882_v7, %v877_v20  ;;  %v900_v38 = vmul.f32 %v899_v25, %v897_v22  ;;  %v1034_v42 = vmul.f32 %v1033_v27, %v1031_v26  ;;  %v911_v43 = vstv %s2558_s8  ;;  %s2597_s18 = sld [smem:[#allocation2 + $0xdb]]  ;;  %s2600_s2 = sld [smem:[#allocation2 + $0xf2]]  ;;  %v927_v1 = vld [vmem:[#allocation7 + $0x14] sm:$0x1]  ;;  %v1061_v5 = vld [vmem:[#allocation9 + $0xa] sm:$0x1] }
  0xec   :  { %v1023_v40 = vadd.f32 %v1022_v24, %v1017_v32  ;;  %v1045_v45 = vstv %s2562_s9  ;;  %v906_v49 = vmul.f32 %v905_v34, %v903_v31  ;;  %v1040_v53 = vmul.f32 %v1039_v36, %v1037_v35  ;;  %s2603_s19 = sld [smem:[#allocation2 + $0xdc]]  ;;  %s2606_s20 = sld [smem:[#allocation2 + $0xf3]]  ;;  %v933_v8 = vld [vmem:[#allocation7 + $0x15] sm:$0x1]  ;;  %v1067_v12 = vld [vmem:[#allocation9 + $0xb] sm:$0x1] }
  0xed   :  { %v889_v37 = vadd.f32 %v888_v21, %v883_v28  ;;  %v917_v54 = vstv %s2566_s10  ;;  %v1051_v56 = vstv %s2570_s11  ;;  %v912_v57 = vmul.f32 %v911_v43, %v909_v39  ;;  %s2609_s22 = sld [smem:[#allocation2 + $0xdd]]  ;;  %s2612_s23 = sld [smem:[#allocation2 + $0xf4]]  ;;  %v939_v15 = vld [vmem:[#allocation7 + $0x16] sm:$0x1]  ;;  %v1073_v19 = vld [vmem:[#allocation9 + $0xc] sm:$0x1] }
  0xee   :  { %v1029_v29 = vadd.f32 %v1028_v33, %v1023_v40  ;;  %v1046_v59 = vmul.f32 %v1045_v45, %v1043_v44  ;;  %v923_v0 = vstv %s2573_s12  ;;  %v1057_v62 = vstv %s2576_s13  ;;  %s2615_s24 = sld [smem:[#allocation2 + $0xde]]  ;;  %s2618_s25 = sld [smem:[#allocation2 + $0xf5]]  ;;  %v945_v25 = vld [vmem:[#allocation7 + $0x17] sm:$0x1]  ;;  %v1079_v27 = vld [vmem:[#allocation9 + $0xd] sm:$0x1] }
  0xef   :  { %v895_v47 = vadd.f32 %v894_v30, %v889_v37  ;;  %v918_v48 = vmul.f32 %v917_v54, %v915_v51  ;;  %v1052_v3 = vmul.f32 %v1051_v56, %v1049_v55  ;;  %v929_v4 = vstv %s2579_s14  ;;  %s2622_s3 = sld [smem:[#allocation2 + $0xf6]]  ;;  %v951_v32 = vld [vmem:[#allocation7 + $0x18] sm:$0x1]  ;;  %s2625_s26 = sld [smem:[#allocation2 + $0xdf]]  ;;  %v1085_v36 = vld [vmem:[#allocation9 + $0xe] sm:$0x1] }
  0xf0   :  { %v1035_v58 = vadd.f32 %v1034_v42, %v1029_v29  ;;  %v1063_v6 = vstv %s2582_s15  ;;  %v924_v52 = vmul.f32 %v923_v0, %v921_v41  ;;  %v1058_v10 = vmul.f32 %v1057_v62, %v1055_v61  ;;  %s2628_s27 = sld [smem:[#allocation2 + $0xf7]]  ;;  %v957_v43 = vld [vmem:[#allocation7 + $0x19] sm:$0x1]  ;;  %v1091_v45 = vld [vmem:[#allocation9 + $0xf] sm:$0x1]  ;;  %s2632_s28 = sld [smem:[#allocation2 + $0xf8]] }
  0xf1   :  { %v901_v50 = vadd.f32 %v900_v38, %v895_v47  ;;  %v935_v11 = vstv %s2585_s16  ;;  %v1069_v60 = vstv %s2588_s17  ;;  %v930_v14 = vmul.f32 %v929_v4, %v927_v1  ;;  %v963_v29 = vld [vmem:[#allocation7 + $0x1a] sm:$0x1]  ;;  %s2635_s29 = sld [smem:[#allocation2 + $0xe0]]  ;;  %v1097_v56 = vld [vmem:[#allocation9 + $0x10] sm:$0x1]  ;;  %s2638_s0 = sld [smem:[#allocation2 + $0xf9]] }
  0xf2   :  { %v1041_v2 = vadd.f32 %v1040_v53, %v1035_v58  ;;  %v1064_v17 = vmul.f32 %v1063_v6, %v1061_v5  ;;  %v941_v18 = vstv %s2591_s1  ;;  %v1075_v20 = vstv %s2594_s21  ;;  %v1103_v0 = vld [vmem:[#allocation9 + $0x11] sm:$0x1]  ;;  %s2641_s4 = sld [smem:[#allocation2 + $0xfa]]  ;;  %s2644_s7 = sld [smem:[#allocation2 + $0xe1]]  ;;  %v1109_v4 = vld [vmem:[#allocation9 + $0x12] sm:$0x1] }
  0xf3   :  { %v907_v63 = vadd.f32 %v906_v49, %v901_v50  ;;  %v936_v22 = vmul.f32 %v935_v11, %v933_v8  ;;  %v1070_v24 = vmul.f32 %v1069_v60, %v1067_v12  ;;  %v947_v26 = vstv %s2597_s18  ;;  %s2647_s8 = sld [smem:[#allocation2 + $0xfb]]  ;;  %v1115_v8 = vld [vmem:[#allocation9 + $0x13] sm:$0x1]  ;;  %s2650_s9 = sld [smem:[#allocation2 + $0xfc]]  ;;  %v975_v12 = vld [vmem:[#allocation7 + $0x1c] sm:$0x1] }
  0xf4   :  { %v1047_v9 = vadd.f32 %v1046_v59, %v1041_v2  ;;  %v1081_v28 = vstv %s2600_s2  ;;  %v942_v31 = vmul.f32 %v941_v18, %v939_v15  ;;  %v1076_v34 = vmul.f32 %v1075_v20, %v1073_v19  ;;  %s2653_s10 = sld [smem:[#allocation2 + $0xe2]]  ;;  %v1121_v15 = vld [vmem:[#allocation9 + $0x14] sm:$0x1]  ;;  %s2656_s11 = sld [smem:[#allocation2 + $0xfd]]  ;;  %v1127_v19 = vld [vmem:[#allocation9 + $0x15] sm:$0x1] }
  0xf5   :  { %v913_v7 = vadd.f32 %v912_v57, %v907_v63  ;;  %v953_v35 = vstv %s2603_s19  ;;  %v1087_v37 = vstv %s2606_s20  ;;  %v948_v39 = vmul.f32 %v947_v26, %v945_v25  ;;  %s2659_s12 = sld [smem:[#allocation2 + $0xfe]]  ;;  %s2662_s13 = sld [smem:[#allocation2 + $0xe3]] }
  0xf6   :  { %v1053_v16 = vadd.f32 %v1052_v3, %v1047_v9  ;;  %v1082_v42 = vmul.f32 %v1081_v28, %v1079_v27  ;;  %v959_v44 = vstv %s2609_s22  ;;  %v1093_v47 = vstv %s2612_s23  ;;  %v1133_v27 = vld [vmem:[#allocation9 + $0x16] sm:$0x1]  ;;  %s2665_s14 = sld [smem:[#allocation2 + $0xff]]  ;;  %s2668_s15 = sld [smem:[#allocation2 + $0x100]] }
  0xf7   :  { %v919_v13 = vadd.f32 %v918_v48, %v913_v7  ;;  %v954_v51 = vmul.f32 %v953_v35, %v951_v32  ;;  %v1088_v54 = vmul.f32 %v1087_v37, %v1085_v36  ;;  %v965_v55 = vstv %s2615_s24  ;;  %v969_v48 = vld [vmem:[#allocation7 + $0x1b] sm:$0x1]  ;;  %v1139_v32 = vld [vmem:[#allocation9 + $0x17] sm:$0x1]  ;;  %s2672_s16 = sld [smem:[#allocation2 + $0x101]]  ;;  %s2675_s17 = sld [smem:[#allocation2 + $0x102]] }
  0xf8   :  { %v1059_v23 = vadd.f32 %v1058_v10, %v1053_v16  ;;  %v1099_v50 = vstv %s2618_s25  ;;  %v960_v41 = vmul.f32 %v959_v44, %v957_v43  ;;  %v1094_v59 = vmul.f32 %v1093_v47, %v1091_v45  ;;  %v1151_v45 = vld [vmem:[#allocation9 + $0x19] sm:$0x1]  ;;  %s2677_s1 = sld [smem:[#allocation2 + $0x103]]  ;;  %s2680_s21 = sld [smem:[#allocation2 + $0xe4]] }
  0xf9   :  { %v925_v21 = vadd.f32 %v924_v52, %v919_v13  ;;  %v1105_v61 = vstv %s2622_s3  ;;  %v966_v63 = vmul.f32 %v965_v55, %v963_v29  ;;  %v1100_v2 = vmul.f32 %v1099_v50, %v1097_v56  ;;  %v1157_v56 = vld [vmem:[#allocation9 + $0x1a] sm:$0x1]  ;;  %s2683_s18 = sld [smem:[#allocation2 + $0x104]]  ;;  %s2686_s2 = sld [smem:[#allocation2 + $0x106]] }
  0xfa   :  { %v1065_v33 = vadd.f32 %v1064_v17, %v1059_v23  ;;  %v971_v3 = vstv %s2625_s26  ;;  %v1111_v5 = vstv %s2628_s27  ;;  %v1106_v52 = vmul.f32 %v1105_v61, %v1103_v0  ;;  %v981_v23 = vld [vmem:[#allocation7 + $0x1d] sm:$0x1]  ;;  %s2688_s19 = sld [smem:[#allocation2 + $0x109]]  ;;  %s2690_s20 = sld [smem:[#allocation2 + $0x107]] }
  0xfb   :  { %v931_v30 = vadd.f32 %v930_v14, %v925_v21  ;;  %v1117_v9 = vstv %s2632_s28  ;;  %v972_v11 = vmul.f32 %v971_v3, %v969_v48  ;;  %v1112_v13 = vmul.f32 %v1111_v5, %v1109_v4  ;;  %s2692_s22 = sld [smem:[#allocation2 + $0x108]]  ;;  %v1169_v48 = vld [vmem:[#allocation9 + $0x1c] sm:$0x1]  ;;  %s2695_s23 = sld [smem:[#allocation2 + $0x10a]]  ;;  %v1175_v4 = vld [vmem:[#allocation9 + $0x1d] sm:$0x1] }
  0xfc   :  { %v1071_v40 = vadd.f32 %v1070_v24, %v1065_v33  ;;  %v977_v14 = vstv %s2635_s29  ;;  %v1123_v16 = vstv %s2638_s0  ;;  %v1118_v18 = vmul.f32 %v1117_v9, %v1115_v8  ;;  %s2697_s24 = sld [smem:[#allocation2 + $0x10b]]  ;;  %v1181_v8 = vld [vmem:[#allocation9 + $0x1e] sm:$0x1]  ;;  %s2702_s25 = sld [smem:[#allocation2 + $0x105]] }
  0xfd   :  { %v937_v38 = vadd.f32 %v936_v22, %v931_v30  ;;  %v1129_v20 = vstv %s2641_s4  ;;  %v978_v22 = vmul.f32 %v977_v14, %v975_v12  ;;  %v1124_v25 = vmul.f32 %v1123_v16, %v1121_v15  ;;  %s2704_s3 = sld [smem:[#allocation2 + $0x10c]]  ;;  %s2708_s26 = sld [smem:[#allocation2 + $0x10d]] }
  0xfe   :  { %v1077_v53 = vadd.f32 %v1076_v34, %v1071_v40  ;;  %v983_v26 = vstv %s2644_s7  ;;  %v1135_v28 = vstv %s2647_s8  ;;  %v1141_v33 = vstv %s2650_s9  ;;  %v1145_v40 = vld [vmem:[#allocation9 + $0x18] sm:$0x1]  ;;  %s2710_s27 = sld [smem:[#allocation2 + $0x10e]]  ;;  %s1572_s28 = sld [smem:[#allocation2 + $0x10f]] }
  0xff   :  { %v943_v49 = vadd.f32 %v942_v31, %v937_v38  ;;  %v1130_v31 = vmul.f32 %v1129_v20, %v1127_v19  ;;  %v984_v35 = vmul.f32 %v983_v26, %v981_v23  ;;  %v1136_v37 = vmul.f32 %v1135_v28, %v1133_v27  ;;  %v987_v38 = vld [vmem:[#allocation7 + $0x1e] sm:$0x1]  ;;  %s1576_s29 = sld [smem:[#allocation2 + $0x110]]  ;;  %s1580_s0 = sld [smem:[#allocation2 + $0x111]] }
 0x100   :  { %v1083_v58 = vadd.f32 %v1082_v42, %v1077_v53  ;;  %v1147_v42 = vstv %s2656_s11  ;;  %v1142_v44 = vmul.f32 %v1141_v33, %v1139_v32  ;;  %v1153_v47 = vstv %s2659_s12  ;;  %s1581_s4 = sld [smem:[#allocation2 + $0x112]]  ;;  %s1582_s7 = sld [smem:[#allocation2 + $0x113]] }
 0x101   :  { %v949_v57 = vadd.f32 %v948_v39, %v943_v49  ;;  %v989_v39 = vstv %s2653_s10  ;;  %v1148_v53 = vmul.f32 %v1147_v42, %v1145_v40  ;;  %v995_v55 = vstv %s2662_s13  ;;  %s1736_s8 = smov [#allocation11]  }
 0x102   :  { %v1089_v1 = vadd.f32 %v1088_v54, %v1083_v58  ;;  %v993_v54 = vld [vmem:[#allocation7 + $0x1f] sm:$0x1]  ;;  %v1159_v50 = vstv %s2665_s14  ;;  %v1163_v58 = vld [vmem:[#allocation9 + $0x1b] sm:$0x1]  ;;  %v1177_v5 = vstv %s2675_s17  ;;  %v1183_v9 = vstv %s2677_s1  ;;  %s1290_s9 = sshll.u32 %s1736_s8, 4  ;;  %s1291_s9 = int_to_ptr.vmem [resolvable:$true] %s1290_s9 }
 0x103   :  { %v955_v62 = vadd.f32 %v954_v51, %v949_v57  ;;  %v990_v51 = vmul.f32 %v989_v39, %v987_v38  ;;  %v996_v61 = vmul.f32 %v995_v55, %v993_v54  ;;  %v1178_v12 = vmul.f32 %v1177_v5, %v1175_v4  ;;  %s1697_s10 = scalar_lea.vmem %s1291_s9, 64  ;;  %p1702_p10 = scmp.lt.s32.totalorder %s1291_s9, %s1291_s9 }
 0x104   :  { %v1095_v7 = vadd.f32 %v1094_v59, %v1089_v1  ;;  %v1165_v59 = vstv %s2668_s15  ;;  %v1171_v1 = vstv %s2672_s16  ;;  %v1189_v14 = vstv %s2683_s18  ;;  %p1698_p9 = scmp.ne.s32.totalorder %s1291_s9, %s1697_s10  ;;  %p1703_p11 = scmp.lt.s32.totalorder %s1697_s10, %s1697_s10 }
 0x105   :  { %v961_v6 = vadd.f32 %v960_v41, %v955_v62  ;;  %v1154_v41 = vmul.f32 %v1153_v47, %v1151_v45  ;;  %v1166_v3 = vmul.f32 %v1165_v59, %v1163_v58  ;;  %v1196_v15 = vstv %s2686_s2 }
 0x106   :  { %v1101_v60 = vadd.f32 %v1100_v2, %v1095_v7  ;;  %v1224_v19 = vstv %s2692_s22  ;;  %v1199_v20 = vstv %s2688_s19  ;;  %v1193_v33 = vstv %s2702_s25  ;;  %p1704_p12 = por %p1703_p11, %p1702_p10 }
 0x107   :  { %v967_v10 = vadd.f32 %v966_v63, %v961_v6  ;;  %v1160_v63 = vmul.f32 %v1159_v50, %v1157_v56  ;;  %v1225_v27 = vmul.f32 %v1224_v19, %v2517_v46  ;;  %v1207_v47 = vstv %s1572_s28 }
 0x108   :  { %v1107_v17 = vadd.f32 %v1106_v52, %v1101_v60  ;;  %v1172_v52 = vmul.f32 %v1171_v1, %v1169_v48  ;;  %v1184_v60 = vmul.f32 %v1183_v9, %v1181_v8  ;;  %p1705_p13 = pnand %p1704_p12, %p1698_p9 }
 0x109   :  { %v973_v21 = vadd.f32 %v972_v11, %v967_v10  ;;  %v999_v10 = vstv %s2680_s21 }
 0x10a   :  { %v1113_v24 = vadd.f32 %v1112_v13, %v1107_v17  ;;  %v1187_v13 = vld [vmem:[#allocation9 + $0x1f] sm:$0x1] }
 0x10b   :  { %v979_v34 = vadd.f32 %v978_v22, %v973_v21  ;;  %v1213_v21 = vstv %s2695_s23  ;;  %v1227_v22 = vstv %s2697_s24 }
 0x10c   :  { %v1119_v30 = vadd.f32 %v1118_v18, %v1113_v24  ;;  %v1210_v18 = vstv %s2690_s20  ;;  %v1190_v24 = vmul.f32 %v1189_v14, %v1187_v13  ;;  %v1264_v13 = vstv %s1582_s7 }
 0x10d   :  { %v985_v49 = vadd.f32 %v984_v35, %v979_v34  ;;  %v1211_v26 = vmul.f32 %v1210_v18, %v2517_v46  ;;  %v1203_v35 = vstv %s2704_s3 }
 0x10e   :  { %v1125_v36 = vadd.f32 %v1124_v25, %v1119_v30  ;;  %v1197_v25 = vmul.f32 %v1196_v15, %v2517_v46 }
 0x10f   :  { %v991_v0 = vadd.f32 %v990_v51, %v985_v49  ;;  %v1221_v49 = vstv %s1576_s29  ;;  %v1235_v51 = vstv %s1580_s0 }
 0x110   :  { %v1131_v43 = vadd.f32 %v1130_v31, %v1125_v36  ;;  %v1217_v36 = vstv %s2708_s26 }
 0x111   :  { %v997_v6 = vadd.f32 %v996_v61, %v991_v0 }
 0x112   :  { %v1137_v29 = vadd.f32 %v1136_v37, %v1131_v43  ;;  %v1231_v37 = vstv %s2710_s27 }
 0x113   :  { %v2712_v16 = vadd.f32 %v999_v10, %v997_v6 }
 0x114   :  { %v1143_v57 = vadd.f32 %v1142_v44, %v1137_v29 }
 0x115   :  { %v1200_v30 = vmul.f32 %v1199_v20, %v2712_v16  ;;  %v1214_v31 = vmul.f32 %v1213_v21, %v2712_v16  ;;  %v1228_v32 = vmul.f32 %v1227_v22, %v2712_v16 }
 0x116   :  { %v1149_v62 = vadd.f32 %v1148_v53, %v1143_v57 }
 0x117   :  { %v1201_v39 = vadd.f32 %v1200_v30, %v1197_v25  ;;  %v1215_v40 = vadd.f32 %v1214_v31, %v1211_v26  ;;  %v1229_v42 = vadd.f32 %v1228_v32, %v1225_v27 }
 0x118   :  { %v1155_v2 = vadd.f32 %v1154_v41, %v1149_v62 }
 0x11a   :  { %v1161_v7 = vadd.f32 %v1160_v63, %v1155_v2 }
 0x11c   :  { %v1167_v11 = vadd.f32 %v1166_v3, %v1161_v7 }
 0x11e   :  { %v1173_v17 = vadd.f32 %v1172_v52, %v1167_v11 }
 0x120   :  { %v1179_v23 = vadd.f32 %v1178_v12, %v1173_v17  ;;  %v1261_v12 = vstv %s1581_s4 }
 0x122   :  { %v1185_v28 = vadd.f32 %v1184_v60, %v1179_v23 }
 0x124   :  { %v1191_v34 = vadd.f32 %v1190_v24, %v1185_v28 }
 0x126   :  { %v1194_v38 = vadd.f32 %v1193_v33, %v1191_v34 }
 0x128   :  { %v1204_v43 = vmul.f32 %v1203_v35, %v1194_v38  ;;  %v1218_v44 = vmul.f32 %v1217_v36, %v1194_v38  ;;  %v1232_v45 = vmul.f32 %v1231_v37, %v1194_v38 }
 0x12a   :  { %v1205_v29 = vadd.f32 %v1204_v43, %v1201_v39  ;;  %v1219_v53 = vadd.f32 %v1218_v44, %v1215_v40  ;;  %v1233_v54 = vadd.f32 %v1232_v45, %v1229_v42 }
 0x12c   :  { %v1208_v55 = vadd.f32 %v1207_v47, %v1205_v29  ;;  %v1222_v56 = vadd.f32 %v1221_v49, %v1219_v53  ;;  %v1236_v50 = vadd.f32 %v1235_v51, %v1233_v54 }
 0x12e   :  { %v1237_v57 = vmax.f32 %v1208_v55, %v1222_v56 }
 0x130   :  { %v1238_v41 = vmax.f32 %v1237_v57, %v1236_v50 }
 0x132   :  { %v1239_v58 = vsub.f32 %v1208_v55, %v1238_v41  ;;  %v1242_v59 = vsub.f32 %v1222_v56, %v1238_v41  ;;  %v1245_v0 = vsub.f32 %v1236_v50, %v1238_v41 }
 0x134   :  { %v1240_v61 = vmul.f32 1.442695, %v1239_v58  ;;  %v1243_v62 = vmul.f32 1.442695, %v1242_v59  ;;  %v1246_v63 = vmul.f32 1.442695, %v1245_v0 }
 0x136   :  { %1591 = vpow2.f32 %v1240_v61 }
 0x137   :  { %1593 = vpow2.f32 %v1243_v62 }
 0x138   :  { %1595 = vpow2.f32 %v1246_v63 }
 0x140   :  { %v1592_v48 = vpop.eup %1591 }
 0x141   :  { %v1594_v1 = vpop.eup %1593 }
 0x142   :  { %v1596_v2 = vpop.eup %1595  ;;  %v1248_v3 = vadd.f32 %v1594_v1, %v1592_v48 }
 0x144   :  { %v1249_v4 = vadd.f32 %v1596_v2, %v1248_v3 }
 0x146   :  { %1597 = vrcp.f32 %v1249_v4 }
 0x150   :  { %v1598_v5 = vpop.eup %1597 }
 0x151   :  { %v1252_v6 = vmul.f32 %v1598_v5, %v1592_v48  ;;  %v1253_v7 = vmul.f32 %v1598_v5, %v1594_v1  ;;  %v1254_v52 = vmul.f32 %v1598_v5, %v1596_v2 }
 0x153   :  { %v1255_v8 = vmul.f32 %v1252_v6, %v2517_v46  ;;  %v1256_v9 = vmul.f32 %v1253_v7, %v2712_v16  ;;  %v1258_v10 = vmul.f32 %v1254_v52, %v1194_v38  ;;  %1266 = vst [vmem:[#allocation11] sm:$0x1] %v1252_v6  ;;  %1268 = vst [vmem:[#allocation11 + $0x1] sm:$0x1] %v1253_v7 }
 0x154   :  { %1270 = vst [vmem:[#allocation11 + $0x2] sm:$0x1] %v1254_v52 }
 0x155   :  { %v1257_v11 = vadd.f32 %v1256_v9, %v1255_v8 }
 0x157   :  { %v1259_v60 = vadd.f32 %v1258_v10, %v1257_v11 }
 0x159   :  { %v1262_v14 = vmul.f32 %v1261_v12, %v1259_v60 }
 0x15b   :  { %v1265_v15 = vadd.f32 %v1264_v13, %v1262_v14 }
 0x15d   :  { %1272 = vst [vmem:[#allocation11 + $0x3] sm:$0x1] %v1265_v15 }
 0x15e   :  { %1708 = shalt.err (!%p1705_p13)
}
 0x15f   :  { %s1709_s13 = scalar_lea.hbm %s2751_s5, 64 }
 0x160   :  { %p1710_p0 = scmp.ne.s32.totalorder %s2751_s5, %s1709_s13  ;;  %p1713_p1 = scmp.lt.u32.totalorder %s1709_s13, %s2751_s5 }
 0x162   :  { %p1715_p2 = pnand %p1713_p1, %p1710_p0 }
 0x164   :  { %1718 = shalt.err (!%p1715_p2)
}
 0x165   :  { %1296 = dma.vmem_to_hbm [thread:$0]  %s1291_s9, 64, %s2751_s5, [#allocation12], %s1731_s30, %s1731_s30, %s1732_s6  }
 0x166   :  { %1725 = dma.done.wait [#allocation4], 64  }
 0x167   :  { %1726 = vsyncadd [#allocation4], 4294967232 }
 0x168   :  { %1727 = dma.done.wait [#allocation12], 64  }
 0x169   :  { %1728 = vsyncadd [#allocation12], 4294967232 }
 0x16a   :  { %1303 = vsyncpa [#allocation3], 1 }
 0x16b   :  { %1304 = vsyncpa [#allocation8], 1 }
 0x16c   :  { %1305 = vsyncpa [#allocation4], 1 }
 0x16d   :  { %1306 = vsyncpa [#allocation12], 1 }
 0x16e   :  { %1307 = vsyncpa [#allocation5], 1 }

</bundles_post_ra>
